<compile_context>
chip_gen: v6e
topology: v6e:2x2x1
jax: 0.10.0
libtpu: 0.0.40
codegen_flags: <defaults>
</compile_context>

<pallas_src>
import functools

import jax
import jax.numpy as jnp
from jax.experimental import pallas as pl
from jax.experimental.pallas import tpu as pltpu


def _full_spec(shape):
    """BlockSpec covering the whole array (no grid)."""
    nd = len(shape)
    return pl.BlockSpec(shape, lambda *_: (0,) * nd)


# ----------------------------------------------------------------------------
# Fused forward kernel: backbone -> LSTM stack -> per-step classifier.
# ----------------------------------------------------------------------------
def _fused_kernel(*refs, hidden, num_layers):
    # refs layout:
    #   inputs : x[T, C*HW], wb_big[C*HW, F], bb[1, F],
    #            (wih[Din,4H], whh[H,4H], b[1,4H]) * num_layers,
    #            wfc[H, n_class], bfc[1, n_class]
    #   outputs: o[B, T, n_class]
    #   scratch: hs_a[T, H], hs_b[T, H]   (ping-pong hidden-state buffers)
    x_ref, wb_ref, bb_ref = refs[0:3]
    layer_refs = refs[3:3 + 3 * num_layers]
    wfc_ref, bfc_ref, o_ref, hs_a, hs_b = refs[3 + 3 * num_layers:]
    hs_bufs = (hs_a, hs_b)

    T = x_ref.shape[0]
    H = hidden
    f32 = jnp.float32

    # --- Backbone stand-in: pool folded into the projection weight ----------
    # pooled @ wb  ==  x_flat @ wb_big   (wb_big pre-scaled by 1/(H*W))
    feats = jnp.dot(x_ref[...], wb_ref[...],
                    preferred_element_type=f32) + bb_ref[...]          # [T, F]

    # --- LSTM stack (batch collapsed: all B rows are identical copies) ------
    seq = feats
    for l in range(num_layers):
        wih_ref, whh_ref, b_ref = layer_refs[3 * l:3 * l + 3]
        hs = hs_bufs[l % 2]

        # Hoisted input projection + combined bias for ALL time steps at once.
        gx = jnp.dot(seq, wih_ref[...],
                     preferred_element_type=f32) + b_ref[...]          # [T, 4H]
        whh = whh_ref[...]                                             # [H, 4H]

        h = jnp.zeros((1, H), f32)
        c = jnp.zeros((1, H), f32)
        # Static python loop == fully unrolled (T small, static): scheduler
        # can interleave the recurrent matmul / EUP / VPU work across steps.
        for t in range(T):
            gates = gx[t:t + 1, :] + jnp.dot(h, whh,
                                             preferred_element_type=f32)  # [1, 4H]
            sig_all = jax.nn.sigmoid(gates)     # full-vreg EUP op
            tanh_all = jnp.tanh(gates)          # full-vreg EUP op
            i_g = sig_all[:, 0 * H:1 * H]
            f_g = sig_all[:, 1 * H:2 * H]
            g_g = tanh_all[:, 2 * H:3 * H]
            o_g = sig_all[:, 3 * H:4 * H]
            c = f_g * c + i_g * g_g
            h = o_g * jnp.tanh(c)
            hs[t:t + 1, :] = h                  # VMEM scratch accumulator
        seq = hs[...]                                                  # [T, H]
        # TODO(synk): nn.LSTM inter-layer dropout (p=0.4) is train-only; eval = id.

    # --- Per-timestep classifier head ---------------------------------------
    logits = jnp.dot(seq, wfc_ref[...],
                     preferred_element_type=f32) + bfc_ref[...]        # [T, n_class]

    # All batch rows identical (PyTorch `backbone(x[0])` quirk) -> batch-first
    # output written in one dense store; no trailing XLA transpose needed.
    o_ref[...] = jnp.broadcast_to(logits[None, :, :], o_ref.shape)


# ----------------------------------------------------------------------------
# Full model forward (single pallas_call)
# ----------------------------------------------------------------------------
def lstm_model_forward(x, params, *, hidden, num_layers):
    B, T, C, H, W = x.shape
    hw = H * W
    n_class = params["wfc"].shape[1]

    # PyTorch quirk: every loop iteration encodes x[0] -> compute once.
    x0 = x[0].reshape(T, C * hw).astype(jnp.float32)                   # [T, C*HW]

    # Fold global-average-pool into the projection weight (one-time transform).
    wb_big = jnp.repeat(params["wb"] / jnp.float32(hw), hw, axis=0)    # [C*HW, F]

    inputs = [x0, wb_big, params["bb"]]
    for l in range(num_layers):
        inputs += [params[f"wih{l}"], params[f"whh{l}"], params[f"b{l}"]]
    inputs += [params["wfc"], params["bfc"]]

    in_specs = [_full_spec(a.shape) for a in inputs]
    out_shape = jax.ShapeDtypeStruct((B, T, n_class), jnp.float32)

    kernel = functools.partial(_fused_kernel, hidden=hidden,
                               num_layers=num_layers)
    return pl.pallas_call(
        kernel,
        out_shape=out_shape,
        in_specs=in_specs,
        out_specs=_full_spec((B, T, n_class)),
        scratch_shapes=[
            pltpu.VMEM((T, hidden), jnp.float32),
            pltpu.VMEM((T, hidden), jnp.float32),
        ],
    )(*inputs)


def init_params(key, *, in_ch, n_features, hidden, n_class, num_layers):
    keys = jax.random.split(key, 4 + 3 * num_layers)
    k = iter(keys)
    scale_b = 1.0 / jnp.sqrt(jnp.float32(in_ch))
    scale_h = 1.0 / jnp.sqrt(jnp.float32(hidden))
    params = {
        "wb": jax.random.uniform(next(k), (in_ch, n_features), jnp.float32,
                                 -scale_b, scale_b),
        "bb": jax.random.uniform(next(k), (1, n_features), jnp.float32,
                                 -scale_b, scale_b),
        "wfc": jax.random.uniform(next(k), (hidden, n_class), jnp.float32,
                                  -scale_h, scale_h),
        "bfc": jax.random.uniform(next(k), (1, n_class), jnp.float32,
                                  -scale_h, scale_h),
    }
    for l in range(num_layers):
        din = n_features if l == 0 else hidden
        params[f"wih{l}"] = jax.random.uniform(next(k), (din, 4 * hidden),
                                               jnp.float32, -scale_h, scale_h)
        params[f"whh{l}"] = jax.random.uniform(next(k), (hidden, 4 * hidden),
                                               jnp.float32, -scale_h, scale_h)
        # combined b_ih + b_hh
        params[f"b{l}"] = jax.random.uniform(next(k), (1, 4 * hidden),
                                             jnp.float32, -2 * scale_h,
                                             2 * scale_h)
    return params


if __name__ == "__main__":
    # small shapes consistent with the module's forward
    B, T, C, H, W = 2, 8, 4, 16, 16
    n_features, hidden, n_class, num_layers = 128, 32, 7, 2

    key = jax.random.PRNGKey(0)
    kx, kp = jax.random.split(key)
    x = jax.random.normal(kx, (B, T, C, H, W), dtype=jnp.float32)
    params = init_params(kp, in_ch=C, n_features=n_features, hidden=hidden,
                         n_class=n_class, num_layers=num_layers)

    fwd = jax.jit(functools.partial(lstm_model_forward, hidden=hidden,
                                    num_layers=num_layers))
    out = jax.block_until_ready(fwd(x, params))
    assert out.shape == (B, T, n_class), out.shape
    print("KERNEL_OK")
</pallas_src>

<mosaic_0001>
module attributes {stable_mosaic.version = 11 : i64} {
  func.func @_fused_kernel(%arg0: memref<8x1024xf32, #tpu.memory_space<vmem>>, %arg1: memref<1024x128xf32, #tpu.memory_space<vmem>>, %arg2: memref<1x128xf32, #tpu.memory_space<vmem>>, %arg3: memref<128x128xf32, #tpu.memory_space<vmem>>, %arg4: memref<32x128xf32, #tpu.memory_space<vmem>>, %arg5: memref<1x128xf32, #tpu.memory_space<vmem>>, %arg6: memref<32x128xf32, #tpu.memory_space<vmem>>, %arg7: memref<32x128xf32, #tpu.memory_space<vmem>>, %arg8: memref<1x128xf32, #tpu.memory_space<vmem>>, %arg9: memref<32x7xf32, #tpu.memory_space<vmem>>, %arg10: memref<1x7xf32, #tpu.memory_space<vmem>>, %arg11: memref<2x8x7xf32, #tpu.memory_space<vmem>>, %arg12: memref<8x32xf32, #tpu.memory_space<vmem>>, %arg13: memref<8x32xf32, #tpu.memory_space<vmem>>) attributes {dimension_semantics = [], scalar_prefetch = 0 : i64, scratch_operands = 2 : i64, tpu.core_type = #tpu.core_type<tc>} {
    %c0 = arith.constant 0 : index
    %c0_0 = arith.constant 0 : index
    %0 = vector.load %arg0[%c0, %c0_0] : memref<8x1024xf32, #tpu.memory_space<vmem>>, vector<8x1024xf32>
    %c0_1 = arith.constant 0 : index
    %c0_2 = arith.constant 0 : index
    %1 = vector.load %arg1[%c0_1, %c0_2] : memref<1024x128xf32, #tpu.memory_space<vmem>>, vector<1024x128xf32>
    %cst = arith.constant dense<0.000000e+00> : vector<8x128xf32>
    %2 = tpu.matmul %0, %1, %cst {dimension_numbers = #tpu.dot_dimension_numbers<[1], [0], [0], [1], [0, 0, 1, 1], [], []>} : vector<8x1024xf32>, vector<1024x128xf32>, vector<8x128xf32> -> vector<8x128xf32>
    %c0_3 = arith.constant 0 : index
    %c0_4 = arith.constant 0 : index
    %3 = vector.load %arg2[%c0_3, %c0_4] : memref<1x128xf32, #tpu.memory_space<vmem>>, vector<1x128xf32>
    %4 = vector.broadcast %3 : vector<1x128xf32> to vector<8x128xf32>
    %5 = arith.addf %2, %4 : vector<8x128xf32>
    %c0_5 = arith.constant 0 : index
    %c0_6 = arith.constant 0 : index
    %6 = vector.load %arg3[%c0_5, %c0_6] : memref<128x128xf32, #tpu.memory_space<vmem>>, vector<128x128xf32>
    %cst_7 = arith.constant dense<0.000000e+00> : vector<8x128xf32>
    %7 = tpu.matmul %5, %6, %cst_7 {dimension_numbers = #tpu.dot_dimension_numbers<[1], [0], [0], [1], [0, 0, 1, 1], [], []>} : vector<8x128xf32>, vector<128x128xf32>, vector<8x128xf32> -> vector<8x128xf32>
    %c0_8 = arith.constant 0 : index
    %c0_9 = arith.constant 0 : index
    %8 = vector.load %arg5[%c0_8, %c0_9] : memref<1x128xf32, #tpu.memory_space<vmem>>, vector<1x128xf32>
    %9 = vector.broadcast %8 : vector<1x128xf32> to vector<8x128xf32>
    %10 = arith.addf %7, %9 : vector<8x128xf32>
    %c0_10 = arith.constant 0 : index
    %c0_11 = arith.constant 0 : index
    %11 = vector.load %arg4[%c0_10, %c0_11] : memref<32x128xf32, #tpu.memory_space<vmem>>, vector<32x128xf32>
    %cst_12 = arith.constant 0.000000e+00 : f32
    %12 = vector.broadcast %cst_12 : f32 to vector<1x32xf32>
    %cst_13 = arith.constant 0.000000e+00 : f32
    %13 = vector.broadcast %cst_13 : f32 to vector<1x32xf32>
    %14 = vector.extract_strided_slice %10 {offsets = [0, 0], sizes = [1, 128], strides = [1, 1]} : vector<8x128xf32> to vector<1x128xf32>
    %cst_14 = arith.constant dense<0.000000e+00> : vector<1x128xf32>
    %15 = tpu.matmul %12, %11, %cst_14 {dimension_numbers = #tpu.dot_dimension_numbers<[1], [0], [0], [1], [0, 0, 1, 1], [], []>} : vector<1x32xf32>, vector<32x128xf32>, vector<1x128xf32> -> vector<1x128xf32>
    %16 = arith.addf %14, %15 : vector<1x128xf32>
    %17 = arith.negf %16 : vector<1x128xf32>
    %18 = math.exp %17 : vector<1x128xf32>
    %cst_15 = arith.constant 1.000000e+00 : f32
    %19 = vector.broadcast %cst_15 : f32 to vector<1x128xf32>
    %20 = arith.addf %19, %18 : vector<1x128xf32>
    %21 = arith.divf %19, %20 : vector<1x128xf32>
    %22 = math.tanh %16 : vector<1x128xf32>
    %23 = vector.extract_strided_slice %21 {offsets = [0, 0], sizes = [1, 32], strides = [1, 1]} : vector<1x128xf32> to vector<1x32xf32>
    %24 = vector.extract_strided_slice %21 {offsets = [0, 32], sizes = [1, 32], strides = [1, 1]} : vector<1x128xf32> to vector<1x32xf32>
    %25 = vector.extract_strided_slice %22 {offsets = [0, 64], sizes = [1, 32], strides = [1, 1]} : vector<1x128xf32> to vector<1x32xf32>
    %26 = vector.extract_strided_slice %21 {offsets = [0, 96], sizes = [1, 32], strides = [1, 1]} : vector<1x128xf32> to vector<1x32xf32>
    %27 = arith.mulf %24, %13 : vector<1x32xf32>
    %28 = arith.mulf %23, %25 : vector<1x32xf32>
    %29 = arith.addf %27, %28 : vector<1x32xf32>
    %30 = math.tanh %29 : vector<1x32xf32>
    %31 = arith.mulf %26, %30 : vector<1x32xf32>
    %c0_16 = arith.constant 0 : index
    %c0_17 = arith.constant 0 : index
    %32 = vector.load %arg12[%c0_16, %c0_17] : memref<8x32xf32, #tpu.memory_space<vmem>>, vector<1x32xf32>
    tpu.vector_store %arg12[%c0_16, %c0_17], %31 {strides = array<i32>} : memref<8x32xf32, #tpu.memory_space<vmem>>, vector<1x32xf32>,
    %33 = vector.extract_strided_slice %10 {offsets = [1, 0], sizes = [1, 128], strides = [1, 1]} : vector<8x128xf32> to vector<1x128xf32>
    %cst_18 = arith.constant dense<0.000000e+00> : vector<1x128xf32>
    %34 = tpu.matmul %31, %11, %cst_18 {dimension_numbers = #tpu.dot_dimension_numbers<[1], [0], [0], [1], [0, 0, 1, 1], [], []>} : vector<1x32xf32>, vector<32x128xf32>, vector<1x128xf32> -> vector<1x128xf32>
    %35 = arith.addf %33, %34 : vector<1x128xf32>
    %36 = arith.negf %35 : vector<1x128xf32>
    %37 = math.exp %36 : vector<1x128xf32>
    %cst_19 = arith.constant 1.000000e+00 : f32
    %38 = vector.broadcast %cst_19 : f32 to vector<1x128xf32>
    %39 = arith.addf %38, %37 : vector<1x128xf32>
    %40 = arith.divf %38, %39 : vector<1x128xf32>
    %41 = math.tanh %35 : vector<1x128xf32>
    %42 = vector.extract_strided_slice %40 {offsets = [0, 0], sizes = [1, 32], strides = [1, 1]} : vector<1x128xf32> to vector<1x32xf32>
    %43 = vector.extract_strided_slice %40 {offsets = [0, 32], sizes = [1, 32], strides = [1, 1]} : vector<1x128xf32> to vector<1x32xf32>
    %44 = vector.extract_strided_slice %41 {offsets = [0, 64], sizes = [1, 32], strides = [1, 1]} : vector<1x128xf32> to vector<1x32xf32>
    %45 = vector.extract_strided_slice %40 {offsets = [0, 96], sizes = [1, 32], strides = [1, 1]} : vector<1x128xf32> to vector<1x32xf32>
    %46 = arith.mulf %43, %29 : vector<1x32xf32>
    %47 = arith.mulf %42, %44 : vector<1x32xf32>
    %48 = arith.addf %46, %47 : vector<1x32xf32>
    %49 = math.tanh %48 : vector<1x32xf32>
    %50 = arith.mulf %45, %49 : vector<1x32xf32>
    %c1 = arith.constant 1 : index
    %c0_20 = arith.constant 0 : index
    %51 = vector.load %arg12[%c1, %c0_20] : memref<8x32xf32, #tpu.memory_space<vmem>>, vector<1x32xf32>
    tpu.vector_store %arg12[%c1, %c0_20], %50 {strides = array<i32>} : memref<8x32xf32, #tpu.memory_space<vmem>>, vector<1x32xf32>,
    %52 = vector.extract_strided_slice %10 {offsets = [2, 0], sizes = [1, 128], strides = [1, 1]} : vector<8x128xf32> to vector<1x128xf32>
    %cst_21 = arith.constant dense<0.000000e+00> : vector<1x128xf32>
    %53 = tpu.matmul %50, %11, %cst_21 {dimension_numbers = #tpu.dot_dimension_numbers<[1], [0], [0], [1], [0, 0, 1, 1], [], []>} : vector<1x32xf32>, vector<32x128xf32>, vector<1x128xf32> -> vector<1x128xf32>
    %54 = arith.addf %52, %53 : vector<1x128xf32>
    %55 = arith.negf %54 : vector<1x128xf32>
    %56 = math.exp %55 : vector<1x128xf32>
    %cst_22 = arith.constant 1.000000e+00 : f32
    %57 = vector.broadcast %cst_22 : f32 to vector<1x128xf32>
    %58 = arith.addf %57, %56 : vector<1x128xf32>
    %59 = arith.divf %57, %58 : vector<1x128xf32>
    %60 = math.tanh %54 : vector<1x128xf32>
    %61 = vector.extract_strided_slice %59 {offsets = [0, 0], sizes = [1, 32], strides = [1, 1]} : vector<1x128xf32> to vector<1x32xf32>
    %62 = vector.extract_strided_slice %59 {offsets = [0, 32], sizes = [1, 32], strides = [1, 1]} : vector<1x128xf32> to vector<1x32xf32>
    %63 = vector.extract_strided_slice %60 {offsets = [0, 64], sizes = [1, 32], strides = [1, 1]} : vector<1x128xf32> to vector<1x32xf32>
    %64 = vector.extract_strided_slice %59 {offsets = [0, 96], sizes = [1, 32], strides = [1, 1]} : vector<1x128xf32> to vector<1x32xf32>
    %65 = arith.mulf %62, %48 : vector<1x32xf32>
    %66 = arith.mulf %61, %63 : vector<1x32xf32>
    %67 = arith.addf %65, %66 : vector<1x32xf32>
    %68 = math.tanh %67 : vector<1x32xf32>
    %69 = arith.mulf %64, %68 : vector<1x32xf32>
    %c2 = arith.constant 2 : index
    %c0_23 = arith.constant 0 : index
    %70 = vector.load %arg12[%c2, %c0_23] : memref<8x32xf32, #tpu.memory_space<vmem>>, vector<1x32xf32>
    tpu.vector_store %arg12[%c2, %c0_23], %69 {strides = array<i32>} : memref<8x32xf32, #tpu.memory_space<vmem>>, vector<1x32xf32>,
    %71 = vector.extract_strided_slice %10 {offsets = [3, 0], sizes = [1, 128], strides = [1, 1]} : vector<8x128xf32> to vector<1x128xf32>
    %cst_24 = arith.constant dense<0.000000e+00> : vector<1x128xf32>
    %72 = tpu.matmul %69, %11, %cst_24 {dimension_numbers = #tpu.dot_dimension_numbers<[1], [0], [0], [1], [0, 0, 1, 1], [], []>} : vector<1x32xf32>, vector<32x128xf32>, vector<1x128xf32> -> vector<1x128xf32>
    %73 = arith.addf %71, %72 : vector<1x128xf32>
    %74 = arith.negf %73 : vector<1x128xf32>
    %75 = math.exp %74 : vector<1x128xf32>
    %cst_25 = arith.constant 1.000000e+00 : f32
    %76 = vector.broadcast %cst_25 : f32 to vector<1x128xf32>
    %77 = arith.addf %76, %75 : vector<1x128xf32>
    %78 = arith.divf %76, %77 : vector<1x128xf32>
    %79 = math.tanh %73 : vector<1x128xf32>
    %80 = vector.extract_strided_slice %78 {offsets = [0, 0], sizes = [1, 32], strides = [1, 1]} : vector<1x128xf32> to vector<1x32xf32>
    %81 = vector.extract_strided_slice %78 {offsets = [0, 32], sizes = [1, 32], strides = [1, 1]} : vector<1x128xf32> to vector<1x32xf32>
    %82 = vector.extract_strided_slice %79 {offsets = [0, 64], sizes = [1, 32], strides = [1, 1]} : vector<1x128xf32> to vector<1x32xf32>
    %83 = vector.extract_strided_slice %78 {offsets = [0, 96], sizes = [1, 32], strides = [1, 1]} : vector<1x128xf32> to vector<1x32xf32>
    %84 = arith.mulf %81, %67 : vector<1x32xf32>
    %85 = arith.mulf %80, %82 : vector<1x32xf32>
    %86 = arith.addf %84, %85 : vector<1x32xf32>
    %87 = math.tanh %86 : vector<1x32xf32>
    %88 = arith.mulf %83, %87 : vector<1x32xf32>
    %c3 = arith.constant 3 : index
    %c0_26 = arith.constant 0 : index
    %89 = vector.load %arg12[%c3, %c0_26] : memref<8x32xf32, #tpu.memory_space<vmem>>, vector<1x32xf32>
    tpu.vector_store %arg12[%c3, %c0_26], %88 {strides = array<i32>} : memref<8x32xf32, #tpu.memory_space<vmem>>, vector<1x32xf32>,
    %90 = vector.extract_strided_slice %10 {offsets = [4, 0], sizes = [1, 128], strides = [1, 1]} : vector<8x128xf32> to vector<1x128xf32>
    %cst_27 = arith.constant dense<0.000000e+00> : vector<1x128xf32>
    %91 = tpu.matmul %88, %11, %cst_27 {dimension_numbers = #tpu.dot_dimension_numbers<[1], [0], [0], [1], [0, 0, 1, 1], [], []>} : vector<1x32xf32>, vector<32x128xf32>, vector<1x128xf32> -> vector<1x128xf32>
    %92 = arith.addf %90, %91 : vector<1x128xf32>
    %93 = arith.negf %92 : vector<1x128xf32>
    %94 = math.exp %93 : vector<1x128xf32>
    %cst_28 = arith.constant 1.000000e+00 : f32
    %95 = vector.broadcast %cst_28 : f32 to vector<1x128xf32>
    %96 = arith.addf %95, %94 : vector<1x128xf32>
    %97 = arith.divf %95, %96 : vector<1x128xf32>
    %98 = math.tanh %92 : vector<1x128xf32>
    %99 = vector.extract_strided_slice %97 {offsets = [0, 0], sizes = [1, 32], strides = [1, 1]} : vector<1x128xf32> to vector<1x32xf32>
    %100 = vector.extract_strided_slice %97 {offsets = [0, 32], sizes = [1, 32], strides = [1, 1]} : vector<1x128xf32> to vector<1x32xf32>
    %101 = vector.extract_strided_slice %98 {offsets = [0, 64], sizes = [1, 32], strides = [1, 1]} : vector<1x128xf32> to vector<1x32xf32>
    %102 = vector.extract_strided_slice %97 {offsets = [0, 96], sizes = [1, 32], strides = [1, 1]} : vector<1x128xf32> to vector<1x32xf32>
    %103 = arith.mulf %100, %86 : vector<1x32xf32>
    %104 = arith.mulf %99, %101 : vector<1x32xf32>
    %105 = arith.addf %103, %104 : vector<1x32xf32>
    %106 = math.tanh %105 : vector<1x32xf32>
    %107 = arith.mulf %102, %106 : vector<1x32xf32>
    %c4 = arith.constant 4 : index
    %c0_29 = arith.constant 0 : index
    %108 = vector.load %arg12[%c4, %c0_29] : memref<8x32xf32, #tpu.memory_space<vmem>>, vector<1x32xf32>
    tpu.vector_store %arg12[%c4, %c0_29], %107 {strides = array<i32>} : memref<8x32xf32, #tpu.memory_space<vmem>>, vector<1x32xf32>,
    %109 = vector.extract_strided_slice %10 {offsets = [5, 0], sizes = [1, 128], strides = [1, 1]} : vector<8x128xf32> to vector<1x128xf32>
    %cst_30 = arith.constant dense<0.000000e+00> : vector<1x128xf32>
    %110 = tpu.matmul %107, %11, %cst_30 {dimension_numbers = #tpu.dot_dimension_numbers<[1], [0], [0], [1], [0, 0, 1, 1], [], []>} : vector<1x32xf32>, vector<32x128xf32>, vector<1x128xf32> -> vector<1x128xf32>
    %111 = arith.addf %109, %110 : vector<1x128xf32>
    %112 = arith.negf %111 : vector<1x128xf32>
    %113 = math.exp %112 : vector<1x128xf32>
    %cst_31 = arith.constant 1.000000e+00 : f32
    %114 = vector.broadcast %cst_31 : f32 to vector<1x128xf32>
    %115 = arith.addf %114, %113 : vector<1x128xf32>
    %116 = arith.divf %114, %115 : vector<1x128xf32>
    %117 = math.tanh %111 : vector<1x128xf32>
    %118 = vector.extract_strided_slice %116 {offsets = [0, 0], sizes = [1, 32], strides = [1, 1]} : vector<1x128xf32> to vector<1x32xf32>
    %119 = vector.extract_strided_slice %116 {offsets = [0, 32], sizes = [1, 32], strides = [1, 1]} : vector<1x128xf32> to vector<1x32xf32>
    %120 = vector.extract_strided_slice %117 {offsets = [0, 64], sizes = [1, 32], strides = [1, 1]} : vector<1x128xf32> to vector<1x32xf32>
    %121 = vector.extract_strided_slice %116 {offsets = [0, 96], sizes = [1, 32], strides = [1, 1]} : vector<1x128xf32> to vector<1x32xf32>
    %122 = arith.mulf %119, %105 : vector<1x32xf32>
    %123 = arith.mulf %118, %120 : vector<1x32xf32>
    %124 = arith.addf %122, %123 : vector<1x32xf32>
    %125 = math.tanh %124 : vector<1x32xf32>
    %126 = arith.mulf %121, %125 : vector<1x32xf32>
    %c5 = arith.constant 5 : index
    %c0_32 = arith.constant 0 : index
    %127 = vector.load %arg12[%c5, %c0_32] : memref<8x32xf32, #tpu.memory_space<vmem>>, vector<1x32xf32>
    tpu.vector_store %arg12[%c5, %c0_32], %126 {strides = array<i32>} : memref<8x32xf32, #tpu.memory_space<vmem>>, vector<1x32xf32>,
    %128 = vector.extract_strided_slice %10 {offsets = [6, 0], sizes = [1, 128], strides = [1, 1]} : vector<8x128xf32> to vector<1x128xf32>
    %cst_33 = arith.constant dense<0.000000e+00> : vector<1x128xf32>
    %129 = tpu.matmul %126, %11, %cst_33 {dimension_numbers = #tpu.dot_dimension_numbers<[1], [0], [0], [1], [0, 0, 1, 1], [], []>} : vector<1x32xf32>, vector<32x128xf32>, vector<1x128xf32> -> vector<1x128xf32>
    %130 = arith.addf %128, %129 : vector<1x128xf32>
    %131 = arith.negf %130 : vector<1x128xf32>
    %132 = math.exp %131 : vector<1x128xf32>
    %cst_34 = arith.constant 1.000000e+00 : f32
    %133 = vector.broadcast %cst_34 : f32 to vector<1x128xf32>
    %134 = arith.addf %133, %132 : vector<1x128xf32>
    %135 = arith.divf %133, %134 : vector<1x128xf32>
    %136 = math.tanh %130 : vector<1x128xf32>
    %137 = vector.extract_strided_slice %135 {offsets = [0, 0], sizes = [1, 32], strides = [1, 1]} : vector<1x128xf32> to vector<1x32xf32>
    %138 = vector.extract_strided_slice %135 {offsets = [0, 32], sizes = [1, 32], strides = [1, 1]} : vector<1x128xf32> to vector<1x32xf32>
    %139 = vector.extract_strided_slice %136 {offsets = [0, 64], sizes = [1, 32], strides = [1, 1]} : vector<1x128xf32> to vector<1x32xf32>
    %140 = vector.extract_strided_slice %135 {offsets = [0, 96], sizes = [1, 32], strides = [1, 1]} : vector<1x128xf32> to vector<1x32xf32>
    %141 = arith.mulf %138, %124 : vector<1x32xf32>
    %142 = arith.mulf %137, %139 : vector<1x32xf32>
    %143 = arith.addf %141, %142 : vector<1x32xf32>
    %144 = math.tanh %143 : vector<1x32xf32>
    %145 = arith.mulf %140, %144 : vector<1x32xf32>
    %c6 = arith.constant 6 : index
    %c0_35 = arith.constant 0 : index
    %146 = vector.load %arg12[%c6, %c0_35] : memref<8x32xf32, #tpu.memory_space<vmem>>, vector<1x32xf32>
    tpu.vector_store %arg12[%c6, %c0_35], %145 {strides = array<i32>} : memref<8x32xf32, #tpu.memory_space<vmem>>, vector<1x32xf32>,
    %147 = vector.extract_strided_slice %10 {offsets = [7, 0], sizes = [1, 128], strides = [1, 1]} : vector<8x128xf32> to vector<1x128xf32>
    %cst_36 = arith.constant dense<0.000000e+00> : vector<1x128xf32>
    %148 = tpu.matmul %145, %11, %cst_36 {dimension_numbers = #tpu.dot_dimension_numbers<[1], [0], [0], [1], [0, 0, 1, 1], [], []>} : vector<1x32xf32>, vector<32x128xf32>, vector<1x128xf32> -> vector<1x128xf32>
    %149 = arith.addf %147, %148 : vector<1x128xf32>
    %150 = arith.negf %149 : vector<1x128xf32>
    %151 = math.exp %150 : vector<1x128xf32>
    %cst_37 = arith.constant 1.000000e+00 : f32
    %152 = vector.broadcast %cst_37 : f32 to vector<1x128xf32>
    %153 = arith.addf %152, %151 : vector<1x128xf32>
    %154 = arith.divf %152, %153 : vector<1x128xf32>
    %155 = math.tanh %149 : vector<1x128xf32>
    %156 = vector.extract_strided_slice %154 {offsets = [0, 0], sizes = [1, 32], strides = [1, 1]} : vector<1x128xf32> to vector<1x32xf32>
    %157 = vector.extract_strided_slice %154 {offsets = [0, 32], sizes = [1, 32], strides = [1, 1]} : vector<1x128xf32> to vector<1x32xf32>
    %158 = vector.extract_strided_slice %155 {offsets = [0, 64], sizes = [1, 32], strides = [1, 1]} : vector<1x128xf32> to vector<1x32xf32>
    %159 = vector.extract_strided_slice %154 {offsets = [0, 96], sizes = [1, 32], strides = [1, 1]} : vector<1x128xf32> to vector<1x32xf32>
    %160 = arith.mulf %157, %143 : vector<1x32xf32>
    %161 = arith.mulf %156, %158 : vector<1x32xf32>
    %162 = arith.addf %160, %161 : vector<1x32xf32>
    %163 = math.tanh %162 : vector<1x32xf32>
    %164 = arith.mulf %159, %163 : vector<1x32xf32>
    %c7 = arith.constant 7 : index
    %c0_38 = arith.constant 0 : index
    %165 = vector.load %arg12[%c7, %c0_38] : memref<8x32xf32, #tpu.memory_space<vmem>>, vector<1x32xf32>
    tpu.vector_store %arg12[%c7, %c0_38], %164 {strides = array<i32>} : memref<8x32xf32, #tpu.memory_space<vmem>>, vector<1x32xf32>,
    %c0_39 = arith.constant 0 : index
    %c0_40 = arith.constant 0 : index
    %166 = vector.load %arg12[%c0_39, %c0_40] : memref<8x32xf32, #tpu.memory_space<vmem>>, vector<8x32xf32>
    %c0_41 = arith.constant 0 : index
    %c0_42 = arith.constant 0 : index
    %167 = vector.load %arg6[%c0_41, %c0_42] : memref<32x128xf32, #tpu.memory_space<vmem>>, vector<32x128xf32>
    %cst_43 = arith.constant dense<0.000000e+00> : vector<8x128xf32>
    %168 = tpu.matmul %166, %167, %cst_43 {dimension_numbers = #tpu.dot_dimension_numbers<[1], [0], [0], [1], [0, 0, 1, 1], [], []>} : vector<8x32xf32>, vector<32x128xf32>, vector<8x128xf32> -> vector<8x128xf32>
    %c0_44 = arith.constant 0 : index
    %c0_45 = arith.constant 0 : index
    %169 = vector.load %arg8[%c0_44, %c0_45] : memref<1x128xf32, #tpu.memory_space<vmem>>, vector<1x128xf32>
    %170 = vector.broadcast %169 : vector<1x128xf32> to vector<8x128xf32>
    %171 = arith.addf %168, %170 : vector<8x128xf32>
    %c0_46 = arith.constant 0 : index
    %c0_47 = arith.constant 0 : index
    %172 = vector.load %arg7[%c0_46, %c0_47] : memref<32x128xf32, #tpu.memory_space<vmem>>, vector<32x128xf32>
    %cst_48 = arith.constant 0.000000e+00 : f32
    %173 = vector.broadcast %cst_48 : f32 to vector<1x32xf32>
    %cst_49 = arith.constant 0.000000e+00 : f32
    %174 = vector.broadcast %cst_49 : f32 to vector<1x32xf32>
    %175 = vector.extract_strided_slice %171 {offsets = [0, 0], sizes = [1, 128], strides = [1, 1]} : vector<8x128xf32> to vector<1x128xf32>
    %cst_50 = arith.constant dense<0.000000e+00> : vector<1x128xf32>
    %176 = tpu.matmul %173, %172, %cst_50 {dimension_numbers = #tpu.dot_dimension_numbers<[1], [0], [0], [1], [0, 0, 1, 1], [], []>} : vector<1x32xf32>, vector<32x128xf32>, vector<1x128xf32> -> vector<1x128xf32>
    %177 = arith.addf %175, %176 : vector<1x128xf32>
    %178 = arith.negf %177 : vector<1x128xf32>
    %179 = math.exp %178 : vector<1x128xf32>
    %cst_51 = arith.constant 1.000000e+00 : f32
    %180 = vector.broadcast %cst_51 : f32 to vector<1x128xf32>
    %181 = arith.addf %180, %179 : vector<1x128xf32>
    %182 = arith.divf %180, %181 : vector<1x128xf32>
    %183 = math.tanh %177 : vector<1x128xf32>
    %184 = vector.extract_strided_slice %182 {offsets = [0, 0], sizes = [1, 32], strides = [1, 1]} : vector<1x128xf32> to vector<1x32xf32>
    %185 = vector.extract_strided_slice %182 {offsets = [0, 32], sizes = [1, 32], strides = [1, 1]} : vector<1x128xf32> to vector<1x32xf32>
    %186 = vector.extract_strided_slice %183 {offsets = [0, 64], sizes = [1, 32], strides = [1, 1]} : vector<1x128xf32> to vector<1x32xf32>
    %187 = vector.extract_strided_slice %182 {offsets = [0, 96], sizes = [1, 32], strides = [1, 1]} : vector<1x128xf32> to vector<1x32xf32>
    %188 = arith.mulf %185, %174 : vector<1x32xf32>
    %189 = arith.mulf %184, %186 : vector<1x32xf32>
    %190 = arith.addf %188, %189 : vector<1x32xf32>
    %191 = math.tanh %190 : vector<1x32xf32>
    %192 = arith.mulf %187, %191 : vector<1x32xf32>
    %c0_52 = arith.constant 0 : index
    %c0_53 = arith.constant 0 : index
    %193 = vector.load %arg13[%c0_52, %c0_53] : memref<8x32xf32, #tpu.memory_space<vmem>>, vector<1x32xf32>
    tpu.vector_store %arg13[%c0_52, %c0_53], %192 {strides = array<i32>} : memref<8x32xf32, #tpu.memory_space<vmem>>, vector<1x32xf32>,
    %194 = vector.extract_strided_slice %171 {offsets = [1, 0], sizes = [1, 128], strides = [1, 1]} : vector<8x128xf32> to vector<1x128xf32>
    %cst_54 = arith.constant dense<0.000000e+00> : vector<1x128xf32>
    %195 = tpu.matmul %192, %172, %cst_54 {dimension_numbers = #tpu.dot_dimension_numbers<[1], [0], [0], [1], [0, 0, 1, 1], [], []>} : vector<1x32xf32>, vector<32x128xf32>, vector<1x128xf32> -> vector<1x128xf32>
    %196 = arith.addf %194, %195 : vector<1x128xf32>
    %197 = arith.negf %196 : vector<1x128xf32>
    %198 = math.exp %197 : vector<1x128xf32>
    %cst_55 = arith.constant 1.000000e+00 : f32
    %199 = vector.broadcast %cst_55 : f32 to vector<1x128xf32>
    %200 = arith.addf %199, %198 : vector<1x128xf32>
    %201 = arith.divf %199, %200 : vector<1x128xf32>
    %202 = math.tanh %196 : vector<1x128xf32>
    %203 = vector.extract_strided_slice %201 {offsets = [0, 0], sizes = [1, 32], strides = [1, 1]} : vector<1x128xf32> to vector<1x32xf32>
    %204 = vector.extract_strided_slice %201 {offsets = [0, 32], sizes = [1, 32], strides = [1, 1]} : vector<1x128xf32> to vector<1x32xf32>
    %205 = vector.extract_strided_slice %202 {offsets = [0, 64], sizes = [1, 32], strides = [1, 1]} : vector<1x128xf32> to vector<1x32xf32>
    %206 = vector.extract_strided_slice %201 {offsets = [0, 96], sizes = [1, 32], strides = [1, 1]} : vector<1x128xf32> to vector<1x32xf32>
    %207 = arith.mulf %204, %190 : vector<1x32xf32>
    %208 = arith.mulf %203, %205 : vector<1x32xf32>
    %209 = arith.addf %207, %208 : vector<1x32xf32>
    %210 = math.tanh %209 : vector<1x32xf32>
    %211 = arith.mulf %206, %210 : vector<1x32xf32>
    %c1_56 = arith.constant 1 : index
    %c0_57 = arith.constant 0 : index
    %212 = vector.load %arg13[%c1_56, %c0_57] : memref<8x32xf32, #tpu.memory_space<vmem>>, vector<1x32xf32>
    tpu.vector_store %arg13[%c1_56, %c0_57], %211 {strides = array<i32>} : memref<8x32xf32, #tpu.memory_space<vmem>>, vector<1x32xf32>,
    %213 = vector.extract_strided_slice %171 {offsets = [2, 0], sizes = [1, 128], strides = [1, 1]} : vector<8x128xf32> to vector<1x128xf32>
    %cst_58 = arith.constant dense<0.000000e+00> : vector<1x128xf32>
    %214 = tpu.matmul %211, %172, %cst_58 {dimension_numbers = #tpu.dot_dimension_numbers<[1], [0], [0], [1], [0, 0, 1, 1], [], []>} : vector<1x32xf32>, vector<32x128xf32>, vector<1x128xf32> -> vector<1x128xf32>
    %215 = arith.addf %213, %214 : vector<1x128xf32>
    %216 = arith.negf %215 : vector<1x128xf32>
    %217 = math.exp %216 : vector<1x128xf32>
    %cst_59 = arith.constant 1.000000e+00 : f32
    %218 = vector.broadcast %cst_59 : f32 to vector<1x128xf32>
    %219 = arith.addf %218, %217 : vector<1x128xf32>
    %220 = arith.divf %218, %219 : vector<1x128xf32>
    %221 = math.tanh %215 : vector<1x128xf32>
    %222 = vector.extract_strided_slice %220 {offsets = [0, 0], sizes = [1, 32], strides = [1, 1]} : vector<1x128xf32> to vector<1x32xf32>
    %223 = vector.extract_strided_slice %220 {offsets = [0, 32], sizes = [1, 32], strides = [1, 1]} : vector<1x128xf32> to vector<1x32xf32>
    %224 = vector.extract_strided_slice %221 {offsets = [0, 64], sizes = [1, 32], strides = [1, 1]} : vector<1x128xf32> to vector<1x32xf32>
    %225 = vector.extract_strided_slice %220 {offsets = [0, 96], sizes = [1, 32], strides = [1, 1]} : vector<1x128xf32> to vector<1x32xf32>
    %226 = arith.mulf %223, %209 : vector<1x32xf32>
    %227 = arith.mulf %222, %224 : vector<1x32xf32>
    %228 = arith.addf %226, %227 : vector<1x32xf32>
    %229 = math.tanh %228 : vector<1x32xf32>
    %230 = arith.mulf %225, %229 : vector<1x32xf32>
    %c2_60 = arith.constant 2 : index
    %c0_61 = arith.constant 0 : index
    %231 = vector.load %arg13[%c2_60, %c0_61] : memref<8x32xf32, #tpu.memory_space<vmem>>, vector<1x32xf32>
    tpu.vector_store %arg13[%c2_60, %c0_61], %230 {strides = array<i32>} : memref<8x32xf32, #tpu.memory_space<vmem>>, vector<1x32xf32>,
    %232 = vector.extract_strided_slice %171 {offsets = [3, 0], sizes = [1, 128], strides = [1, 1]} : vector<8x128xf32> to vector<1x128xf32>
    %cst_62 = arith.constant dense<0.000000e+00> : vector<1x128xf32>
    %233 = tpu.matmul %230, %172, %cst_62 {dimension_numbers = #tpu.dot_dimension_numbers<[1], [0], [0], [1], [0, 0, 1, 1], [], []>} : vector<1x32xf32>, vector<32x128xf32>, vector<1x128xf32> -> vector<1x128xf32>
    %234 = arith.addf %232, %233 : vector<1x128xf32>
    %235 = arith.negf %234 : vector<1x128xf32>
    %236 = math.exp %235 : vector<1x128xf32>
    %cst_63 = arith.constant 1.000000e+00 : f32
    %237 = vector.broadcast %cst_63 : f32 to vector<1x128xf32>
    %238 = arith.addf %237, %236 : vector<1x128xf32>
    %239 = arith.divf %237, %238 : vector<1x128xf32>
    %240 = math.tanh %234 : vector<1x128xf32>
    %241 = vector.extract_strided_slice %239 {offsets = [0, 0], sizes = [1, 32], strides = [1, 1]} : vector<1x128xf32> to vector<1x32xf32>
    %242 = vector.extract_strided_slice %239 {offsets = [0, 32], sizes = [1, 32], strides = [1, 1]} : vector<1x128xf32> to vector<1x32xf32>
    %243 = vector.extract_strided_slice %240 {offsets = [0, 64], sizes = [1, 32], strides = [1, 1]} : vector<1x128xf32> to vector<1x32xf32>
    %244 = vector.extract_strided_slice %239 {offsets = [0, 96], sizes = [1, 32], strides = [1, 1]} : vector<1x128xf32> to vector<1x32xf32>
    %245 = arith.mulf %242, %228 : vector<1x32xf32>
    %246 = arith.mulf %241, %243 : vector<1x32xf32>
    %247 = arith.addf %245, %246 : vector<1x32xf32>
    %248 = math.tanh %247 : vector<1x32xf32>
    %249 = arith.mulf %244, %248 : vector<1x32xf32>
    %c3_64 = arith.constant 3 : index
    %c0_65 = arith.constant 0 : index
    %250 = vector.load %arg13[%c3_64, %c0_65] : memref<8x32xf32, #tpu.memory_space<vmem>>, vector<1x32xf32>
    tpu.vector_store %arg13[%c3_64, %c0_65], %249 {strides = array<i32>} : memref<8x32xf32, #tpu.memory_space<vmem>>, vector<1x32xf32>,
    %251 = vector.extract_strided_slice %171 {offsets = [4, 0], sizes = [1, 128], strides = [1, 1]} : vector<8x128xf32> to vector<1x128xf32>
    %cst_66 = arith.constant dense<0.000000e+00> : vector<1x128xf32>
    %252 = tpu.matmul %249, %172, %cst_66 {dimension_numbers = #tpu.dot_dimension_numbers<[1], [0], [0], [1], [0, 0, 1, 1], [], []>} : vector<1x32xf32>, vector<32x128xf32>, vector<1x128xf32> -> vector<1x128xf32>
    %253 = arith.addf %251, %252 : vector<1x128xf32>
    %254 = arith.negf %253 : vector<1x128xf32>
    %255 = math.exp %254 : vector<1x128xf32>
    %cst_67 = arith.constant 1.000000e+00 : f32
    %256 = vector.broadcast %cst_67 : f32 to vector<1x128xf32>
    %257 = arith.addf %256, %255 : vector<1x128xf32>
    %258 = arith.divf %256, %257 : vector<1x128xf32>
    %259 = math.tanh %253 : vector<1x128xf32>
    %260 = vector.extract_strided_slice %258 {offsets = [0, 0], sizes = [1, 32], strides = [1, 1]} : vector<1x128xf32> to vector<1x32xf32>
    %261 = vector.extract_strided_slice %258 {offsets = [0, 32], sizes = [1, 32], strides = [1, 1]} : vector<1x128xf32> to vector<1x32xf32>
    %262 = vector.extract_strided_slice %259 {offsets = [0, 64], sizes = [1, 32], strides = [1, 1]} : vector<1x128xf32> to vector<1x32xf32>
    %263 = vector.extract_strided_slice %258 {offsets = [0, 96], sizes = [1, 32], strides = [1, 1]} : vector<1x128xf32> to vector<1x32xf32>
    %264 = arith.mulf %261, %247 : vector<1x32xf32>
    %265 = arith.mulf %260, %262 : vector<1x32xf32>
    %266 = arith.addf %264, %265 : vector<1x32xf32>
    %267 = math.tanh %266 : vector<1x32xf32>
    %268 = arith.mulf %263, %267 : vector<1x32xf32>
    %c4_68 = arith.constant 4 : index
    %c0_69 = arith.constant 0 : index
    %269 = vector.load %arg13[%c4_68, %c0_69] : memref<8x32xf32, #tpu.memory_space<vmem>>, vector<1x32xf32>
    tpu.vector_store %arg13[%c4_68, %c0_69], %268 {strides = array<i32>} : memref<8x32xf32, #tpu.memory_space<vmem>>, vector<1x32xf32>,
    %270 = vector.extract_strided_slice %171 {offsets = [5, 0], sizes = [1, 128], strides = [1, 1]} : vector<8x128xf32> to vector<1x128xf32>
    %cst_70 = arith.constant dense<0.000000e+00> : vector<1x128xf32>
    %271 = tpu.matmul %268, %172, %cst_70 {dimension_numbers = #tpu.dot_dimension_numbers<[1], [0], [0], [1], [0, 0, 1, 1], [], []>} : vector<1x32xf32>, vector<32x128xf32>, vector<1x128xf32> -> vector<1x128xf32>
    %272 = arith.addf %270, %271 : vector<1x128xf32>
    %273 = arith.negf %272 : vector<1x128xf32>
    %274 = math.exp %273 : vector<1x128xf32>
    %cst_71 = arith.constant 1.000000e+00 : f32
    %275 = vector.broadcast %cst_71 : f32 to vector<1x128xf32>
    %276 = arith.addf %275, %274 : vector<1x128xf32>
    %277 = arith.divf %275, %276 : vector<1x128xf32>
    %278 = math.tanh %272 : vector<1x128xf32>
    %279 = vector.extract_strided_slice %277 {offsets = [0, 0], sizes = [1, 32], strides = [1, 1]} : vector<1x128xf32> to vector<1x32xf32>
    %280 = vector.extract_strided_slice %277 {offsets = [0, 32], sizes = [1, 32], strides = [1, 1]} : vector<1x128xf32> to vector<1x32xf32>
    %281 = vector.extract_strided_slice %278 {offsets = [0, 64], sizes = [1, 32], strides = [1, 1]} : vector<1x128xf32> to vector<1x32xf32>
    %282 = vector.extract_strided_slice %277 {offsets = [0, 96], sizes = [1, 32], strides = [1, 1]} : vector<1x128xf32> to vector<1x32xf32>
    %283 = arith.mulf %280, %266 : vector<1x32xf32>
    %284 = arith.mulf %279, %281 : vector<1x32xf32>
    %285 = arith.addf %283, %284 : vector<1x32xf32>
    %286 = math.tanh %285 : vector<1x32xf32>
    %287 = arith.mulf %282, %286 : vector<1x32xf32>
    %c5_72 = arith.constant 5 : index
    %c0_73 = arith.constant 0 : index
    %288 = vector.load %arg13[%c5_72, %c0_73] : memref<8x32xf32, #tpu.memory_space<vmem>>, vector<1x32xf32>
    tpu.vector_store %arg13[%c5_72, %c0_73], %287 {strides = array<i32>} : memref<8x32xf32, #tpu.memory_space<vmem>>, vector<1x32xf32>,
    %289 = vector.extract_strided_slice %171 {offsets = [6, 0], sizes = [1, 128], strides = [1, 1]} : vector<8x128xf32> to vector<1x128xf32>
    %cst_74 = arith.constant dense<0.000000e+00> : vector<1x128xf32>
    %290 = tpu.matmul %287, %172, %cst_74 {dimension_numbers = #tpu.dot_dimension_numbers<[1], [0], [0], [1], [0, 0, 1, 1], [], []>} : vector<1x32xf32>, vector<32x128xf32>, vector<1x128xf32> -> vector<1x128xf32>
    %291 = arith.addf %289, %290 : vector<1x128xf32>
    %292 = arith.negf %291 : vector<1x128xf32>
    %293 = math.exp %292 : vector<1x128xf32>
    %cst_75 = arith.constant 1.000000e+00 : f32
    %294 = vector.broadcast %cst_75 : f32 to vector<1x128xf32>
    %295 = arith.addf %294, %293 : vector<1x128xf32>
    %296 = arith.divf %294, %295 : vector<1x128xf32>
    %297 = math.tanh %291 : vector<1x128xf32>
    %298 = vector.extract_strided_slice %296 {offsets = [0, 0], sizes = [1, 32], strides = [1, 1]} : vector<1x128xf32> to vector<1x32xf32>
    %299 = vector.extract_strided_slice %296 {offsets = [0, 32], sizes = [1, 32], strides = [1, 1]} : vector<1x128xf32> to vector<1x32xf32>
    %300 = vector.extract_strided_slice %297 {offsets = [0, 64], sizes = [1, 32], strides = [1, 1]} : vector<1x128xf32> to vector<1x32xf32>
    %301 = vector.extract_strided_slice %296 {offsets = [0, 96], sizes = [1, 32], strides = [1, 1]} : vector<1x128xf32> to vector<1x32xf32>
    %302 = arith.mulf %299, %285 : vector<1x32xf32>
    %303 = arith.mulf %298, %300 : vector<1x32xf32>
    %304 = arith.addf %302, %303 : vector<1x32xf32>
    %305 = math.tanh %304 : vector<1x32xf32>
    %306 = arith.mulf %301, %305 : vector<1x32xf32>
    %c6_76 = arith.constant 6 : index
    %c0_77 = arith.constant 0 : index
    %307 = vector.load %arg13[%c6_76, %c0_77] : memref<8x32xf32, #tpu.memory_space<vmem>>, vector<1x32xf32>
    tpu.vector_store %arg13[%c6_76, %c0_77], %306 {strides = array<i32>} : memref<8x32xf32, #tpu.memory_space<vmem>>, vector<1x32xf32>,
    %308 = vector.extract_strided_slice %171 {offsets = [7, 0], sizes = [1, 128], strides = [1, 1]} : vector<8x128xf32> to vector<1x128xf32>
    %cst_78 = arith.constant dense<0.000000e+00> : vector<1x128xf32>
    %309 = tpu.matmul %306, %172, %cst_78 {dimension_numbers = #tpu.dot_dimension_numbers<[1], [0], [0], [1], [0, 0, 1, 1], [], []>} : vector<1x32xf32>, vector<32x128xf32>, vector<1x128xf32> -> vector<1x128xf32>
    %310 = arith.addf %308, %309 : vector<1x128xf32>
    %311 = arith.negf %310 : vector<1x128xf32>
    %312 = math.exp %311 : vector<1x128xf32>
    %cst_79 = arith.constant 1.000000e+00 : f32
    %313 = vector.broadcast %cst_79 : f32 to vector<1x128xf32>
    %314 = arith.addf %313, %312 : vector<1x128xf32>
    %315 = arith.divf %313, %314 : vector<1x128xf32>
    %316 = math.tanh %310 : vector<1x128xf32>
    %317 = vector.extract_strided_slice %315 {offsets = [0, 0], sizes = [1, 32], strides = [1, 1]} : vector<1x128xf32> to vector<1x32xf32>
    %318 = vector.extract_strided_slice %315 {offsets = [0, 32], sizes = [1, 32], strides = [1, 1]} : vector<1x128xf32> to vector<1x32xf32>
    %319 = vector.extract_strided_slice %316 {offsets = [0, 64], sizes = [1, 32], strides = [1, 1]} : vector<1x128xf32> to vector<1x32xf32>
    %320 = vector.extract_strided_slice %315 {offsets = [0, 96], sizes = [1, 32], strides = [1, 1]} : vector<1x128xf32> to vector<1x32xf32>
    %321 = arith.mulf %318, %304 : vector<1x32xf32>
    %322 = arith.mulf %317, %319 : vector<1x32xf32>
    %323 = arith.addf %321, %322 : vector<1x32xf32>
    %324 = math.tanh %323 : vector<1x32xf32>
    %325 = arith.mulf %320, %324 : vector<1x32xf32>
    %c7_80 = arith.constant 7 : index
    %c0_81 = arith.constant 0 : index
    %326 = vector.load %arg13[%c7_80, %c0_81] : memref<8x32xf32, #tpu.memory_space<vmem>>, vector<1x32xf32>
    tpu.vector_store %arg13[%c7_80, %c0_81], %325 {strides = array<i32>} : memref<8x32xf32, #tpu.memory_space<vmem>>, vector<1x32xf32>,
    %c0_82 = arith.constant 0 : index
    %c0_83 = arith.constant 0 : index
    %327 = vector.load %arg13[%c0_82, %c0_83] : memref<8x32xf32, #tpu.memory_space<vmem>>, vector<8x32xf32>
    %c0_84 = arith.constant 0 : index
    %c0_85 = arith.constant 0 : index
    %328 = vector.load %arg9[%c0_84, %c0_85] : memref<32x7xf32, #tpu.memory_space<vmem>>, vector<32x7xf32>
    %cst_86 = arith.constant dense<0.000000e+00> : vector<8x7xf32>
    %329 = tpu.matmul %327, %328, %cst_86 {dimension_numbers = #tpu.dot_dimension_numbers<[1], [0], [0], [1], [0, 0, 1, 1], [], []>} : vector<8x32xf32>, vector<32x7xf32>, vector<8x7xf32> -> vector<8x7xf32>
    %c0_87 = arith.constant 0 : index
    %c0_88 = arith.constant 0 : index
    %330 = vector.load %arg10[%c0_87, %c0_88] : memref<1x7xf32, #tpu.memory_space<vmem>>, vector<1x7xf32>
    %331 = vector.broadcast %330 : vector<1x7xf32> to vector<8x7xf32>
    %332 = arith.addf %329, %331 : vector<8x7xf32>
    %333 = vector.shape_cast %332 : vector<8x7xf32> to vector<1x8x7xf32>
    %334 = vector.shape_cast %333 : vector<1x8x7xf32> to vector<1x8x7xf32>
    %335 = vector.broadcast %334 : vector<1x8x7xf32> to vector<2x8x7xf32>
    %c0_89 = arith.constant 0 : index
    %c0_90 = arith.constant 0 : index
    %c0_91 = arith.constant 0 : index
    %336 = vector.load %arg11[%c0_89, %c0_90, %c0_91] : memref<2x8x7xf32, #tpu.memory_space<vmem>>, vector<2x8x7xf32>
    tpu.vector_store %arg11[%c0_89, %c0_90, %c0_91], %335 {strides = array<i32>} : memref<2x8x7xf32, #tpu.memory_space<vmem>>, vector<2x8x7xf32>,
    return
  }
}

</mosaic_0001>

<bundles_post_ra>
// kernel: squeeze.1
= control target key start
LH: loop header
LB: loop body
LE: loop exit
PB: predicated region body
PF: predicated region fallthrough
CT: control target
= control target key end

     0   :  { %vm90_vm0 = vcmask 1041409   ;;  %vm94_vm1 = vcmask 1042434   ;;  %vm98_vm2 = vcmask 1043459   ;;  %vm102_vm3 = vcmask 1044484   ;;  %s2571_s25 = smov 112   ;;  %s2572_s10 = smov 96   ;;  %s4757_s0 = inlined_call_operand.vmem [shape: f32[1,8,4,16,16], index: 0, kind: input, shape index: {}]   ;;  %s4758_s1 = inlined_call_operand.vmem [shape: f32[8,1024], index: 1, kind: output, shape index: {}]  }
   0x1   :  { %vm106_vm4 = vcmask 1045509   ;;  %vm110_vm5 = vcmask 1046534   ;;  %v2084_v0 = vld [vmem:[%s4757_s0 + $0xf] sm:$0x1]   ;;  %vm114_vm6 = vcmask 1047559   ;;  %s2573_s23 = smov 80  }
   0x2   :  { %v2085_v1 = vld [vmem:[%s4757_s0 + $0x4e] sm:$0x2]   ;;  %v2067_v9 = vld [vmem:[%s4757_s0 + $0x7] sm:$0x1]   ;;  %v2111_v52 = vld [vmem:[%s4757_s0 + $0x37] sm:$0x1]  }
   0x3   :  { %v2086_v2 = vld [vmem:[%s4757_s0 + $0x8d] sm:$0x4]   ;;  %v160_v4 = vsel %vm90_vm0, %v2085_v1, %v2084_v0  ;;  %v2068_v10 = vld [vmem:[%s4757_s0 + $0x46] sm:$0x2]   ;;  %v2112_v53 = vld [vmem:[%s4757_s0 + $0x76] sm:$0x2]  }
   0x4   :  { %v2087_v3 = vld [vmem:[%s4757_s0 + $0xcc] sm:$0x8]   ;;  %v164_v7 = vsel %vm94_vm1, %v2086_v2, %v160_v4  ;;  %v91_v12 = vsel %vm90_vm0, %v2068_v10, %v2067_v9  ;;  %v2069_v13 = vld [vmem:[%s4757_s0 + $0x85] sm:$0x4]   ;;  %v265_v56 = vsel %vm90_vm0, %v2112_v53, %v2111_v52  ;;  %v2113_v57 = vld [vmem:[%s4757_s0 + $0xb5] sm:$0x4]  }
   0x5   :  { %v2088_v5 = vld [vmem:[%s4757_s0 + $0x10b] sm:$0x10]   ;;  %v168_v11 = vsel %vm98_vm2, %v2087_v3, %v164_v7  ;;  %v2070_v14 = vld [vmem:[%s4757_s0 + $0xc4] sm:$0x8]   ;;  %v95_v18 = vsel %vm94_vm1, %v2069_v13, %v91_v12  ;;  %v2114_v58 = vld [vmem:[%s4757_s0 + $0xf4] sm:$0x8]   ;;  %v269_v63 = vsel %vm94_vm1, %v2113_v57, %v265_v56 }
   0x6   :  { %v2089_v6 = vld [vmem:[%s4757_s0 + $0x14a] sm:$0x20]   ;;  %v2071_v15 = vld [vmem:[%s4757_s0 + $0x103] sm:$0x10]   ;;  %v172_v16 = vsel %vm102_vm3, %v2088_v5, %v168_v11  ;;  %v99_v22 = vsel %vm98_vm2, %v2070_v14, %v95_v18  ;;  %v2115_v59 = vld [vmem:[%s4757_s0 + $0x133] sm:$0x10]   ;;  %v273_v3 = vsel %vm98_vm2, %v2114_v58, %v269_v63 }
   0x7   :  { %v2090_v8 = vld [vmem:[%s4757_s0 + $0x189] sm:$0x40]   ;;  %v2072_v19 = vld [vmem:[%s4757_s0 + $0x142] sm:$0x20]   ;;  %v176_v21 = vsel %vm106_vm4, %v2089_v6, %v172_v16  ;;  %v103_v27 = vsel %vm102_vm3, %v2071_v15, %v99_v22  ;;  %v2116_v0 = vld [vmem:[%s4757_s0 + $0x172] sm:$0x20]  }
   0x8   :  { %v2091_v17 = vld [vmem:[%s4757_s0 + $0x1c8] sm:$0x80]   ;;  %v2073_v20 = vld [vmem:[%s4757_s0 + $0x181] sm:$0x40]   ;;  %v180_v26 = vsel %vm110_vm5, %v2090_v8, %v176_v21  ;;  %v107_v33 = vsel %vm106_vm4, %v2072_v19, %v103_v27  ;;  %v2117_v1 = vld [vmem:[%s4757_s0 + $0x1b1] sm:$0x40]   ;;  %v277_v8 = vsel %vm102_vm3, %v2115_v59, %v273_v3 }
   0x9   :  { %v2093_v23 = vld [vmem:[%s4757_s0 + $0x2f] sm:$0x1]   ;;  %v2074_v28 = vld [vmem:[%s4757_s0 + $0x1c0] sm:$0x80]   ;;  %v184_v32 = vsel %vm114_vm6, %v2091_v17, %v180_v26  ;;  %v111_v38 = vsel %vm110_vm5, %v2073_v20, %v107_v33  ;;  %v2102_v4 = vld [vmem:[%s4757_s0 + $0x17] sm:$0x1]   ;;  %v281_v14 = vsel %vm106_vm4, %v2116_v0, %v277_v8 }
   0xa   :  { %v2094_v24 = vld [vmem:[%s4757_s0 + $0x6e] sm:$0x2]   ;;  %v2075_v37 = vld [vmem:[%s4757_s0 + $0x27] sm:$0x1]   ;;  %185 = vrot.lane.b32.xlu1 %v184_v32, %s2571_s25  ;;  %v115_v43 = vsel %vm114_vm6, %v2074_v28, %v111_v38  ;;  %v2103_v5 = vld [vmem:[%s4757_s0 + $0x56] sm:$0x2]   ;;  %v285_v19 = vsel %vm110_vm5, %v2117_v1, %v281_v14 }
   0xb   :  { %v2095_v25 = vld [vmem:[%s4757_s0 + $0xad] sm:$0x4]   ;;  %v195_v29 = vsel %vm90_vm0, %v2094_v24, %v2093_v23  ;;  %v2076_v40 = vld [vmem:[%s4757_s0 + $0x66] sm:$0x2]   ;;  %116 = vrot.lane.b32.xlu0 %v115_v43, %s2571_s25  ;;  %v2104_v6 = vld [vmem:[%s4757_s0 + $0x95] sm:$0x4]   ;;  %v230_v10 = vsel %vm90_vm0, %v2103_v5, %v2102_v4 }
   0xc   :  { %v2096_v30 = vld [vmem:[%s4757_s0 + $0xec] sm:$0x8]   ;;  %v199_v34 = vsel %vm94_vm1, %v2095_v25, %v195_v29  ;;  %v2077_v41 = vld [vmem:[%s4757_s0 + $0xa5] sm:$0x4]   ;;  %v125_v46 = vsel %vm90_vm0, %v2076_v40, %v2075_v37  ;;  %v2118_v9 = vld [vmem:[%s4757_s0 + $0x1f0] sm:$0x80]   ;;  %v234_v15 = vsel %vm94_vm1, %v2104_v6, %v230_v10 }
   0xd   :  { %v2097_v31 = vld [vmem:[%s4757_s0 + $0x12b] sm:$0x10]   ;;  %v203_v39 = vsel %vm98_vm2, %v2096_v30, %v199_v34  ;;  %v2078_v42 = vld [vmem:[%s4757_s0 + $0xe4] sm:$0x8]   ;;  %v129_v50 = vsel %vm94_vm1, %v2077_v41, %v125_v46  ;;  %v2105_v11 = vld [vmem:[%s4757_s0 + $0xd4] sm:$0x8]   ;;  %v289_v24 = vsel %vm114_vm6, %v2118_v9, %v285_v19 }
   0xe   :  { %v2098_v35 = vld [vmem:[%s4757_s0 + $0x16a] sm:$0x20]   ;;  %v207_v44 = vsel %vm102_vm3, %v2097_v31, %v203_v39  ;;  %v2079_v47 = vld [vmem:[%s4757_s0 + $0x123] sm:$0x10]   ;;  %v133_v55 = vsel %vm98_vm2, %v2078_v42, %v129_v50  ;;  %v2106_v12 = vld [vmem:[%s4757_s0 + $0x113] sm:$0x10]   ;;  %v238_v20 = vsel %vm98_vm2, %v2105_v11, %v234_v15 }
   0xf   :  { %v2099_v36 = vld [vmem:[%s4757_s0 + $0x1a9] sm:$0x40]   ;;  %v2080_v48 = vld [vmem:[%s4757_s0 + $0x162] sm:$0x20]   ;;  %v211_v49 = vsel %vm106_vm4, %v2098_v35, %v207_v44  ;;  %v137_v61 = vsel %vm102_vm3, %v2079_v47, %v133_v55  ;;  %v2107_v16 = vld [vmem:[%s4757_s0 + $0x152] sm:$0x20]   ;;  %v242_v25 = vsel %vm102_vm3, %v2106_v12, %v238_v20 }
  0x10   :  { %v2100_v45 = vld [vmem:[%s4757_s0 + $0x1e8] sm:$0x80]   ;;  %v2081_v51 = vld [vmem:[%s4757_s0 + $0x1a1] sm:$0x40]   ;;  %v215_v54 = vsel %vm110_vm5, %v2099_v36, %v211_v49  ;;  %v141_v2 = vsel %vm106_vm4, %v2080_v48, %v137_v61  ;;  %v2108_v17 = vld [vmem:[%s4757_s0 + $0x191] sm:$0x40]   ;;  %v246_v30 = vsel %vm106_vm4, %v2107_v16, %v242_v25 }
  0x11   :  { %v219_v60 = vsel %vm114_vm6, %v2100_v45, %v215_v54  ;;  %v2082_v62 = vld [vmem:[%s4757_s0 + $0x1e0] sm:$0x80]   ;;  %v145_v7 = vsel %vm110_vm5, %v2081_v51, %v141_v2  ;;  %v2129_v18 = vld [vmem:[%s4757_s0 + $0x3f] sm:$0x1]   ;;  %v2109_v26 = vld [vmem:[%s4757_s0 + $0x1d0] sm:$0x80]   ;;  %v250_v35 = vsel %vm110_vm5, %v2108_v17, %v246_v30 }
  0x12   :  { %220 = vrot.lane.b32.xlu1 %v219_v60, %s2571_s25  ;;  %v149_v13 = vsel %vm114_vm6, %v2082_v62, %v145_v7  ;;  %v2130_v21 = vld [vmem:[%s4757_s0 + $0x7e] sm:$0x2]   ;;  %v254_v41 = vsel %vm114_vm6, %v2109_v26, %v250_v35  ;;  %v2146_v49 = vld [vmem:[%s4757_s0 + $0x26] sm:$0x1]   ;;  %v2164_v14 = vld [vmem:[%s4757_s0 + $0x2e] sm:$0x1]  }
  0x13   :  { %150 = vrot.lane.b32.xlu0 %v149_v13, %s2571_s25  ;;  %v2131_v22 = vld [vmem:[%s4757_s0 + $0xbd] sm:$0x4]   ;;  %v335_v27 = vsel %vm90_vm0, %v2130_v21, %v2129_v18  ;;  %v2147_v50 = vld [vmem:[%s4757_s0 + $0x65] sm:$0x2]   ;;  %v2165_v15 = vld [vmem:[%s4757_s0 + $0x6d] sm:$0x2]  }
  0x14   :  { %v2132_v23 = vld [vmem:[%s4757_s0 + $0xfc] sm:$0x8]   ;;  %v339_v31 = vsel %vm94_vm1, %v2131_v22, %v335_v27  ;;  %v2148_v51 = vld [vmem:[%s4757_s0 + $0xa4] sm:$0x4]   ;;  %v404_v55 = vsel %vm90_vm0, %v2147_v50, %v2146_v49  ;;  %v474_v18 = vsel %vm90_vm0, %v2165_v15, %v2164_v14  ;;  %v2166_v19 = vld [vmem:[%s4757_s0 + $0xac] sm:$0x4]  }
  0x15   :  { %v2133_v28 = vld [vmem:[%s4757_s0 + $0x13b] sm:$0x10]   ;;  %v343_v36 = vsel %vm98_vm2, %v2132_v23, %v339_v31  ;;  %v2149_v56 = vld [vmem:[%s4757_s0 + $0xe3] sm:$0x8]   ;;  %v408_v60 = vsel %vm94_vm1, %v2148_v51, %v404_v55  ;;  %v2167_v20 = vld [vmem:[%s4757_s0 + $0xeb] sm:$0x8]   ;;  %v478_v25 = vsel %vm94_vm1, %v2166_v19, %v474_v18 }
  0x16   :  { %v2134_v29 = vld [vmem:[%s4757_s0 + $0x17a] sm:$0x20]   ;;  %290 = vrot.lane.b32.xlu1 %v289_v24, %s2571_s25  ;;  %v347_v42 = vsel %vm102_vm3, %v2133_v28, %v343_v36  ;;  %v2150_v57 = vld [vmem:[%s4757_s0 + $0x122] sm:$0x10]   ;;  %v412_v1 = vsel %vm98_vm2, %v2149_v56, %v408_v60  ;;  %v2168_v21 = vld [vmem:[%s4757_s0 + $0x12a] sm:$0x10]  }
  0x17   :  { %v2135_v32 = vld [vmem:[%s4757_s0 + $0x1b9] sm:$0x40]   ;;  %255 = vrot.lane.b32.xlu0 %v254_v41, %s2571_s25  ;;  %v351_v47 = vsel %vm106_vm4, %v2134_v29, %v347_v42  ;;  %v2151_v61 = vld [vmem:[%s4757_s0 + $0x161] sm:$0x20]   ;;  %v416_v6 = vsel %vm102_vm3, %v2150_v57, %v412_v1  ;;  %v2169_v26 = vld [vmem:[%s4757_s0 + $0x169] sm:$0x20]   ;;  %v482_v29 = vsel %vm98_vm2, %v2167_v20, %v478_v25 }
  0x18   :  { %v2120_v33 = vld [vmem:[%s4757_s0 + $0x1f] sm:$0x1]   ;;  %v355_v52 = vsel %vm110_vm5, %v2135_v32, %v351_v47  ;;  %v2152_v62 = vld [vmem:[%s4757_s0 + $0x1a0] sm:$0x40]   ;;  %v420_v11 = vsel %vm106_vm4, %v2151_v61, %v416_v6  ;;  %v2170_v27 = vld [vmem:[%s4757_s0 + $0x1a8] sm:$0x40]  }
  0x19   :  { %v2121_v34 = vld [vmem:[%s4757_s0 + $0x5e] sm:$0x2]   ;;  %v2138_v63 = vld [vmem:[%s4757_s0 + $0x6] sm:$0x1]   ;;  %v424_v16 = vsel %vm110_vm5, %v2152_v62, %v420_v11  ;;  %v2155_v30 = vld [vmem:[%s4757_s0 + $0xe] sm:$0x1]  }
  0x1a   :  { %v300_v37 = vsel %vm90_vm0, %v2121_v34, %v2120_v33  ;;  %v2122_v38 = vld [vmem:[%s4757_s0 + $0x9d] sm:$0x4]   ;;  %v2139_v2 = vld [vmem:[%s4757_s0 + $0x45] sm:$0x2]   ;;  %v2156_v31 = vld [vmem:[%s4757_s0 + $0x4d] sm:$0x2]   ;;  %v486_v34 = vsel %vm102_vm3, %v2168_v21, %v482_v29 }
  0x1b   :  { %v2123_v39 = vld [vmem:[%s4757_s0 + $0xdc] sm:$0x8]   ;;  %v304_v44 = vsel %vm94_vm1, %v2122_v38, %v300_v37  ;;  %v2140_v3 = vld [vmem:[%s4757_s0 + $0x84] sm:$0x4]   ;;  %v370_v8 = vsel %vm90_vm0, %v2139_v2, %v2138_v63  ;;  %v2157_v32 = vld [vmem:[%s4757_s0 + $0x8c] sm:$0x4]   ;;  %v439_v36 = vsel %vm90_vm0, %v2156_v31, %v2155_v30 }
  0x1c   :  { %v2124_v40 = vld [vmem:[%s4757_s0 + $0x11b] sm:$0x10]   ;;  %v308_v48 = vsel %vm98_vm2, %v2123_v39, %v304_v44  ;;  %v2141_v4 = vld [vmem:[%s4757_s0 + $0xc3] sm:$0x8]   ;;  %v374_v12 = vsel %vm94_vm1, %v2140_v3, %v370_v8  ;;  %v2171_v35 = vld [vmem:[%s4757_s0 + $0x1e7] sm:$0x80]   ;;  %v443_v41 = vsel %vm94_vm1, %v2157_v32, %v439_v36 }
  0x1d   :  { %v2136_v43 = vld [vmem:[%s4757_s0 + $0x1f8] sm:$0x80]   ;;  %v312_v53 = vsel %vm102_vm3, %v2124_v40, %v308_v48  ;;  %v2153_v7 = vld [vmem:[%s4757_s0 + $0x1df] sm:$0x80]   ;;  %v378_v17 = vsel %vm98_vm2, %v2141_v4, %v374_v12  ;;  %v2158_v37 = vld [vmem:[%s4757_s0 + $0xcb] sm:$0x8]   ;;  %v490_v40 = vsel %vm106_vm4, %v2169_v26, %v486_v34 }
  0x1e   :  { %v2125_v45 = vld [vmem:[%s4757_s0 + $0x15a] sm:$0x20]   ;;  %v359_v58 = vsel %vm114_vm6, %v2136_v43, %v355_v52  ;;  %v2142_v9 = vld [vmem:[%s4757_s0 + $0x102] sm:$0x10]   ;;  %v428_v22 = vsel %vm114_vm6, %v2153_v7, %v424_v16  ;;  %v2159_v38 = vld [vmem:[%s4757_s0 + $0x10a] sm:$0x10]  }
  0x1f   :  { %v2126_v46 = vld [vmem:[%s4757_s0 + $0x199] sm:$0x40]   ;;  %v316_v59 = vsel %vm106_vm4, %v2125_v45, %v312_v53  ;;  %360 = vrot.lane.b32.xlu1 %v359_v58, %s2571_s25  ;;  %v2143_v10 = vld [vmem:[%s4757_s0 + $0x141] sm:$0x20]   ;;  %v382_v23 = vsel %vm102_vm3, %v2142_v9, %v378_v17  ;;  %v2160_v42 = vld [vmem:[%s4757_s0 + $0x149] sm:$0x20]   ;;  %v494_v45 = vsel %vm110_vm5, %v2170_v27, %v490_v40 }
  0x20   :  { %v2127_v54 = vld [vmem:[%s4757_s0 + $0x1d8] sm:$0x80]   ;;  %v320_v0 = vsel %vm110_vm5, %v2126_v46, %v316_v59  ;;  %v2144_v13 = vld [vmem:[%s4757_s0 + $0x180] sm:$0x40]   ;;  %v386_v28 = vsel %vm106_vm4, %v2143_v10, %v382_v23  ;;  %v2161_v43 = vld [vmem:[%s4757_s0 + $0x188] sm:$0x40]   ;;  %v447_v46 = vsel %vm98_vm2, %v2158_v37, %v443_v41  ;;  %v498_v50 = vsel %vm114_vm6, %v2171_v35, %v494_v45 }
  0x21   :  { %v324_v5 = vsel %vm114_vm6, %v2127_v54, %v320_v0  ;;  %v2145_v24 = vld [vmem:[%s4757_s0 + $0x1bf] sm:$0x80]   ;;  %v390_v33 = vsel %vm110_vm5, %v2144_v13, %v386_v28  ;;  %v2182_v44 = vld [vmem:[%s4757_s0 + $0x36] sm:$0x1]   ;;  %v451_v51 = vsel %vm102_vm3, %v2159_v38, %v447_v46  ;;  %v2162_v52 = vld [vmem:[%s4757_s0 + $0x1c7] sm:$0x80]  }
  0x22   :  { %325 = vrot.lane.b32.xlu0 %v324_v5, %s2571_s25  ;;  %v394_v39 = vsel %vm114_vm6, %v2145_v24, %v390_v33  ;;  %v2183_v47 = vld [vmem:[%s4757_s0 + $0x75] sm:$0x2]   ;;  %v455_v56 = vsel %vm106_vm4, %v2160_v42, %v451_v51  ;;  %v2200_v11 = vld [vmem:[%s4757_s0 + $0x3e] sm:$0x1]   ;;  %v2217_v40 = vld [vmem:[%s4757_s0 + $0x25] sm:$0x1]  }
  0x23   :  { %429 = vrot.lane.b32.xlu1 %v428_v22, %s2572_s10  ;;  %v2184_v48 = vld [vmem:[%s4757_s0 + $0xb4] sm:$0x4]   ;;  %v544_v53 = vsel %vm90_vm0, %v2183_v47, %v2182_v44  ;;  %v459_v61 = vsel %vm110_vm5, %v2161_v43, %v455_v56  ;;  %v2201_v12 = vld [vmem:[%s4757_s0 + $0x7d] sm:$0x2]   ;;  %v2218_v41 = vld [vmem:[%s4757_s0 + $0x64] sm:$0x2]  }
  0x24   :  { %v2185_v49 = vld [vmem:[%s4757_s0 + $0xf3] sm:$0x8]   ;;  %v548_v57 = vsel %vm94_vm1, %v2184_v48, %v544_v53  ;;  %v463_v3 = vsel %vm114_vm6, %v2162_v52, %v459_v61  ;;  %v2202_v13 = vld [vmem:[%s4757_s0 + $0xbc] sm:$0x4]   ;;  %v614_v17 = vsel %vm90_vm0, %v2201_v12, %v2200_v11  ;;  %v683_v44 = vsel %vm90_vm0, %v2218_v41, %v2217_v40  ;;  %v2219_v45 = vld [vmem:[%s4757_s0 + $0xa3] sm:$0x4]  }
  0x25   :  { %v2186_v54 = vld [vmem:[%s4757_s0 + $0x132] sm:$0x10]   ;;  %v552_v62 = vsel %vm98_vm2, %v2185_v49, %v548_v57  ;;  %v2203_v18 = vld [vmem:[%s4757_s0 + $0xfb] sm:$0x8]   ;;  %v618_v22 = vsel %vm94_vm1, %v2202_v13, %v614_v17  ;;  %v2220_v46 = vld [vmem:[%s4757_s0 + $0xe2] sm:$0x8]   ;;  %v687_v51 = vsel %vm94_vm1, %v2219_v45, %v683_v44 }
  0x26   :  { %395 = vrot.lane.b32.xlu0 %v394_v39, %s2572_s10  ;;  %v2187_v55 = vld [vmem:[%s4757_s0 + $0x171] sm:$0x20]   ;;  %v556_v4 = vsel %vm102_vm3, %v2186_v54, %v552_v62  ;;  %v2204_v19 = vld [vmem:[%s4757_s0 + $0x13a] sm:$0x10]   ;;  %v622_v27 = vsel %vm98_vm2, %v2203_v18, %v618_v22  ;;  %v2221_v47 = vld [vmem:[%s4757_s0 + $0x121] sm:$0x10]  }
  0x27   :  { %499 = vrot.lane.b32.xlu1 %v498_v50, %s2572_s10  ;;  %v2188_v58 = vld [vmem:[%s4757_s0 + $0x1b0] sm:$0x40]   ;;  %v560_v9 = vsel %vm106_vm4, %v2187_v55, %v556_v4  ;;  %v2205_v23 = vld [vmem:[%s4757_s0 + $0x179] sm:$0x20]   ;;  %v626_v32 = vsel %vm102_vm3, %v2204_v19, %v622_v27  ;;  %v2222_v52 = vld [vmem:[%s4757_s0 + $0x160] sm:$0x20]   ;;  %v691_v55 = vsel %vm98_vm2, %v2220_v46, %v687_v51 }
  0x28   :  { %v2173_v59 = vld [vmem:[%s4757_s0 + $0x16] sm:$0x1]   ;;  %v564_v14 = vsel %vm110_vm5, %v2188_v58, %v560_v9  ;;  %v2206_v24 = vld [vmem:[%s4757_s0 + $0x1b8] sm:$0x40]   ;;  %v630_v37 = vsel %vm106_vm4, %v2205_v23, %v626_v32  ;;  %v2223_v53 = vld [vmem:[%s4757_s0 + $0x19f] sm:$0x40]  }
  0x29   :  { %v2174_v60 = vld [vmem:[%s4757_s0 + $0x55] sm:$0x2]   ;;  %v2191_v25 = vld [vmem:[%s4757_s0 + $0x1e] sm:$0x1]   ;;  %v634_v42 = vsel %vm110_vm5, %v2206_v24, %v630_v37  ;;  %v2209_v56 = vld [vmem:[%s4757_s0 + $0x5] sm:$0x1]  }
  0x2a   :  { %v509_v63 = vsel %vm90_vm0, %v2174_v60, %v2173_v59  ;;  %v2175_v0 = vld [vmem:[%s4757_s0 + $0x94] sm:$0x4]   ;;  %464 = vrot.lane.b32.xlu0 %v463_v3, %s2572_s10  ;;  %v2192_v28 = vld [vmem:[%s4757_s0 + $0x5d] sm:$0x2]   ;;  %v2210_v57 = vld [vmem:[%s4757_s0 + $0x44] sm:$0x2]   ;;  %v695_v60 = vsel %vm102_vm3, %v2221_v47, %v691_v55 }
  0x2b   :  { %v2176_v1 = vld [vmem:[%s4757_s0 + $0xd3] sm:$0x8]   ;;  %v513_v6 = vsel %vm94_vm1, %v2175_v0, %v509_v63  ;;  %v2193_v29 = vld [vmem:[%s4757_s0 + $0x9c] sm:$0x4]   ;;  %v579_v34 = vsel %vm90_vm0, %v2192_v28, %v2191_v25  ;;  %v2211_v58 = vld [vmem:[%s4757_s0 + $0x83] sm:$0x4]   ;;  %v649_v62 = vsel %vm90_vm0, %v2210_v57, %v2209_v56 }
  0x2c   :  { %v2177_v2 = vld [vmem:[%s4757_s0 + $0x112] sm:$0x10]   ;;  %v517_v10 = vsel %vm98_vm2, %v2176_v1, %v513_v6  ;;  %v2194_v30 = vld [vmem:[%s4757_s0 + $0xdb] sm:$0x8]   ;;  %v583_v38 = vsel %vm94_vm1, %v2193_v29, %v579_v34  ;;  %v2224_v61 = vld [vmem:[%s4757_s0 + $0x1de] sm:$0x80]   ;;  %v653_v3 = vsel %vm94_vm1, %v2211_v58, %v649_v62 }
  0x2d   :  { %v2189_v5 = vld [vmem:[%s4757_s0 + $0x1ef] sm:$0x80]   ;;  %v521_v15 = vsel %vm102_vm3, %v2177_v2, %v517_v10  ;;  %v2207_v33 = vld [vmem:[%s4757_s0 + $0x1f7] sm:$0x80]   ;;  %v587_v43 = vsel %vm98_vm2, %v2194_v30, %v583_v38  ;;  %v2212_v63 = vld [vmem:[%s4757_s0 + $0xc2] sm:$0x8]   ;;  %v699_v2 = vsel %vm106_vm4, %v2222_v52, %v695_v60 }
  0x2e   :  { %v2178_v7 = vld [vmem:[%s4757_s0 + $0x151] sm:$0x20]   ;;  %v568_v20 = vsel %vm114_vm6, %v2189_v5, %v564_v14  ;;  %v2195_v35 = vld [vmem:[%s4757_s0 + $0x11a] sm:$0x10]   ;;  %v638_v48 = vsel %vm114_vm6, %v2207_v33, %v634_v42  ;;  %v2213_v0 = vld [vmem:[%s4757_s0 + $0x101] sm:$0x10]  }
  0x2f   :  { %v2179_v8 = vld [vmem:[%s4757_s0 + $0x190] sm:$0x40]   ;;  %v525_v21 = vsel %vm106_vm4, %v2178_v7, %v521_v15  ;;  %569 = vrot.lane.b32.xlu1 %v568_v20, %s2572_s10  ;;  %v2196_v36 = vld [vmem:[%s4757_s0 + $0x159] sm:$0x20]   ;;  %v591_v49 = vsel %vm102_vm3, %v2195_v35, %v587_v43  ;;  %v2214_v4 = vld [vmem:[%s4757_s0 + $0x140] sm:$0x20]   ;;  %v703_v7 = vsel %vm110_vm5, %v2223_v53, %v699_v2 }
  0x30   :  { %v2180_v16 = vld [vmem:[%s4757_s0 + $0x1cf] sm:$0x80]   ;;  %v529_v26 = vsel %vm110_vm5, %v2179_v8, %v525_v21  ;;  %v2197_v39 = vld [vmem:[%s4757_s0 + $0x198] sm:$0x40]   ;;  %v595_v54 = vsel %vm106_vm4, %v2196_v36, %v591_v49  ;;  %v2215_v5 = vld [vmem:[%s4757_s0 + $0x17f] sm:$0x40]   ;;  %v657_v8 = vsel %vm98_vm2, %v2212_v63, %v653_v3  ;;  %v707_v12 = vsel %vm114_vm6, %v2224_v61, %v703_v7 }
  0x31   :  { %v533_v31 = vsel %vm114_vm6, %v2180_v16, %v529_v26  ;;  %v2198_v50 = vld [vmem:[%s4757_s0 + $0x1d7] sm:$0x80]   ;;  %v599_v59 = vsel %vm110_vm5, %v2197_v39, %v595_v54  ;;  %v2235_v6 = vld [vmem:[%s4757_s0 + $0x2d] sm:$0x1]   ;;  %v661_v13 = vsel %vm102_vm3, %v2213_v0, %v657_v8  ;;  %v2216_v14 = vld [vmem:[%s4757_s0 + $0x1be] sm:$0x80]  }
  0x32   :  { %534 = vrot.lane.b32.xlu0 %v533_v31, %s2572_s10  ;;  %v603_v1 = vsel %vm114_vm6, %v2198_v50, %v599_v59  ;;  %v2236_v9 = vld [vmem:[%s4757_s0 + $0x6c] sm:$0x2]   ;;  %v665_v18 = vsel %vm106_vm4, %v2214_v4, %v661_v13  ;;  %v2253_v37 = vld [vmem:[%s4757_s0 + $0x35] sm:$0x1]   ;;  %v2271_v2 = vld [vmem:[%s4757_s0 + $0x3d] sm:$0x1]  }
  0x33   :  { %639 = vrot.lane.b32.xlu1 %v638_v48, %s2572_s10  ;;  %v2237_v10 = vld [vmem:[%s4757_s0 + $0xab] sm:$0x4]   ;;  %v753_v15 = vsel %vm90_vm0, %v2236_v9, %v2235_v6  ;;  %v669_v23 = vsel %vm110_vm5, %v2215_v5, %v665_v18  ;;  %v2254_v38 = vld [vmem:[%s4757_s0 + $0x74] sm:$0x2]   ;;  %v2272_v3 = vld [vmem:[%s4757_s0 + $0x7c] sm:$0x2]  }
  0x34   :  { %v2238_v11 = vld [vmem:[%s4757_s0 + $0xea] sm:$0x8]   ;;  %v757_v19 = vsel %vm94_vm1, %v2237_v10, %v753_v15  ;;  %v673_v29 = vsel %vm114_vm6, %v2216_v14, %v669_v23  ;;  %v2255_v39 = vld [vmem:[%s4757_s0 + $0xb3] sm:$0x4]   ;;  %v823_v43 = vsel %vm90_vm0, %v2254_v38, %v2253_v37  ;;  %v893_v6 = vsel %vm90_vm0, %v2272_v3, %v2271_v2  ;;  %v2273_v7 = vld [vmem:[%s4757_s0 + $0xbb] sm:$0x4]  }
  0x35   :  { %v2239_v16 = vld [vmem:[%s4757_s0 + $0x129] sm:$0x10]   ;;  %v761_v24 = vsel %vm98_vm2, %v2238_v11, %v757_v19  ;;  %v2256_v44 = vld [vmem:[%s4757_s0 + $0xf2] sm:$0x8]   ;;  %v827_v48 = vsel %vm94_vm1, %v2255_v39, %v823_v43  ;;  %v2274_v8 = vld [vmem:[%s4757_s0 + $0xfa] sm:$0x8]   ;;  %v897_v13 = vsel %vm94_vm1, %v2273_v7, %v893_v6 }
  0x36   :  { %604 = vrot.lane.b32.xlu0 %v603_v1, %s2572_s10  ;;  %v2240_v17 = vld [vmem:[%s4757_s0 + $0x168] sm:$0x20]   ;;  %v765_v30 = vsel %vm102_vm3, %v2239_v16, %v761_v24  ;;  %v2257_v45 = vld [vmem:[%s4757_s0 + $0x131] sm:$0x10]   ;;  %v831_v53 = vsel %vm98_vm2, %v2256_v44, %v827_v48  ;;  %v2275_v9 = vld [vmem:[%s4757_s0 + $0x139] sm:$0x10]  }
  0x37   :  { %708 = vrot.lane.b32.xlu1 %v707_v12, %s2573_s23  ;;  %v2241_v20 = vld [vmem:[%s4757_s0 + $0x1a7] sm:$0x40]   ;;  %v769_v35 = vsel %vm106_vm4, %v2240_v17, %v765_v30  ;;  %v2258_v49 = vld [vmem:[%s4757_s0 + $0x170] sm:$0x20]   ;;  %v835_v58 = vsel %vm102_vm3, %v2257_v45, %v831_v53  ;;  %v2276_v14 = vld [vmem:[%s4757_s0 + $0x178] sm:$0x20]   ;;  %v901_v17 = vsel %vm98_vm2, %v2274_v8, %v897_v13 }
  0x38   :  { %v2226_v21 = vld [vmem:[%s4757_s0 + $0xd] sm:$0x1]   ;;  %v773_v40 = vsel %vm110_vm5, %v2241_v20, %v769_v35  ;;  %v2259_v50 = vld [vmem:[%s4757_s0 + $0x1af] sm:$0x40]   ;;  %v839_v63 = vsel %vm106_vm4, %v2258_v49, %v835_v58  ;;  %v2277_v15 = vld [vmem:[%s4757_s0 + $0x1b7] sm:$0x40]  }
  0x39   :  { %v2227_v22 = vld [vmem:[%s4757_s0 + $0x4c] sm:$0x2]   ;;  %v2244_v51 = vld [vmem:[%s4757_s0 + $0x15] sm:$0x1]   ;;  %v843_v4 = vsel %vm110_vm5, %v2259_v50, %v839_v63  ;;  %v2262_v18 = vld [vmem:[%s4757_s0 + $0x1d] sm:$0x1]  }
  0x3a   :  { %v718_v25 = vsel %vm90_vm0, %v2227_v22, %v2226_v21  ;;  %v2228_v26 = vld [vmem:[%s4757_s0 + $0x8b] sm:$0x4]   ;;  %674 = vrot.lane.b32.xlu0 %v673_v29, %s2573_s23  ;;  %v2245_v54 = vld [vmem:[%s4757_s0 + $0x54] sm:$0x2]   ;;  %v2263_v19 = vld [vmem:[%s4757_s0 + $0x5c] sm:$0x2]   ;;  %v905_v22 = vsel %vm102_vm3, %v2275_v9, %v901_v17 }
  0x3b   :  { %v2229_v27 = vld [vmem:[%s4757_s0 + $0xca] sm:$0x8]   ;;  %v722_v32 = vsel %vm94_vm1, %v2228_v26, %v718_v25  ;;  %v2246_v55 = vld [vmem:[%s4757_s0 + $0x93] sm:$0x4]   ;;  %v788_v60 = vsel %vm90_vm0, %v2245_v54, %v2244_v51  ;;  %v2264_v20 = vld [vmem:[%s4757_s0 + $0x9b] sm:$0x4]   ;;  %v858_v24 = vsel %vm90_vm0, %v2263_v19, %v2262_v18 }
  0x3c   :  { %v2230_v28 = vld [vmem:[%s4757_s0 + $0x109] sm:$0x10]   ;;  %v726_v36 = vsel %vm98_vm2, %v2229_v27, %v722_v32  ;;  %v2247_v56 = vld [vmem:[%s4757_s0 + $0xd2] sm:$0x8]   ;;  %v792_v0 = vsel %vm94_vm1, %v2246_v55, %v788_v60  ;;  %v2278_v23 = vld [vmem:[%s4757_s0 + $0x1f6] sm:$0x80]   ;;  %v862_v29 = vsel %vm94_vm1, %v2264_v20, %v858_v24 }
  0x3d   :  { %v2242_v31 = vld [vmem:[%s4757_s0 + $0x1e6] sm:$0x80]   ;;  %v730_v41 = vsel %vm102_vm3, %v2230_v28, %v726_v36  ;;  %v2260_v59 = vld [vmem:[%s4757_s0 + $0x1ee] sm:$0x80]   ;;  %v796_v5 = vsel %vm98_vm2, %v2247_v56, %v792_v0  ;;  %v2265_v25 = vld [vmem:[%s4757_s0 + $0xda] sm:$0x8]   ;;  %v909_v28 = vsel %vm106_vm4, %v2276_v14, %v905_v22 }
  0x3e   :  { %v2231_v33 = vld [vmem:[%s4757_s0 + $0x148] sm:$0x20]   ;;  %v777_v46 = vsel %vm114_vm6, %v2242_v31, %v773_v40  ;;  %v2248_v61 = vld [vmem:[%s4757_s0 + $0x111] sm:$0x10]   ;;  %v847_v10 = vsel %vm114_vm6, %v2260_v59, %v843_v4  ;;  %v2266_v26 = vld [vmem:[%s4757_s0 + $0x119] sm:$0x10]  }
  0x3f   :  { %v2232_v34 = vld [vmem:[%s4757_s0 + $0x187] sm:$0x40]   ;;  %v734_v47 = vsel %vm106_vm4, %v2231_v33, %v730_v41  ;;  %778 = vrot.lane.b32.xlu1 %v777_v46, %s2573_s23  ;;  %v2249_v62 = vld [vmem:[%s4757_s0 + $0x150] sm:$0x20]   ;;  %v800_v11 = vsel %vm102_vm3, %v2248_v61, %v796_v5  ;;  %v2267_v30 = vld [vmem:[%s4757_s0 + $0x158] sm:$0x20]   ;;  %v913_v33 = vsel %vm110_vm5, %v2277_v15, %v909_v28 }
  0x40   :  { %v2233_v42 = vld [vmem:[%s4757_s0 + $0x1c6] sm:$0x80]   ;;  %v738_v52 = vsel %vm110_vm5, %v2232_v34, %v734_v47  ;;  %v2250_v1 = vld [vmem:[%s4757_s0 + $0x18f] sm:$0x40]   ;;  %v804_v16 = vsel %vm106_vm4, %v2249_v62, %v800_v11  ;;  %v2268_v31 = vld [vmem:[%s4757_s0 + $0x197] sm:$0x40]   ;;  %v866_v34 = vsel %vm98_vm2, %v2265_v25, %v862_v29  ;;  %v917_v38 = vsel %vm114_vm6, %v2278_v23, %v913_v33 }
  0x41   :  { %v742_v57 = vsel %vm114_vm6, %v2233_v42, %v738_v52  ;;  %v2251_v12 = vld [vmem:[%s4757_s0 + $0x1ce] sm:$0x80]   ;;  %v808_v21 = vsel %vm110_vm5, %v2250_v1, %v804_v16  ;;  %v2269_v32 = vld [vmem:[%s4757_s0 + $0x1d6] sm:$0x80]   ;;  %v2288_v35 = vld [vmem:[%s4757_s0 + $0x24] sm:$0x1]   ;;  %v870_v39 = vsel %vm102_vm3, %v2266_v26, %v866_v34 }
  0x42   :  { %743 = vrot.lane.b32.xlu0 %v742_v57, %s2573_s23  ;;  %v812_v27 = vsel %vm114_vm6, %v2251_v12, %v808_v21  ;;  %v2289_v36 = vld [vmem:[%s4757_s0 + $0x63] sm:$0x2]   ;;  %v874_v43 = vsel %vm106_vm4, %v2267_v30, %v870_v39  ;;  %v2306_v62 = vld [vmem:[%s4757_s0 + $0x2c] sm:$0x1]   ;;  %s2574_s13 = smov 64   ;;  %s2575_s27 = smov 48  }
  0x43   :  { %848 = vrot.lane.b32.xlu1 %v847_v10, %s2573_s23  ;;  %v2290_v37 = vld [vmem:[%s4757_s0 + $0xa2] sm:$0x4]   ;;  %v962_v40 = vsel %vm90_vm0, %v2289_v36, %v2288_v35  ;;  %v878_v48 = vsel %vm110_vm5, %v2268_v31, %v874_v43  ;;  %v2307_v63 = vld [vmem:[%s4757_s0 + $0x6b] sm:$0x2]   ;;  %v2324_v28 = vld [vmem:[%s4757_s0 + $0x34] sm:$0x1]  }
  0x44   :  { %v2291_v41 = vld [vmem:[%s4757_s0 + $0xe1] sm:$0x8]   ;;  %v966_v44 = vsel %vm94_vm1, %v2290_v37, %v962_v40  ;;  %v882_v53 = vsel %vm114_vm6, %v2269_v32, %v878_v48  ;;  %v1032_v2 = vsel %vm90_vm0, %v2307_v63, %v2306_v62  ;;  %v2308_v3 = vld [vmem:[%s4757_s0 + $0xaa] sm:$0x4]   ;;  %v2325_v31 = vld [vmem:[%s4757_s0 + $0x73] sm:$0x2]  }
  0x45   :  { %v2292_v42 = vld [vmem:[%s4757_s0 + $0x120] sm:$0x10]   ;;  %v970_v49 = vsel %vm98_vm2, %v2291_v41, %v966_v44  ;;  %v2309_v4 = vld [vmem:[%s4757_s0 + $0xe9] sm:$0x8]   ;;  %v1036_v9 = vsel %vm94_vm1, %v2308_v3, %v1032_v2  ;;  %v2326_v32 = vld [vmem:[%s4757_s0 + $0xb2] sm:$0x4]   ;;  %v1102_v37 = vsel %vm90_vm0, %v2325_v31, %v2324_v28 }
  0x46   :  { %813 = vrot.lane.b32.xlu0 %v812_v27, %s2573_s23  ;;  %v2293_v45 = vld [vmem:[%s4757_s0 + $0x15f] sm:$0x20]   ;;  %v974_v54 = vsel %vm102_vm3, %v2292_v42, %v970_v49  ;;  %v2310_v5 = vld [vmem:[%s4757_s0 + $0x128] sm:$0x10]   ;;  %v1040_v13 = vsel %vm98_vm2, %v2309_v4, %v1036_v9  ;;  %v2327_v33 = vld [vmem:[%s4757_s0 + $0xf1] sm:$0x8]   ;;  %v1106_v41 = vsel %vm94_vm1, %v2326_v32, %v1102_v37 }
  0x47   :  { %918 = vrot.lane.b32.xlu1 %v917_v38, %s2573_s23  ;;  %v2294_v46 = vld [vmem:[%s4757_s0 + $0x19e] sm:$0x40]   ;;  %v978_v59 = vsel %vm106_vm4, %v2293_v45, %v974_v54  ;;  %v2311_v10 = vld [vmem:[%s4757_s0 + $0x167] sm:$0x20]   ;;  %v1044_v18 = vsel %vm102_vm3, %v2310_v5, %v1040_v13  ;;  %v2328_v38 = vld [vmem:[%s4757_s0 + $0x130] sm:$0x10]  }
  0x48   :  { %v2280_v47 = vld [vmem:[%s4757_s0 + $0x4] sm:$0x1]   ;;  %v982_v0 = vsel %vm110_vm5, %v2294_v46, %v978_v59  ;;  %v2312_v11 = vld [vmem:[%s4757_s0 + $0x1a6] sm:$0x40]   ;;  %v1048_v24 = vsel %vm106_vm4, %v2311_v10, %v1044_v18  ;;  %v2329_v39 = vld [vmem:[%s4757_s0 + $0x16f] sm:$0x20]   ;;  %v1110_v46 = vsel %vm98_vm2, %v2327_v33, %v1106_v41 }
  0x49   :  { %v2281_v50 = vld [vmem:[%s4757_s0 + $0x43] sm:$0x2]   ;;  %v2297_v14 = vld [vmem:[%s4757_s0 + $0xc] sm:$0x1]   ;;  %v1052_v29 = vsel %vm110_vm5, %v2312_v11, %v1048_v24  ;;  %v2330_v42 = vld [vmem:[%s4757_s0 + $0x1ae] sm:$0x40]  }
  0x4a   :  { %v2282_v51 = vld [vmem:[%s4757_s0 + $0x82] sm:$0x4]   ;;  %v928_v56 = vsel %vm90_vm0, %v2281_v50, %v2280_v47  ;;  %883 = vrot.lane.b32.xlu0 %v882_v53, %s2573_s23  ;;  %v2298_v15 = vld [vmem:[%s4757_s0 + $0x4b] sm:$0x2]   ;;  %v2315_v43 = vld [vmem:[%s4757_s0 + $0x14] sm:$0x1]  }
  0x4b   :  { %v2283_v52 = vld [vmem:[%s4757_s0 + $0xc1] sm:$0x8]   ;;  %v932_v60 = vsel %vm94_vm1, %v2282_v51, %v928_v56  ;;  %v2299_v16 = vld [vmem:[%s4757_s0 + $0x8a] sm:$0x4]   ;;  %v997_v20 = vsel %vm90_vm0, %v2298_v15, %v2297_v14  ;;  %v2316_v44 = vld [vmem:[%s4757_s0 + $0x53] sm:$0x2]  }
  0x4c   :  { %v2295_v55 = vld [vmem:[%s4757_s0 + $0x1dd] sm:$0x80]   ;;  %v936_v1 = vsel %vm98_vm2, %v2283_v52, %v932_v60  ;;  %v2313_v19 = vld [vmem:[%s4757_s0 + $0x1e5] sm:$0x80]   ;;  %v1001_v25 = vsel %vm94_vm1, %v2299_v16, %v997_v20  ;;  %v1067_v47 = vsel %vm90_vm0, %v2316_v44, %v2315_v43  ;;  %v2317_v48 = vld [vmem:[%s4757_s0 + $0x92] sm:$0x4]   ;;  %v1114_v52 = vsel %vm102_vm3, %v2328_v38, %v1110_v46 }
  0x4d   :  { %v2284_v57 = vld [vmem:[%s4757_s0 + $0x100] sm:$0x10]   ;;  %v986_v6 = vsel %vm114_vm6, %v2295_v55, %v982_v0  ;;  %v2300_v21 = vld [vmem:[%s4757_s0 + $0xc9] sm:$0x8]   ;;  %v1056_v34 = vsel %vm114_vm6, %v2313_v19, %v1052_v29  ;;  %v2318_v49 = vld [vmem:[%s4757_s0 + $0xd1] sm:$0x8]   ;;  %v1071_v54 = vsel %vm94_vm1, %v2317_v48, %v1067_v47 }
  0x4e   :  { %v2285_v58 = vld [vmem:[%s4757_s0 + $0x13f] sm:$0x20]   ;;  %v940_v7 = vsel %vm102_vm3, %v2284_v57, %v936_v1  ;;  %987 = vrot.lane.b32.xlu1 %v986_v6, %s2574_s13  ;;  %v2301_v22 = vld [vmem:[%s4757_s0 + $0x108] sm:$0x10]   ;;  %v1005_v30 = vsel %vm98_vm2, %v2300_v21, %v1001_v25  ;;  %v2319_v50 = vld [vmem:[%s4757_s0 + $0x110] sm:$0x10]   ;;  %v1118_v57 = vsel %vm106_vm4, %v2329_v39, %v1114_v52 }
  0x4f   :  { %v2286_v61 = vld [vmem:[%s4757_s0 + $0x17e] sm:$0x40]   ;;  %v944_v12 = vsel %vm106_vm4, %v2285_v58, %v940_v7  ;;  %v2302_v26 = vld [vmem:[%s4757_s0 + $0x147] sm:$0x20]   ;;  %v1009_v35 = vsel %vm102_vm3, %v2301_v22, %v1005_v30  ;;  %v2331_v53 = vld [vmem:[%s4757_s0 + $0x1ed] sm:$0x80]   ;;  %v1075_v58 = vsel %vm98_vm2, %v2318_v49, %v1071_v54  ;;  %v1122_v62 = vsel %vm110_vm5, %v2330_v42, %v1118_v57 }
  0x50   :  { %v2287_v8 = vld [vmem:[%s4757_s0 + $0x1bd] sm:$0x80]   ;;  %v948_v17 = vsel %vm110_vm5, %v2286_v61, %v944_v12  ;;  %v2303_v27 = vld [vmem:[%s4757_s0 + $0x186] sm:$0x40]   ;;  %v1013_v40 = vsel %vm106_vm4, %v2302_v26, %v1009_v35  ;;  %v2320_v55 = vld [vmem:[%s4757_s0 + $0x14f] sm:$0x20]   ;;  %v1079_v63 = vsel %vm102_vm3, %v2319_v50, %v1075_v58  ;;  %v1126_v4 = vsel %vm114_vm6, %v2331_v53, %v1122_v62 }
  0x51   :  { %v952_v23 = vsel %vm114_vm6, %v2287_v8, %v948_v17  ;;  %v2304_v36 = vld [vmem:[%s4757_s0 + $0x1c5] sm:$0x80]   ;;  %v1017_v45 = vsel %vm110_vm5, %v2303_v27, %v1013_v40  ;;  %v2321_v56 = vld [vmem:[%s4757_s0 + $0x18e] sm:$0x40]   ;;  %v2342_v59 = vld [vmem:[%s4757_s0 + $0x3c] sm:$0x1]   ;;  %v1083_v5 = vsel %vm106_vm4, %v2320_v55, %v1079_v63 }
  0x52   :  { %953 = vrot.lane.b32.xlu0 %v952_v23, %s2574_s13  ;;  %1057 = vrot.lane.b32.xlu1 %v1056_v34, %s2574_s13  ;;  %v1021_v51 = vsel %vm114_vm6, %v2304_v36, %v1017_v45  ;;  %v2343_v60 = vld [vmem:[%s4757_s0 + $0x7b] sm:$0x2]   ;;  %v2322_v0 = vld [vmem:[%s4757_s0 + $0x1cd] sm:$0x80]   ;;  %v1087_v10 = vsel %vm110_vm5, %v2321_v56, %v1083_v5  ;;  %s2576_s16 = smov 32   ;;  %s2577_s30 = smov 16  }
  0x53   :  { %v2344_v61 = vld [vmem:[%s4757_s0 + $0xba] sm:$0x4]   ;;  %v1172_v1 = vsel %vm90_vm0, %v2343_v60, %v2342_v59  ;;  %v1091_v15 = vsel %vm114_vm6, %v2322_v0, %v1087_v10  ;;  %v2359_v24 = vld [vmem:[%s4757_s0 + $0x23] sm:$0x1]   ;;  %v2377_v54 = vld [vmem:[%s4757_s0 + $0x2b] sm:$0x1]  }
  0x54   :  { %v2345_v2 = vld [vmem:[%s4757_s0 + $0xf9] sm:$0x8]   ;;  %v1176_v6 = vsel %vm94_vm1, %v2344_v61, %v1172_v1  ;;  %v2360_v25 = vld [vmem:[%s4757_s0 + $0x62] sm:$0x2]   ;;  %v2378_v57 = vld [vmem:[%s4757_s0 + $0x6a] sm:$0x2]  }
  0x55   :  { %v2346_v3 = vld [vmem:[%s4757_s0 + $0x138] sm:$0x10]   ;;  %v1180_v11 = vsel %vm98_vm2, %v2345_v2, %v1176_v6  ;;  %v1241_v28 = vsel %vm90_vm0, %v2360_v25, %v2359_v24  ;;  %v2361_v29 = vld [vmem:[%s4757_s0 + $0xa1] sm:$0x4]   ;;  %v2379_v58 = vld [vmem:[%s4757_s0 + $0xa9] sm:$0x4]   ;;  %v1311_v63 = vsel %vm90_vm0, %v2378_v57, %v2377_v54 }
  0x56   :  { %1022 = vrot.lane.b32.xlu0 %v1021_v51, %s2574_s13  ;;  %v2347_v7 = vld [vmem:[%s4757_s0 + $0x177] sm:$0x20]   ;;  %1127 = vrot.lane.b32.xlu1 %v1126_v4, %s2574_s13  ;;  %v1184_v16 = vsel %vm102_vm3, %v2346_v3, %v1180_v11  ;;  %v2362_v30 = vld [vmem:[%s4757_s0 + $0xe0] sm:$0x8]   ;;  %v1245_v35 = vsel %vm94_vm1, %v2361_v29, %v1241_v28  ;;  %v1315_v3 = vsel %vm94_vm1, %v2379_v58, %v1311_v63  ;;  %vm4_vm7 = vcmask 1047556  }
  0x57   :  { %v2348_v8 = vld [vmem:[%s4757_s0 + $0x1b6] sm:$0x40]   ;;  %v1188_v21 = vsel %vm106_vm4, %v2347_v7, %v1184_v16  ;;  %v2363_v31 = vld [vmem:[%s4757_s0 + $0x11f] sm:$0x10]   ;;  %v1249_v39 = vsel %vm98_vm2, %v2362_v30, %v1245_v35  ;;  %v2380_v59 = vld [vmem:[%s4757_s0 + $0xe8] sm:$0x8]  }
  0x58   :  { %v2333_v9 = vld [vmem:[%s4757_s0 + $0x1c] sm:$0x1]   ;;  %v1192_v26 = vsel %vm110_vm5, %v2348_v8, %v1188_v21  ;;  %v2364_v36 = vld [vmem:[%s4757_s0 + $0x15e] sm:$0x20]   ;;  %v1253_v44 = vsel %vm102_vm3, %v2363_v31, %v1249_v39  ;;  %v2381_v0 = vld [vmem:[%s4757_s0 + $0x127] sm:$0x10]   ;;  %v1319_v8 = vsel %vm98_vm2, %v2380_v59, %v1315_v3 }
  0x59   :  { %v2334_v12 = vld [vmem:[%s4757_s0 + $0x5b] sm:$0x2]   ;;  %v2365_v37 = vld [vmem:[%s4757_s0 + $0x19d] sm:$0x40]   ;;  %v1257_v50 = vsel %vm106_vm4, %v2364_v36, %v1253_v44  ;;  %v2382_v1 = vld [vmem:[%s4757_s0 + $0x166] sm:$0x20]  }
  0x5a   :  { %v2335_v13 = vld [vmem:[%s4757_s0 + $0x9a] sm:$0x4]   ;;  %v1137_v18 = vsel %vm90_vm0, %v2334_v12, %v2333_v9  ;;  %1092 = vrot.lane.b32.xlu0 %v1091_v15, %s2574_s13  ;;  %v2351_v40 = vld [vmem:[%s4757_s0 + $0x3] sm:$0x1]   ;;  %v1261_v55 = vsel %vm110_vm5, %v2365_v37, %v1257_v50  ;;  %v2383_v4 = vld [vmem:[%s4757_s0 + $0x1a5] sm:$0x40]  }
  0x5b   :  { %v2336_v14 = vld [vmem:[%s4757_s0 + $0xd9] sm:$0x8]   ;;  %v1141_v22 = vsel %vm94_vm1, %v2335_v13, %v1137_v18  ;;  %v2352_v41 = vld [vmem:[%s4757_s0 + $0x42] sm:$0x2]   ;;  %v2368_v5 = vld [vmem:[%s4757_s0 + $0xb] sm:$0x1]  }
  0x5c   :  { %v2349_v17 = vld [vmem:[%s4757_s0 + $0x1f5] sm:$0x80]   ;;  %v1145_v27 = vsel %vm98_vm2, %v2336_v14, %v1141_v22  ;;  %v2353_v42 = vld [vmem:[%s4757_s0 + $0x81] sm:$0x4]   ;;  %v1207_v46 = vsel %vm90_vm0, %v2352_v41, %v2351_v40  ;;  %v2369_v6 = vld [vmem:[%s4757_s0 + $0x4a] sm:$0x2]   ;;  %v1323_v14 = vsel %vm102_vm3, %v2381_v0, %v1319_v8 }
  0x5d   :  { %v2337_v19 = vld [vmem:[%s4757_s0 + $0x118] sm:$0x10]   ;;  %v1196_v32 = vsel %vm114_vm6, %v2349_v17, %v1192_v26  ;;  %v2366_v45 = vld [vmem:[%s4757_s0 + $0x1dc] sm:$0x80]   ;;  %v1211_v51 = vsel %vm94_vm1, %v2353_v42, %v1207_v46  ;;  %v1276_v9 = vsel %vm90_vm0, %v2369_v6, %v2368_v5  ;;  %v2370_v10 = vld [vmem:[%s4757_s0 + $0x89] sm:$0x4]  }
  0x5e   :  { %v2338_v20 = vld [vmem:[%s4757_s0 + $0x157] sm:$0x20]   ;;  %v1149_v33 = vsel %vm102_vm3, %v2337_v19, %v1145_v27  ;;  %1197 = vrot.lane.b32.xlu1 %v1196_v32, %s2574_s13  ;;  %v2354_v47 = vld [vmem:[%s4757_s0 + $0xc0] sm:$0x8]   ;;  %v1265_v60 = vsel %vm114_vm6, %v2366_v45, %v1261_v55  ;;  %v2371_v11 = vld [vmem:[%s4757_s0 + $0xc8] sm:$0x8]   ;;  %v1280_v16 = vsel %vm94_vm1, %v2370_v10, %v1276_v9  ;;  %v1327_v19 = vsel %vm106_vm4, %v2382_v1, %v1323_v14 }
  0x5f   :  { %v2339_v23 = vld [vmem:[%s4757_s0 + $0x196] sm:$0x40]   ;;  %v1153_v38 = vsel %vm106_vm4, %v2338_v20, %v1149_v33  ;;  %v2355_v48 = vld [vmem:[%s4757_s0 + $0xff] sm:$0x10]   ;;  %v1215_v56 = vsel %vm98_vm2, %v2354_v47, %v1211_v51  ;;  %v2372_v12 = vld [vmem:[%s4757_s0 + $0x107] sm:$0x10]   ;;  %v1284_v20 = vsel %vm98_vm2, %v2371_v11, %v1280_v16  ;;  %v1331_v24 = vsel %vm110_vm5, %v2383_v4, %v1327_v19 }
  0x60   :  { %v2340_v34 = vld [vmem:[%s4757_s0 + $0x1d5] sm:$0x80]   ;;  %v1157_v43 = vsel %vm110_vm5, %v2339_v23, %v1153_v38  ;;  %v2356_v52 = vld [vmem:[%s4757_s0 + $0x13e] sm:$0x20]   ;;  %v1219_v61 = vsel %vm102_vm3, %v2355_v48, %v1215_v56  ;;  %v2384_v15 = vld [vmem:[%s4757_s0 + $0x1e4] sm:$0x80]   ;;  %v1288_v25 = vsel %vm102_vm3, %v2372_v12, %v1284_v20 }
  0x61   :  { %v1161_v49 = vsel %vm114_vm6, %v2340_v34, %v1157_v43  ;;  %v2357_v53 = vld [vmem:[%s4757_s0 + $0x17d] sm:$0x40]   ;;  %v1223_v2 = vsel %vm106_vm4, %v2356_v52, %v1219_v61  ;;  %v2373_v17 = vld [vmem:[%s4757_s0 + $0x146] sm:$0x20]   ;;  %v2395_v21 = vld [vmem:[%s4757_s0 + $0x33] sm:$0x1]   ;;  %v1335_v30 = vsel %vm114_vm6, %v2384_v15, %v1331_v24 }
  0x62   :  { %1162 = vrot.lane.b32.xlu0 %v1161_v49, %s2574_s13  ;;  %v2358_v62 = vld [vmem:[%s4757_s0 + $0x1bc] sm:$0x80]   ;;  %1266 = vrot.lane.b32.xlu1 %v1265_v60, %s2575_s27  ;;  %v1227_v7 = vsel %vm110_vm5, %v2357_v53, %v1223_v2  ;;  %v2374_v18 = vld [vmem:[%s4757_s0 + $0x185] sm:$0x40]   ;;  %v1292_v31 = vsel %vm106_vm4, %v2373_v17, %v1288_v25  ;;  %vm6_vm8 = vcmask 130048   ;;  %vm118_vm9 = vcmask 1048448  }
  0x63   :  { %v1231_v13 = vsel %vm114_vm6, %v2358_v62, %v1227_v7  ;;  %v2396_v22 = vld [vmem:[%s4757_s0 + $0x72] sm:$0x2]   ;;  %v2375_v26 = vld [vmem:[%s4757_s0 + $0x1c4] sm:$0x80]   ;;  %v1296_v36 = vsel %vm110_vm5, %v2374_v18, %v1292_v31  ;;  %v2413_v50 = vld [vmem:[%s4757_s0 + $0x3b] sm:$0x1]  }
  0x64   :  { %v2397_v23 = vld [vmem:[%s4757_s0 + $0xb1] sm:$0x4]   ;;  %v1381_v27 = vsel %vm90_vm0, %v2396_v22, %v2395_v21  ;;  %v1300_v41 = vsel %vm114_vm6, %v2375_v26, %v1296_v36  ;;  %v2414_v51 = vld [vmem:[%s4757_s0 + $0x7a] sm:$0x2]   ;;  %v2430_v19 = vld [vmem:[%s4757_s0 + $0x22] sm:$0x1]  }
  0x65   :  { %v2398_v28 = vld [vmem:[%s4757_s0 + $0xf0] sm:$0x8]   ;;  %v1385_v32 = vsel %vm94_vm1, %v2397_v23, %v1381_v27  ;;  %v1451_v54 = vsel %vm90_vm0, %v2414_v51, %v2413_v50  ;;  %v2415_v55 = vld [vmem:[%s4757_s0 + $0xb9] sm:$0x4]   ;;  %v2431_v20 = vld [vmem:[%s4757_s0 + $0x61] sm:$0x2]  }
  0x66   :  { %1232 = vrot.lane.b32.xlu0 %v1231_v13, %s2575_s27  ;;  %v2399_v29 = vld [vmem:[%s4757_s0 + $0x12f] sm:$0x10]   ;;  %1336 = vrot.lane.b32.xlu1 %v1335_v30, %s2575_s27  ;;  %v1389_v37 = vsel %vm98_vm2, %v2398_v28, %v1385_v32  ;;  %v2416_v56 = vld [vmem:[%s4757_s0 + $0xf8] sm:$0x8]   ;;  %v1455_v61 = vsel %vm94_vm1, %v2415_v55, %v1451_v54  ;;  %v1520_v24 = vsel %vm90_vm0, %v2431_v20, %v2430_v19  ;;  %vm397_vm10 = vcmask 917248  }
  0x67   :  { %v2400_v33 = vld [vmem:[%s4757_s0 + $0x16e] sm:$0x20]   ;;  %v1393_v42 = vsel %vm102_vm3, %v2399_v29, %v1389_v37  ;;  %v2417_v57 = vld [vmem:[%s4757_s0 + $0x137] sm:$0x10]   ;;  %v1459_v1 = vsel %vm98_vm2, %v2416_v56, %v1455_v61  ;;  %v2432_v21 = vld [vmem:[%s4757_s0 + $0xa0] sm:$0x4]  }
  0x68   :  { %v2401_v34 = vld [vmem:[%s4757_s0 + $0x1ad] sm:$0x40]   ;;  %v1397_v47 = vsel %vm106_vm4, %v2400_v33, %v1393_v42  ;;  %v2418_v62 = vld [vmem:[%s4757_s0 + $0x176] sm:$0x20]   ;;  %v1463_v6 = vsel %vm102_vm3, %v2417_v57, %v1459_v1  ;;  %v2433_v25 = vld [vmem:[%s4757_s0 + $0xdf] sm:$0x8]   ;;  %v1524_v28 = vsel %vm94_vm1, %v2432_v21, %v1520_v24 }
  0x69   :  { %v2386_v35 = vld [vmem:[%s4757_s0 + $0x13] sm:$0x1]   ;;  %v1401_v52 = vsel %vm110_vm5, %v2401_v34, %v1397_v47  ;;  %v2419_v63 = vld [vmem:[%s4757_s0 + $0x1b5] sm:$0x40]   ;;  %v1467_v12 = vsel %vm106_vm4, %v2418_v62, %v1463_v6  ;;  %v2434_v26 = vld [vmem:[%s4757_s0 + $0x11e] sm:$0x10]   ;;  %v1528_v33 = vsel %vm98_vm2, %v2433_v25, %v1524_v28 }
  0x6a   :  { %v2387_v38 = vld [vmem:[%s4757_s0 + $0x52] sm:$0x2]   ;;  %1301 = vrot.lane.b32.xlu0 %v1300_v41, %s2575_s27  ;;  %v2404_v2 = vld [vmem:[%s4757_s0 + $0x1b] sm:$0x1]   ;;  %v1471_v17 = vsel %vm110_vm5, %v2419_v63, %v1467_v12  ;;  %v2435_v29 = vld [vmem:[%s4757_s0 + $0x15d] sm:$0x20]  }
  0x6b   :  { %v2388_v39 = vld [vmem:[%s4757_s0 + $0x91] sm:$0x4]   ;;  %v1346_v44 = vsel %vm90_vm0, %v2387_v38, %v2386_v35  ;;  %v2405_v3 = vld [vmem:[%s4757_s0 + $0x5a] sm:$0x2]   ;;  %v2436_v30 = vld [vmem:[%s4757_s0 + $0x19c] sm:$0x40]   ;;  %v1532_v38 = vsel %vm102_vm3, %v2434_v26, %v1528_v33 }
  0x6c   :  { %v2389_v40 = vld [vmem:[%s4757_s0 + $0xd0] sm:$0x8]   ;;  %v1350_v48 = vsel %vm94_vm1, %v2388_v39, %v1346_v44  ;;  %v2406_v4 = vld [vmem:[%s4757_s0 + $0x99] sm:$0x4]   ;;  %v1416_v8 = vsel %vm90_vm0, %v2405_v3, %v2404_v2  ;;  %v2422_v31 = vld [vmem:[%s4757_s0 + $0x2] sm:$0x1]  }
  0x6d   :  { %v2402_v43 = vld [vmem:[%s4757_s0 + $0x1ec] sm:$0x80]   ;;  %v1354_v53 = vsel %vm98_vm2, %v2389_v40, %v1350_v48  ;;  %v2420_v7 = vld [vmem:[%s4757_s0 + $0x1f4] sm:$0x80]   ;;  %v1420_v13 = vsel %vm94_vm1, %v2406_v4, %v1416_v8  ;;  %v2423_v34 = vld [vmem:[%s4757_s0 + $0x41] sm:$0x2]  }
  0x6e   :  { %v2390_v45 = vld [vmem:[%s4757_s0 + $0x10f] sm:$0x10]   ;;  %v1405_v58 = vsel %vm114_vm6, %v2402_v43, %v1401_v52  ;;  %v2407_v9 = vld [vmem:[%s4757_s0 + $0xd8] sm:$0x8]   ;;  %v1475_v22 = vsel %vm114_vm6, %v2420_v7, %v1471_v17  ;;  %v2424_v35 = vld [vmem:[%s4757_s0 + $0x80] sm:$0x4]   ;;  %v1486_v40 = vsel %vm90_vm0, %v2423_v34, %v2422_v31  ;;  %v1536_v43 = vsel %vm106_vm4, %v2435_v29, %v1532_v38 }
  0x6f   :  { %v2391_v46 = vld [vmem:[%s4757_s0 + $0x14e] sm:$0x20]   ;;  %v1358_v59 = vsel %vm102_vm3, %v2390_v45, %v1354_v53  ;;  %1406 = vrot.lane.b32.xlu1 %v1405_v58, %s2575_s27  ;;  %v2408_v10 = vld [vmem:[%s4757_s0 + $0x117] sm:$0x10]   ;;  %v1424_v18 = vsel %vm98_vm2, %v2407_v9, %v1420_v13  ;;  %v2425_v36 = vld [vmem:[%s4757_s0 + $0xbf] sm:$0x8]   ;;  %v1490_v44 = vsel %vm94_vm1, %v2424_v35, %v1486_v40  ;;  %v1540_v48 = vsel %vm110_vm5, %v2436_v30, %v1536_v43 }
  0x70   :  { %v2392_v49 = vld [vmem:[%s4757_s0 + $0x18d] sm:$0x40]   ;;  %v1362_v0 = vsel %vm106_vm4, %v2391_v46, %v1358_v59  ;;  %v2409_v14 = vld [vmem:[%s4757_s0 + $0x156] sm:$0x20]   ;;  %v1428_v23 = vsel %vm102_vm3, %v2408_v10, %v1424_v18  ;;  %v2437_v39 = vld [vmem:[%s4757_s0 + $0x1db] sm:$0x80]  }
  0x71   :  { %v2393_v60 = vld [vmem:[%s4757_s0 + $0x1cc] sm:$0x80]   ;;  %v1366_v5 = vsel %vm110_vm5, %v2392_v49, %v1362_v0  ;;  %v2410_v15 = vld [vmem:[%s4757_s0 + $0x195] sm:$0x40]   ;;  %v1432_v27 = vsel %vm106_vm4, %v2409_v14, %v1428_v23  ;;  %v2426_v41 = vld [vmem:[%s4757_s0 + $0xfe] sm:$0x10]   ;;  %v1494_v49 = vsel %vm98_vm2, %v2425_v36, %v1490_v44  ;;  %v1544_v54 = vsel %vm114_vm6, %v2437_v39, %v1540_v48 }
  0x72   :  { %v1370_v11 = vsel %vm114_vm6, %v2393_v60, %v1366_v5  ;;  %v2411_v16 = vld [vmem:[%s4757_s0 + $0x1d4] sm:$0x80]   ;;  %v1436_v32 = vsel %vm110_vm5, %v2410_v15, %v1432_v27  ;;  %v2427_v42 = vld [vmem:[%s4757_s0 + $0x13d] sm:$0x20]   ;;  %v2448_v46 = vld [vmem:[%s4757_s0 + $0x2a] sm:$0x1]   ;;  %v1498_v55 = vsel %vm102_vm3, %v2426_v41, %v1494_v49 }
  0x73   :  { %1371 = vrot.lane.b32.xlu0 %v1370_v11, %s2575_s27  ;;  %1476 = vrot.lane.b32.xlu1 %v1475_v22, %s2575_s27  ;;  %v1440_v37 = vsel %vm114_vm6, %v2411_v16, %v1436_v32  ;;  %v2428_v45 = vld [vmem:[%s4757_s0 + $0x17c] sm:$0x40]   ;;  %v2449_v47 = vld [vmem:[%s4757_s0 + $0x69] sm:$0x2]   ;;  %v1502_v60 = vsel %vm106_vm4, %v2427_v42, %v1498_v55  ;;  %vm676_vm11 = vcmask 786048   ;;  %vm955_vm12 = vcmask 654848  }
  0x74   :  { %v1590_v50 = vsel %vm90_vm0, %v2449_v47, %v2448_v46  ;;  %v2450_v51 = vld [vmem:[%s4757_s0 + $0xa8] sm:$0x4]   ;;  %v2429_v56 = vld [vmem:[%s4757_s0 + $0x1bb] sm:$0x80]   ;;  %v1506_v1 = vsel %vm110_vm5, %v2428_v45, %v1502_v60  ;;  %v2466_v12 = vld [vmem:[%s4757_s0 + $0x32] sm:$0x1]  }
  0x75   :  { %v2451_v52 = vld [vmem:[%s4757_s0 + $0xe7] sm:$0x8]   ;;  %v1594_v57 = vsel %vm94_vm1, %v2450_v51, %v1590_v50  ;;  %v1510_v7 = vsel %vm114_vm6, %v2429_v56, %v1506_v1  ;;  %v2467_v15 = vld [vmem:[%s4757_s0 + $0x71] sm:$0x2]   ;;  %v2484_v44 = vld [vmem:[%s4757_s0 + $0x3a] sm:$0x1]  }
  0x76   :  { %v2452_v53 = vld [vmem:[%s4757_s0 + $0x126] sm:$0x10]   ;;  %v1598_v61 = vsel %vm98_vm2, %v2451_v52, %v1594_v57  ;;  %v2468_v16 = vld [vmem:[%s4757_s0 + $0xb0] sm:$0x4]   ;;  %v1660_v21 = vsel %vm90_vm0, %v2467_v15, %v2466_v12  ;;  %v2485_v45 = vld [vmem:[%s4757_s0 + $0x79] sm:$0x2]  }
  0x77   :  { %1441 = vrot.lane.b32.xlu0 %v1440_v37, %s2575_s27  ;;  %v2453_v58 = vld [vmem:[%s4757_s0 + $0x165] sm:$0x20]   ;;  %1545 = vrot.lane.b32.xlu1 %v1544_v54, %s2576_s16  ;;  %v1602_v2 = vsel %vm102_vm3, %v2452_v53, %v1598_v61  ;;  %v2469_v17 = vld [vmem:[%s4757_s0 + $0xef] sm:$0x8]   ;;  %v1664_v25 = vsel %vm94_vm1, %v2468_v16, %v1660_v21  ;;  %v1730_v50 = vsel %vm90_vm0, %v2485_v45, %v2484_v44  ;;  %vm1234_vm13 = vcmask 523648  }
  0x78   :  { %v2454_v59 = vld [vmem:[%s4757_s0 + $0x1a4] sm:$0x40]   ;;  %v1606_v8 = vsel %vm106_vm4, %v2453_v58, %v1602_v2  ;;  %v2470_v22 = vld [vmem:[%s4757_s0 + $0x12e] sm:$0x10]   ;;  %v1668_v30 = vsel %vm98_vm2, %v2469_v17, %v1664_v25  ;;  %v2486_v46 = vld [vmem:[%s4757_s0 + $0xb8] sm:$0x4]  }
  0x79   :  { %v2439_v62 = vld [vmem:[%s4757_s0 + $0xa] sm:$0x1]   ;;  %v1610_v13 = vsel %vm110_vm5, %v2454_v59, %v1606_v8  ;;  %v2471_v23 = vld [vmem:[%s4757_s0 + $0x16d] sm:$0x20]   ;;  %v1672_v36 = vsel %vm102_vm3, %v2470_v22, %v1668_v30  ;;  %v2487_v51 = vld [vmem:[%s4757_s0 + $0xf7] sm:$0x8]   ;;  %v1734_v56 = vsel %vm94_vm1, %v2486_v46, %v1730_v50 }
  0x7a   :  { %v2440_v63 = vld [vmem:[%s4757_s0 + $0x49] sm:$0x2]   ;;  %v2472_v26 = vld [vmem:[%s4757_s0 + $0x1ac] sm:$0x40]   ;;  %v1676_v42 = vsel %vm106_vm4, %v2471_v23, %v1672_v36  ;;  %v2488_v52 = vld [vmem:[%s4757_s0 + $0x136] sm:$0x10]   ;;  %v1738_v61 = vsel %vm98_vm2, %v2487_v51, %v1734_v56 }
  0x7b   :  { %v2441_v0 = vld [vmem:[%s4757_s0 + $0x88] sm:$0x4]   ;;  %v1555_v4 = vsel %vm90_vm0, %v2440_v63, %v2439_v62  ;;  %1511 = vrot.lane.b32.xlu0 %v1510_v7, %s2576_s16  ;;  %v2457_v27 = vld [vmem:[%s4757_s0 + $0x12] sm:$0x1]   ;;  %v1680_v47 = vsel %vm110_vm5, %v2472_v26, %v1676_v42  ;;  %v2489_v57 = vld [vmem:[%s4757_s0 + $0x175] sm:$0x20]   ;;  %v1742_v2 = vsel %vm102_vm3, %v2488_v52, %v1738_v61 }
  0x7c   :  { %v2455_v3 = vld [vmem:[%s4757_s0 + $0x1e3] sm:$0x80]   ;;  %v1559_v9 = vsel %vm94_vm1, %v2441_v0, %v1555_v4  ;;  %v2458_v28 = vld [vmem:[%s4757_s0 + $0x51] sm:$0x2]   ;;  %v4046_v41 = vpop.permute.xlu1 %185   ;;  %v2490_v58 = vld [vmem:[%s4757_s0 + $0x1b4] sm:$0x40]   ;;  %v1746_v8 = vsel %vm106_vm4, %v2489_v57, %v1742_v2 }
  0x7d   :  { %v2442_v5 = vld [vmem:[%s4757_s0 + $0xc7] sm:$0x8]   ;;  %v1614_v18 = vsel %vm114_vm6, %v2455_v3, %v1610_v13  ;;  %v1625_v31 = vsel %vm90_vm0, %v2458_v28, %v2457_v27  ;;  %v2459_v32 = vld [vmem:[%s4757_s0 + $0x90] sm:$0x4]   ;;  %v4072_v53 = vpop.permute.xlu0 %116   ;;  %v2475_v59 = vld [vmem:[%s4757_s0 + $0x1a] sm:$0x1]   ;;  %v1750_v13 = vsel %vm110_vm5, %v2490_v58, %v1746_v8 }
  0x7e   :  { %v2443_v6 = vld [vmem:[%s4757_s0 + $0x106] sm:$0x10]   ;;  %v1563_v14 = vsel %vm98_vm2, %v2442_v5, %v1559_v9  ;;  %1615 = vrot.lane.b32.xlu1 %v1614_v18, %s2576_s16  ;;  %v2460_v33 = vld [vmem:[%s4757_s0 + $0xcf] sm:$0x8]   ;;  %v1629_v38 = vsel %vm94_vm1, %v2459_v32, %v1625_v31  ;;  %v2476_v62 = vld [vmem:[%s4757_s0 + $0x59] sm:$0x2]  }
  0x7f   :  { %v2444_v10 = vld [vmem:[%s4757_s0 + $0x145] sm:$0x20]   ;;  %v1567_v19 = vsel %vm102_vm3, %v2443_v6, %v1563_v14  ;;  %v2461_v34 = vld [vmem:[%s4757_s0 + $0x10e] sm:$0x10]   ;;  %v1633_v43 = vsel %vm98_vm2, %v2460_v33, %v1629_v38  ;;  %v2477_v63 = vld [vmem:[%s4757_s0 + $0x98] sm:$0x4]   ;;  %v1695_v4 = vsel %vm90_vm0, %v2476_v62, %v2475_v59 }
  0x80   :  { %v2445_v11 = vld [vmem:[%s4757_s0 + $0x184] sm:$0x40]   ;;  %v1571_v24 = vsel %vm106_vm4, %v2444_v10, %v1567_v19  ;;  %v2473_v37 = vld [vmem:[%s4757_s0 + $0x1eb] sm:$0x80]   ;;  %v1637_v48 = vsel %vm102_vm3, %v2461_v34, %v1633_v43  ;;  %v2478_v0 = vld [vmem:[%s4757_s0 + $0xd7] sm:$0x8]   ;;  %v1699_v9 = vsel %vm94_vm1, %v2477_v63, %v1695_v4 }
  0x81   :  { %v2446_v20 = vld [vmem:[%s4757_s0 + $0x1c3] sm:$0x80]   ;;  %v1575_v29 = vsel %vm110_vm5, %v2445_v11, %v1571_v24  ;;  %v2462_v39 = vld [vmem:[%s4757_s0 + $0x14d] sm:$0x20]   ;;  %v1684_v54 = vsel %vm114_vm6, %v2473_v37, %v1680_v47  ;;  %v2491_v3 = vld [vmem:[%s4757_s0 + $0x1f3] sm:$0x80]   ;;  %v1703_v14 = vsel %vm98_vm2, %v2478_v0, %v1699_v9 }
  0x82   :  { %v1579_v35 = vsel %vm114_vm6, %v2446_v20, %v1575_v29  ;;  %v2463_v40 = vld [vmem:[%s4757_s0 + $0x18c] sm:$0x40]   ;;  %v1641_v55 = vsel %vm106_vm4, %v2462_v39, %v1637_v48  ;;  %1685 = vrot.lane.b32.xlu1 %v1684_v54, %s2576_s16  ;;  %v2479_v5 = vld [vmem:[%s4757_s0 + $0x116] sm:$0x10]   ;;  %v2501_v11 = vld [vmem:[%s4757_s0 + $0x21] sm:$0x1]   ;;  %v1754_v19 = vsel %vm114_vm6, %v2491_v3, %v1750_v13 }
  0x83   :  { %1580 = vrot.lane.b32.xlu0 %v1579_v35, %s2576_s16  ;;  %v2464_v49 = vld [vmem:[%s4757_s0 + $0x1cb] sm:$0x80]   ;;  %v1645_v60 = vsel %vm110_vm5, %v2463_v40, %v1641_v55  ;;  %v2480_v6 = vld [vmem:[%s4757_s0 + $0x155] sm:$0x20]   ;;  %v2502_v12 = vld [vmem:[%s4757_s0 + $0x60] sm:$0x2]   ;;  %v1707_v20 = vsel %vm102_vm3, %v2479_v5, %v1703_v14 }
  0x84   :  { %v1649_v1 = vsel %vm114_vm6, %v2464_v49, %v1645_v60  ;;  %v4110_v7 = vpop.permute.xlu1 %220   ;;  %v2481_v10 = vld [vmem:[%s4757_s0 + $0x194] sm:$0x40]   ;;  %v1799_v15 = vsel %vm90_vm0, %v2502_v12, %v2501_v11  ;;  %v2503_v16 = vld [vmem:[%s4757_s0 + $0x9f] sm:$0x4]   ;;  %v1711_v26 = vsel %vm106_vm4, %v2480_v6, %v1707_v20  ;;  %v2519_v44 = vld [vmem:[%s4757_s0 + $0x29] sm:$0x1]  }
  0x85   :  { %v2504_v17 = vld [vmem:[%s4757_s0 + $0xde] sm:$0x8]   ;;  %v2482_v21 = vld [vmem:[%s4757_s0 + $0x1d3] sm:$0x80]   ;;  %v1803_v22 = vsel %vm94_vm1, %v2503_v16, %v1799_v15  ;;  %v4148_v25 = vpop.permute.xlu0 %150   ;;  %v1715_v31 = vsel %vm110_vm5, %v2481_v10, %v1711_v26  ;;  %v2520_v47 = vld [vmem:[%s4757_s0 + $0x68] sm:$0x2]  }
  0x86   :  { %v2505_v18 = vld [vmem:[%s4757_s0 + $0x11d] sm:$0x10]   ;;  %1755 = vrot.lane.b32.xlu1 %v1754_v19, %s2576_s16  ;;  %v1807_v27 = vsel %vm98_vm2, %v2504_v17, %v1803_v22  ;;  %v1719_v38 = vsel %vm114_vm6, %v2482_v21, %v1715_v31  ;;  %v2521_v48 = vld [vmem:[%s4757_s0 + $0xa7] sm:$0x4]   ;;  %v1869_v54 = vsel %vm90_vm0, %v2520_v47, %v2519_v44  ;;  %v2537_v15 = vld [vmem:[%s4757_s0 + $0x31] sm:$0x1]  }
  0x87   :  { %1650 = vrot.lane.b32.xlu0 %v1649_v1, %s2576_s16  ;;  %v2506_v23 = vld [vmem:[%s4757_s0 + $0x15c] sm:$0x20]   ;;  %v1811_v32 = vsel %vm102_vm3, %v2505_v18, %v1807_v27  ;;  %v2522_v49 = vld [vmem:[%s4757_s0 + $0xe6] sm:$0x8]   ;;  %v1873_v59 = vsel %vm94_vm1, %v2521_v48, %v1869_v54  ;;  %v2538_v16 = vld [vmem:[%s4757_s0 + $0x70] sm:$0x2]  }
  0x88   :  { %v2507_v24 = vld [vmem:[%s4757_s0 + $0x19b] sm:$0x40]   ;;  %v4174_v37 = vpop.permute.xlu1 %290   ;;  %v1815_v39 = vsel %vm106_vm4, %v2506_v23, %v1811_v32  ;;  %v2523_v55 = vld [vmem:[%s4757_s0 + $0x125] sm:$0x10]   ;;  %v1877_v0 = vsel %vm98_vm2, %v2522_v49, %v1873_v59  ;;  %v2539_v17 = vld [vmem:[%s4757_s0 + $0xaf] sm:$0x4]   ;;  %v1939_v21 = vsel %vm90_vm0, %v2538_v16, %v2537_v15 }
  0x89   :  { %v2493_v28 = vld [vmem:[%s4757_s0 + $0x1] sm:$0x1]   ;;  %v1819_v45 = vsel %vm110_vm5, %v2507_v24, %v1815_v39  ;;  %v2524_v56 = vld [vmem:[%s4757_s0 + $0x164] sm:$0x20]   ;;  %v4212_v57 = vpop.permute.xlu0 %255   ;;  %v1881_v6 = vsel %vm102_vm3, %v2523_v55, %v1877_v0  ;;  %v2540_v22 = vld [vmem:[%s4757_s0 + $0xee] sm:$0x8]  }
  0x8a   :  { %v2494_v29 = vld [vmem:[%s4757_s0 + $0x40] sm:$0x2]   ;;  %v2525_v60 = vld [vmem:[%s4757_s0 + $0x1a3] sm:$0x40]   ;;  %v1885_v13 = vsel %vm106_vm4, %v2524_v56, %v1881_v6  ;;  %v2541_v23 = vld [vmem:[%s4757_s0 + $0x12d] sm:$0x10]  }
  0x8b   :  { %v2495_v30 = vld [vmem:[%s4757_s0 + $0x7f] sm:$0x4]   ;;  %v1765_v34 = vsel %vm90_vm0, %v2494_v29, %v2493_v28  ;;  %1720 = vrot.lane.b32.xlu0 %v1719_v38, %s2576_s16  ;;  %v2510_v61 = vld [vmem:[%s4757_s0 + $0x9] sm:$0x1]   ;;  %v1889_v18 = vsel %vm110_vm5, %v2525_v60, %v1885_v13  ;;  %v1943_v28 = vsel %vm94_vm1, %v2539_v17, %v1939_v21  ;;  %v2542_v29 = vld [vmem:[%s4757_s0 + $0x16c] sm:$0x20]  }
  0x8c   :  { %v2508_v33 = vld [vmem:[%s4757_s0 + $0x1da] sm:$0x80]   ;;  %v1769_v40 = vsel %vm94_vm1, %v2495_v30, %v1765_v34  ;;  %v2511_v62 = vld [vmem:[%s4757_s0 + $0x48] sm:$0x2]   ;;  %v2543_v30 = vld [vmem:[%s4757_s0 + $0x1ab] sm:$0x40]  }
  0x8d   :  { %v2496_v35 = vld [vmem:[%s4757_s0 + $0xbe] sm:$0x8]   ;;  %v1823_v50 = vsel %vm114_vm6, %v2508_v33, %v1819_v45  ;;  %v1834_v1 = vsel %vm90_vm0, %v2511_v62, %v2510_v61  ;;  %v2512_v2 = vld [vmem:[%s4757_s0 + $0x87] sm:$0x4]   ;;  %v2528_v31 = vld [vmem:[%s4757_s0 + $0x11] sm:$0x1]   ;;  %v1947_v33 = vsel %vm98_vm2, %v2540_v22, %v1943_v28 }
  0x8e   :  { %v2497_v36 = vld [vmem:[%s4757_s0 + $0xfd] sm:$0x10]   ;;  %v1773_v46 = vsel %vm98_vm2, %v2496_v35, %v1769_v40  ;;  %1824 = vrot.lane.b32.xlu1 %v1823_v50, %s2577_s30  ;;  %v2513_v3 = vld [vmem:[%s4757_s0 + $0xc6] sm:$0x8]   ;;  %v1838_v9 = vsel %vm94_vm1, %v2512_v2, %v1834_v1  ;;  %v2529_v34 = vld [vmem:[%s4757_s0 + $0x50] sm:$0x2]   ;;  %v1951_v39 = vsel %vm102_vm3, %v2541_v23, %v1947_v33 }
  0x8f   :  { %v2498_v42 = vld [vmem:[%s4757_s0 + $0x13c] sm:$0x20]   ;;  %v1777_v51 = vsel %vm102_vm3, %v2497_v36, %v1773_v46  ;;  %v2514_v4 = vld [vmem:[%s4757_s0 + $0x105] sm:$0x10]   ;;  %v1842_v14 = vsel %vm98_vm2, %v2513_v3, %v1838_v9  ;;  %v2530_v35 = vld [vmem:[%s4757_s0 + $0x8f] sm:$0x4]   ;;  %v1955_v46 = vsel %vm106_vm4, %v2542_v29, %v1951_v39 }
  0x90   :  { %v2499_v43 = vld [vmem:[%s4757_s0 + $0x17b] sm:$0x40]   ;;  %v1781_v58 = vsel %vm106_vm4, %v2498_v42, %v1777_v51  ;;  %v2526_v8 = vld [vmem:[%s4757_s0 + $0x1e2] sm:$0x80]   ;;  %v1846_v19 = vsel %vm102_vm3, %v2514_v4, %v1842_v14  ;;  %v2531_v36 = vld [vmem:[%s4757_s0 + $0xce] sm:$0x8]   ;;  %v1904_v42 = vsel %vm90_vm0, %v2529_v34, %v2528_v31  ;;  %v1959_v51 = vsel %vm110_vm5, %v2543_v30, %v1955_v46 }
  0x91   :  { %v2500_v52 = vld [vmem:[%s4757_s0 + $0x1ba] sm:$0x80]   ;;  %v1785_v63 = vsel %vm110_vm5, %v2499_v43, %v1781_v58  ;;  %v2515_v10 = vld [vmem:[%s4757_s0 + $0x144] sm:$0x20]   ;;  %v4250_v12 = vpop.permute.xlu1 %360   ;;  %v1893_v26 = vsel %vm114_vm6, %v2526_v8, %v1889_v18  ;;  %v2544_v40 = vld [vmem:[%s4757_s0 + $0x1ea] sm:$0x80]   ;;  %v1908_v47 = vsel %vm94_vm1, %v2530_v35, %v1904_v42 }
  0x92   :  { %v1789_v5 = vsel %vm114_vm6, %v2500_v52, %v1785_v63  ;;  %v2516_v11 = vld [vmem:[%s4757_s0 + $0x183] sm:$0x40]   ;;  %v1850_v27 = vsel %vm106_vm4, %v2515_v10, %v1846_v19  ;;  %1894 = vrot.lane.b32.xlu1 %v1893_v26, %s2577_s30  ;;  %v2532_v43 = vld [vmem:[%s4757_s0 + $0x10d] sm:$0x10]   ;;  %v2555_v49 = vld [vmem:[%s4757_s0 + $0x39] sm:$0x1]   ;;  %v1912_v52 = vsel %vm98_vm2, %v2531_v36, %v1908_v47  ;;  %v1963_v59 = vsel %vm114_vm6, %v2544_v40, %v1959_v51 }
  0x93   :  { %1790 = vrot.lane.b32.xlu0 %v1789_v5, %s2577_s30  ;;  %v2517_v20 = vld [vmem:[%s4757_s0 + $0x1c2] sm:$0x80]   ;;  %v1854_v32 = vsel %vm110_vm5, %v2516_v11, %v1850_v27  ;;  %v2533_v44 = vld [vmem:[%s4757_s0 + $0x14c] sm:$0x20]   ;;  %v2556_v50 = vld [vmem:[%s4757_s0 + $0x78] sm:$0x2]   ;;  %v1916_v60 = vsel %vm102_vm3, %v2532_v43, %v1912_v52 }
  0x94   :  { %v4276_v24 = vpop.permute.xlu0 %325   ;;  %v1858_v38 = vsel %vm114_vm6, %v2517_v20, %v1854_v32  ;;  %v2534_v48 = vld [vmem:[%s4757_s0 + $0x18b] sm:$0x40]   ;;  %v2009_v54 = vsel %vm90_vm0, %v2556_v50, %v2555_v49  ;;  %v2557_v55 = vld [vmem:[%s4757_s0 + $0xb7] sm:$0x4]   ;;  %v1920_v2 = vsel %vm106_vm4, %v2533_v44, %v1916_v60  ;;  %vm1513_vm14 = vcmask 392448  }
  0x95   :  { %v4314_v45 = vpop.permute.xlu1 %429   ;;  %v2558_v56 = vld [vmem:[%s4757_s0 + $0xf6] sm:$0x8]   ;;  %v2535_v61 = vld [vmem:[%s4757_s0 + $0x1ca] sm:$0x80]   ;;  %v2013_v62 = vsel %vm94_vm1, %v2557_v55, %v2009_v54  ;;  %v1924_v8 = vsel %vm110_vm5, %v2534_v48, %v1920_v2  ;;  %vm1792_vm15 = vcmask 261248  }
  0x96   :  { %v2559_v58 = vld [vmem:[%s4757_s0 + $0x135] sm:$0x10]   ;;  %1964 = vrot.lane.b32.xlu1 %v1963_v59, %s2577_s30  ;;  %v2017_v3 = vsel %vm98_vm2, %v2558_v56, %v2013_v62  ;;  %v1928_v16 = vsel %vm114_vm6, %v2535_v61, %v1924_v8  ;;  %v2_v23 = vld [vmem:[%s4757_s0] ss:$8 sm:$0xf]  }
  0x97   :  { %1859 = vrot.lane.b32.xlu0 %v1858_v38, %s2577_s30  ;;  %v2560_v63 = vld [vmem:[%s4757_s0 + $0x174] sm:$0x20]   ;;  %v2021_v9 = vsel %vm102_vm3, %v2559_v58, %v2017_v3  ;;  %v3_v29 = vld [vmem:[%s4757_s0] ss:$8 sm:$0xf0]  }
  0x98   :  { %v2561_v0 = vld [vmem:[%s4757_s0 + $0x1b3] sm:$0x40]   ;;  %v4352_v1 = vpop.permute.xlu0 %395   ;;  %v2025_v17 = vsel %vm106_vm4, %v2560_v63, %v2021_v9  ;;  %v5_v32 = vsel %vm4_vm7, %v3_v29, %v2_v23  ;;  %v2039_v33 = vld [vmem:[%s4757_s0 + $0x40] ss:$8 sm:$0xf]  }
  0x99   :  { %v2546_v4 = vld [vmem:[%s4757_s0 + $0x19] sm:$0x1]   ;;  %v4378_v15 = vpop.permute.xlu1 %499   ;;  %v2029_v20 = vsel %vm110_vm5, %v2561_v0, %v2025_v17  ;;  %v2040_v34 = vld [vmem:[%s4757_s0 + $0x40] ss:$8 sm:$0xf0]  }
  0x9a   :  { %v2547_v5 = vld [vmem:[%s4757_s0 + $0x58] sm:$0x2]   ;;  %8 = vst.msk [vmem:[%s4758_s1] ss:$8 sm:$0xf0] %vm6_vm8, %v5_v32   ;;  %v14_v36 = vsel %vm4_vm7, %v2040_v34, %v2039_v33 }
  0x9b   :  { %v2548_v6 = vld [vmem:[%s4757_s0 + $0x97] sm:$0x4]   ;;  %v1974_v11 = vsel %vm90_vm0, %v2547_v5, %v2546_v4  ;;  %1929 = vrot.lane.b32.xlu0 %v1928_v16, %s2577_s30  ;;  %v2043_v38 = vld [vmem:[%s4757_s0 + $0x80] ss:$8 sm:$0xf]  }
  0x9c   :  { %v2562_v10 = vld [vmem:[%s4757_s0 + $0x1f2] sm:$0x80]   ;;  %v1978_v18 = vsel %vm94_vm1, %v2548_v6, %v1974_v11  ;;  %v465_v30 = vpop.permute.xlu0 %464   ;;  %v2044_v39 = vld [vmem:[%s4757_s0 + $0x80] ss:$8 sm:$0xf0]  }
  0x9d   :  { %v2549_v13 = vld [vmem:[%s4757_s0 + $0xd6] sm:$0x8]   ;;  %v2033_v26 = vsel %vm114_vm6, %v2562_v10, %v2029_v20  ;;  %7 = vst.msk [vmem:[%s4758_s1] ss:$8 sm:$0xf] %vm6_vm8, %v5_v32   ;;  %v25_v42 = vsel %vm4_vm7, %v2044_v39, %v2043_v38 }
  0x9e   :  { %v2550_v14 = vld [vmem:[%s4757_s0 + $0x115] sm:$0x10]   ;;  %v1982_v21 = vsel %vm98_vm2, %v2549_v13, %v1978_v18  ;;  %2034 = vrot.lane.b32.xlu1 %v2033_v26, %s2577_s30  ;;  %2042 = vst.msk [vmem:[%s4758_s1 + $0x1] ss:$8 sm:$0xf0] %vm6_vm8, %v14_v36  }
  0x9f   :  { %v2551_v19 = vld [vmem:[%s4757_s0 + $0x154] sm:$0x20]   ;;  %v1986_v27 = vsel %vm102_vm3, %v2550_v14, %v1982_v21  ;;  %v2047_v43 = vld [vmem:[%s4757_s0 + $0xc0] ss:$8 sm:$0xf]  }
  0xa0   :  { %v2552_v22 = vld [vmem:[%s4757_s0 + $0x193] sm:$0x40]   ;;  %v1990_v31 = vsel %vm106_vm4, %v2551_v19, %v1986_v27  ;;  %v2048_v44 = vld [vmem:[%s4757_s0 + $0xc0] ss:$8 sm:$0xf0]  }
  0xa1   :  { %v2553_v28 = vld [vmem:[%s4757_s0 + $0x1d2] sm:$0x80]   ;;  %v1994_v35 = vsel %vm110_vm5, %v2552_v22, %v1990_v31  ;;  %2041 = vst.msk [vmem:[%s4758_s1 + $0x1] ss:$8 sm:$0xf] %vm6_vm8, %v14_v36   ;;  %v570_v46 = vpop.permute.xlu1 %569   ;;  %v36_v47 = vsel %vm4_vm7, %v2048_v44, %v2047_v43 }
  0xa2   :  { %v1998_v40 = vsel %vm114_vm6, %v2553_v28, %v1994_v35  ;;  %2046 = vst.msk [vmem:[%s4758_s1 + $0x2] ss:$8 sm:$0xf0] %vm6_vm8, %v25_v42   ;;  %v2051_v48 = vld [vmem:[%s4757_s0 + $0x100] ss:$8 sm:$0xf]  }
  0xa3   :  { %1999 = vrot.lane.b32.xlu0 %v1998_v40, %s2577_s30  ;;  %v2052_v49 = vld [vmem:[%s4757_s0 + $0x100] ss:$8 sm:$0xf0]   ;;  %2045 = vst.msk [vmem:[%s4758_s1 + $0x2] ss:$8 sm:$0xf] %vm6_vm8, %v25_v42  }
  0xa4   :  { %2050 = vst.msk [vmem:[%s4758_s1 + $0x3] ss:$8 sm:$0xf0] %vm6_vm8, %v36_v47   ;;  %v47_v50 = vsel %vm4_vm7, %v2052_v49, %v2051_v48  ;;  %v2055_v51 = vld [vmem:[%s4757_s0 + $0x140] ss:$8 sm:$0xf]   ;;  %v535_v54 = vpop.permute.xlu0 %534  }
  0xa5   :  { %v2056_v52 = vld [vmem:[%s4757_s0 + $0x140] ss:$8 sm:$0xf0]   ;;  %2049 = vst.msk [vmem:[%s4758_s1 + $0x3] ss:$8 sm:$0xf] %vm6_vm8, %v36_v47   ;;  %v640_v63 = vpop.permute.xlu1 %639  }
  0xa6   :  { %2054 = vst.msk [vmem:[%s4758_s1 + $0x4] ss:$8 sm:$0xf0] %vm6_vm8, %v47_v50   ;;  %v58_v55 = vsel %vm4_vm7, %v2056_v52, %v2055_v51  ;;  %v2059_v56 = vld [vmem:[%s4757_s0 + $0x180] ss:$8 sm:$0xf]  }
  0xa7   :  { %v2060_v58 = vld [vmem:[%s4757_s0 + $0x180] ss:$8 sm:$0xf0]   ;;  %2053 = vst.msk [vmem:[%s4758_s1 + $0x4] ss:$8 sm:$0xf] %vm6_vm8, %v47_v50  }
  0xa8   :  { %2058 = vst.msk [vmem:[%s4758_s1 + $0x5] ss:$8 sm:$0xf0] %vm6_vm8, %v58_v55   ;;  %v69_v59 = vsel %vm4_vm7, %v2060_v58, %v2059_v56  ;;  %v2063_v60 = vld [vmem:[%s4757_s0 + $0x1c0] ss:$8 sm:$0xf]  }
  0xa9   :  { %v2064_v61 = vld [vmem:[%s4757_s0 + $0x1c0] ss:$8 sm:$0xf0]   ;;  %2057 = vst.msk [vmem:[%s4758_s1 + $0x5] ss:$8 sm:$0xf] %vm6_vm8, %v58_v55  }
  0xaa   :  { %2062 = vst.msk [vmem:[%s4758_s1 + $0x6] ss:$8 sm:$0xf0] %vm6_vm8, %v69_v59   ;;  %v80_v62 = vsel %vm4_vm7, %v2064_v61, %v2063_v60  ;;  %2061 = vst.msk [vmem:[%s4758_s1 + $0x6] ss:$8 sm:$0xf] %vm6_vm8, %v69_v59  }
  0xab   :  { %2066 = vst.msk [vmem:[%s4758_s1 + $0x7] ss:$8 sm:$0xf0] %vm6_vm8, %v80_v62   ;;  %2065 = vst.msk [vmem:[%s4758_s1 + $0x7] ss:$8 sm:$0xf] %vm6_vm8, %v80_v62  }
  0xac   :  { %2083 = vst.msk [vmem:[%s4758_s1 + $0x20] sm:$0xff] %vm118_vm9, %v4148_v25   ;;  %2101 = vst.msk [vmem:[%s4758_s1 + $0x28] sm:$0xff] %vm118_vm9, %v4110_v7  }
  0xad   :  { %2119 = vst.msk [vmem:[%s4758_s1 + $0x30] sm:$0xff] %vm118_vm9, %v4174_v37   ;;  %2137 = vst.msk [vmem:[%s4758_s1 + $0x38] sm:$0xff] %vm118_vm9, %v4250_v12  }
  0xae   :  { %119 = vst.msk [vmem:[%s4758_s1] sm:$0xff] %vm118_vm9, %v4072_v53   ;;  %2092 = vst.msk [vmem:[%s4758_s1 + $0x8] sm:$0xff] %vm118_vm9, %v4046_v41   ;;  %v605_v41 = vpop.permute.xlu0 %604   ;;  %v709_v53 = vpop.permute.xlu1 %708  }
  0xaf   :  { %2110 = vst.msk [vmem:[%s4758_s1 + $0x10] sm:$0xff] %vm118_vm9, %v4212_v57   ;;  %2128 = vst.msk [vmem:[%s4758_s1 + $0x18] sm:$0xff] %vm118_vm9, %v4276_v24  }
  0xb0   :  { %2154 = vst.msk [vmem:[%s4758_s1 + $0x20] sm:$0xff] %vm397_vm10, %v4314_v45   ;;  %398 = vst.msk [vmem:[%s4758_s1] sm:$0xff] %vm397_vm10, %v4352_v1  }
  0xb1   :  { %2172 = vst.msk [vmem:[%s4758_s1 + $0x28] sm:$0xff] %vm397_vm10, %v4378_v15   ;;  %2163 = vst.msk [vmem:[%s4758_s1 + $0x8] sm:$0xff] %vm397_vm10, %v465_v30  }
  0xb2   :  { %2190 = vst.msk [vmem:[%s4758_s1 + $0x30] sm:$0xff] %vm397_vm10, %v570_v46   ;;  %2181 = vst.msk [vmem:[%s4758_s1 + $0x10] sm:$0xff] %vm397_vm10, %v535_v54   ;;  %v675_v7 = vpop.permute.xlu0 %674   ;;  %v779_v25 = vpop.permute.xlu1 %778  }
  0xb3   :  { %2208 = vst.msk [vmem:[%s4758_s1 + $0x38] sm:$0xff] %vm397_vm10, %v640_v63   ;;  %2199 = vst.msk [vmem:[%s4758_s1 + $0x18] sm:$0xff] %vm397_vm10, %v605_v41  }
  0xb4   :  { %2225 = vst.msk [vmem:[%s4758_s1 + $0x20] sm:$0xff] %vm676_vm11, %v709_v53   ;;  %677 = vst.msk [vmem:[%s4758_s1] sm:$0xff] %vm676_vm11, %v675_v7  }
  0xb5   :  { %2243 = vst.msk [vmem:[%s4758_s1 + $0x28] sm:$0xff] %vm676_vm11, %v779_v25  }
  0xb6   :  { %v744_v37 = vpop.permute.xlu0 %743   ;;  %v849_v57 = vpop.permute.xlu1 %848  }
  0xb7   :  { %2234 = vst.msk [vmem:[%s4758_s1 + $0x8] sm:$0xff] %vm676_vm11, %v744_v37   ;;  %2261 = vst.msk [vmem:[%s4758_s1 + $0x30] sm:$0xff] %vm676_vm11, %v849_v57  }
  0xba   :  { %v814_v12 = vpop.permute.xlu0 %813   ;;  %v919_v24 = vpop.permute.xlu1 %918  }
  0xbb   :  { %2252 = vst.msk [vmem:[%s4758_s1 + $0x10] sm:$0xff] %vm676_vm11, %v814_v12   ;;  %2279 = vst.msk [vmem:[%s4758_s1 + $0x38] sm:$0xff] %vm676_vm11, %v919_v24  }
  0xbe   :  { %v884_v45 = vpop.permute.xlu0 %883  }
  0xbf   :  { %2270 = vst.msk [vmem:[%s4758_s1 + $0x18] sm:$0xff] %vm676_vm11, %v884_v45  }
  0xc0   :  { %v988_v0 = vpop.permute.xlu1 %987  }
  0xc1   :  { %2296 = vst.msk [vmem:[%s4758_s1 + $0x20] sm:$0xff] %vm955_vm12, %v988_v0  }
  0xc4   :  { %v954_v1 = vpop.permute.xlu0 %953   ;;  %v1058_v2 = vpop.permute.xlu1 %1057  }
  0xc5   :  { %956 = vst.msk [vmem:[%s4758_s1] sm:$0xff] %vm955_vm12, %v954_v1   ;;  %2314 = vst.msk [vmem:[%s4758_s1 + $0x28] sm:$0xff] %vm955_vm12, %v1058_v2  }
  0xc8   :  { %v1023_v3 = vpop.permute.xlu0 %1022   ;;  %v1128_v4 = vpop.permute.xlu1 %1127  }
  0xc9   :  { %2305 = vst.msk [vmem:[%s4758_s1 + $0x8] sm:$0xff] %vm955_vm12, %v1023_v3   ;;  %2332 = vst.msk [vmem:[%s4758_s1 + $0x30] sm:$0xff] %vm955_vm12, %v1128_v4  }
  0xcc   :  { %v1093_v5 = vpop.permute.xlu0 %1092  }
  0xcd   :  { %2323 = vst.msk [vmem:[%s4758_s1 + $0x10] sm:$0xff] %vm955_vm12, %v1093_v5  }
  0xd0   :  { %v1198_v6 = vpop.permute.xlu1 %1197  }
  0xd1   :  { %2350 = vst.msk [vmem:[%s4758_s1 + $0x38] sm:$0xff] %vm955_vm12, %v1198_v6  }
  0xd4   :  { %v1163_v8 = vpop.permute.xlu0 %1162   ;;  %v1267_v9 = vpop.permute.xlu1 %1266  }
  0xd5   :  { %2341 = vst.msk [vmem:[%s4758_s1 + $0x18] sm:$0xff] %vm955_vm12, %v1163_v8  }
  0xd6   :  { %2367 = vst.msk [vmem:[%s4758_s1 + $0x20] sm:$0xff] %vm1234_vm13, %v1267_v9  }
  0xd8   :  { %v1233_v10 = vpop.permute.xlu0 %1232   ;;  %v1337_v11 = vpop.permute.xlu1 %1336  }
  0xd9   :  { %1235 = vst.msk [vmem:[%s4758_s1] sm:$0xff] %vm1234_vm13, %v1233_v10   ;;  %2385 = vst.msk [vmem:[%s4758_s1 + $0x28] sm:$0xff] %vm1234_vm13, %v1337_v11  }
  0xdc   :  { %v1302_v13 = vpop.permute.xlu0 %1301  }
  0xdd   :  { %2376 = vst.msk [vmem:[%s4758_s1 + $0x8] sm:$0xff] %vm1234_vm13, %v1302_v13  }
  0xe1   :  { %v1407_v14 = vpop.permute.xlu1 %1406  }
  0xe2   :  { %2403 = vst.msk [vmem:[%s4758_s1 + $0x30] sm:$0xff] %vm1234_vm13, %v1407_v14  }
  0xe5   :  { %v1372_v15 = vpop.permute.xlu0 %1371   ;;  %v1477_v16 = vpop.permute.xlu1 %1476  }
  0xe6   :  { %2394 = vst.msk [vmem:[%s4758_s1 + $0x10] sm:$0xff] %vm1234_vm13, %v1372_v15   ;;  %2421 = vst.msk [vmem:[%s4758_s1 + $0x38] sm:$0xff] %vm1234_vm13, %v1477_v16  }
  0xe9   :  { %v1442_v17 = vpop.permute.xlu0 %1441   ;;  %v1546_v18 = vpop.permute.xlu1 %1545  }
  0xea   :  { %2412 = vst.msk [vmem:[%s4758_s1 + $0x18] sm:$0xff] %vm1234_vm13, %v1442_v17  }
  0xeb   :  { %2438 = vst.msk [vmem:[%s4758_s1 + $0x20] sm:$0xff] %vm1513_vm14, %v1546_v18  }
  0xed   :  { %v1512_v19 = vpop.permute.xlu0 %1511  }
  0xee   :  { %1514 = vst.msk [vmem:[%s4758_s1] sm:$0xff] %vm1513_vm14, %v1512_v19  }
  0xf0   :  { %v1616_v20 = vpop.permute.xlu1 %1615  }
  0xf1   :  { %2456 = vst.msk [vmem:[%s4758_s1 + $0x28] sm:$0xff] %vm1513_vm14, %v1616_v20  }
  0xf4   :  { %v1686_v22 = vpop.permute.xlu1 %1685  }
  0xf5   :  { %v1581_v21 = vpop.permute.xlu0 %1580   ;;  %2474 = vst.msk [vmem:[%s4758_s1 + $0x30] sm:$0xff] %vm1513_vm14, %v1686_v22  }
  0xf6   :  { %2447 = vst.msk [vmem:[%s4758_s1 + $0x8] sm:$0xff] %vm1513_vm14, %v1581_v21  }
  0xf8   :  { %v1756_v26 = vpop.permute.xlu1 %1755  }
  0xf9   :  { %v1651_v23 = vpop.permute.xlu0 %1650   ;;  %2492 = vst.msk [vmem:[%s4758_s1 + $0x38] sm:$0xff] %vm1513_vm14, %v1756_v26  }
  0xfa   :  { %2465 = vst.msk [vmem:[%s4758_s1 + $0x10] sm:$0xff] %vm1513_vm14, %v1651_v23  }
  0xfd   :  { %v1721_v27 = vpop.permute.xlu0 %1720  }
  0xfe   :  { %2483 = vst.msk [vmem:[%s4758_s1 + $0x18] sm:$0xff] %vm1513_vm14, %v1721_v27  }
 0x100   :  { %v1825_v28 = vpop.permute.xlu1 %1824  }
 0x101   :  { %2509 = vst.msk [vmem:[%s4758_s1 + $0x20] sm:$0xff] %vm1792_vm15, %v1825_v28  }
 0x104   :  { %v1895_v30 = vpop.permute.xlu1 %1894  }
 0x105   :  { %v1791_v29 = vpop.permute.xlu0 %1790   ;;  %2527 = vst.msk [vmem:[%s4758_s1 + $0x28] sm:$0xff] %vm1792_vm15, %v1895_v30  }
 0x106   :  { %1793 = vst.msk [vmem:[%s4758_s1] sm:$0xff] %vm1792_vm15, %v1791_v29  }
 0x108   :  { %v1965_v32 = vpop.permute.xlu1 %1964  }
 0x109   :  { %v1860_v31 = vpop.permute.xlu0 %1859   ;;  %2545 = vst.msk [vmem:[%s4758_s1 + $0x30] sm:$0xff] %vm1792_vm15, %v1965_v32  }
 0x10a   :  { %2518 = vst.msk [vmem:[%s4758_s1 + $0x8] sm:$0xff] %vm1792_vm15, %v1860_v31  }
 0x10d   :  { %v1930_v33 = vpop.permute.xlu0 %1929  }
 0x10e   :  { %2536 = vst.msk [vmem:[%s4758_s1 + $0x10] sm:$0xff] %vm1792_vm15, %v1930_v33  }
 0x110   :  { %v2035_v34 = vpop.permute.xlu1 %2034  }
 0x111   :  { %2563 = vst.msk [vmem:[%s4758_s1 + $0x38] sm:$0xff] %vm1792_vm15, %v2035_v34  }
 0x115   :  { %v2000_v35 = vpop.permute.xlu0 %1999  }
 0x116   :  { %2554 = vst.msk [vmem:[%s4758_s1 + $0x18] sm:$0xff] %vm1792_vm15, %v2000_v35  }

// kernel: lstm_model_forward.1
= control target key start
LH: loop header
LB: loop body
LE: loop exit
PB: predicated region body
PF: predicated region fallthrough
CT: control target
= control target key end

     0   :  { %vm3148_vm0 = vmmov 0   ;;  %s3149_s22 = smov 64   ;;  %vm661_vm1 = vcmask 253952   ;;  %vm558_vm2 = vcmask 261120   ;;  %vm770_vm3 = vcmask 254977   ;;  %s4101_s1 = inlined_call_operand.vmem [shape: f32[1024,128], index: 1, kind: input, shape index: {}]   ;;  %s4102_s0 = inlined_call_operand.vmem [shape: f32[8,1024], index: 0, kind: input, shape index: {}]   ;;  %s4103_s3 = inlined_call_operand.vmem [shape: f32[128,128], index: 3, kind: input, shape index: {}]   ;;  %s4104_s4 = inlined_call_operand.vmem [shape: f32[32,128], index: 4, kind: input, shape index: {}]   ;;  %s4105_s2 = inlined_call_operand.vmem [shape: f32[1,128], index: 2, kind: input, shape index: {}]   ;;  %s4106_s5 = inlined_call_operand.vmem [shape: f32[1,128], index: 5, kind: input, shape index: {}]   ;;  %s4107_s6 = inlined_call_operand.vmem [shape: f32[32,128], index: 6, kind: input, shape index: {}]   ;;  %s4108_s7 = inlined_call_operand.vmem [shape: f32[32,128], index: 7, kind: input, shape index: {}]   ;;  %s4109_s8 = inlined_call_operand.vmem [shape: f32[1,128], index: 8, kind: input, shape index: {}]   ;;  %s4110_s9 = inlined_call_operand.vmem [shape: f32[32,7], index: 9, kind: input, shape index: {}]   ;;  %s4111_s10 = inlined_call_operand.vmem [shape: f32[1,7], index: 10, kind: input, shape index: {}]   ;;  %s4112_s11 = inlined_call_operand.vmem [shape: f32[2,8,7], index: 11, kind: output, shape index: {}]  }
   0x1   :  { %v77_v0 = vld [vmem:[%s4101_s1 + $0xf8] sm:$0xff]  ;;  %v76_v4 = vld [vmem:[%s4101_s1 + $0xf0] sm:$0xff]  ;;  %v75_v8 = vld [vmem:[%s4101_s1 + $0xe8] sm:$0xff]  ;;  %vm994_vm4 = vcmask 257027   ;;  %vm1218_vm5 = vcmask 259077   ;;  %vm882_vm6 = vcmask 256002  }
   0x2   :  { %v109_v1 = vld [vmem:[%s4101_s1 + $0x1f8] sm:$0xff]  ;;  %2535 = vmatprep.subr.mxu0 %v77_v0  ;;  %v108_v5 = vld [vmem:[%s4101_s1 + $0x1f0] sm:$0xff]  ;;  %v107_v9 = vld [vmem:[%s4101_s1 + $0x1e8] sm:$0xff]  ;;  %vm1106_vm7 = vcmask 258052   ;;  %vm1330_vm8 = vcmask 260102   ;;  %vm1442_vm9 = vcmask 261127  }
   0x3   :  { %v61_v2 = vld [vmem:[%s4101_s1 + $0x78] sm:$0xff]  ;;  %2570 = vmatprep.subr.mxu1 %v109_v1  ;;  %v60_v6 = vld [vmem:[%s4101_s1 + $0x70] sm:$0xff]  ;;  %v59_v10 = vld [vmem:[%s4101_s1 + $0x68] sm:$0xff]  ;;  %vm2492_vm10 = vcmask 56320  }
   0x4   :  { %v93_v3 = vld [vmem:[%s4101_s1 + $0x178] sm:$0xff]  ;;  %2536 = vmatpush3.msra.mxu0 %v61_v2  ;;  %v92_v7 = vld [vmem:[%s4101_s1 + $0x170] sm:$0xff]  ;;  %v91_v11 = vld [vmem:[%s4101_s1 + $0x168] sm:$0xff] }
   0x5   :  { %2571 = vmatpush3.msra.mxu1 %v93_v3  ;;  %2537 = vmatprep.subr.mxu0 %v76_v4  ;;  %v74_v12 = vld [vmem:[%s4101_s1 + $0xe0] sm:$0xff]  ;;  %v73_v16 = vld [vmem:[%s4101_s1 + $0xd8] sm:$0xff]  ;;  %v72_v20 = vld [vmem:[%s4101_s1 + $0xd0] sm:$0xff] }
   0x6   :  { %2572 = vmatprep.subr.mxu1 %v108_v5  ;;  %2538 = vmatpush3.msra.mxu0 %v60_v6  ;;  %v106_v13 = vld [vmem:[%s4101_s1 + $0x1e0] sm:$0xff]  ;;  %v105_v17 = vld [vmem:[%s4101_s1 + $0x1d8] sm:$0xff]  ;;  %v104_v21 = vld [vmem:[%s4101_s1 + $0x1d0] sm:$0xff] }
   0x7   :  { %2573 = vmatpush3.msra.mxu1 %v92_v7  ;;  %2539 = vmatprep.subr.mxu0 %v75_v8  ;;  %v58_v14 = vld [vmem:[%s4101_s1 + $0x60] sm:$0xff]  ;;  %v57_v18 = vld [vmem:[%s4101_s1 + $0x58] sm:$0xff]  ;;  %v56_v22 = vld [vmem:[%s4101_s1 + $0x50] sm:$0xff] }
   0x8   :  { %2574 = vmatprep.subr.mxu1 %v107_v9  ;;  %v90_v15 = vld [vmem:[%s4101_s1 + $0x160] sm:$0xff]  ;;  %2540 = vmatpush3.msra.mxu0 %v59_v10  ;;  %v89_v19 = vld [vmem:[%s4101_s1 + $0x158] sm:$0xff]  ;;  %v88_v23 = vld [vmem:[%s4101_s1 + $0x150] sm:$0xff] }
   0x9   :  { %2575 = vmatpush3.msra.mxu1 %v91_v11  ;;  %2541 = vmatprep.subr.mxu0 %v74_v12  ;;  %v71_v24 = vld [vmem:[%s4101_s1 + $0xc8] sm:$0xff]  ;;  %v70_v28 = vld [vmem:[%s4101_s1 + $0xc0] sm:$0xff]  ;;  %v69_v32 = vld [vmem:[%s4101_s1 + $0xb8] sm:$0xff] }
   0xa   :  { %2576 = vmatprep.subr.mxu1 %v106_v13  ;;  %2542 = vmatpush3.msra.mxu0 %v58_v14  ;;  %v103_v25 = vld [vmem:[%s4101_s1 + $0x1c8] sm:$0xff]  ;;  %v102_v29 = vld [vmem:[%s4101_s1 + $0x1c0] sm:$0xff]  ;;  %v101_v33 = vld [vmem:[%s4101_s1 + $0x1b8] sm:$0xff] }
   0xb   :  { %2577 = vmatpush3.msra.mxu1 %v90_v15  ;;  %2543 = vmatprep.subr.mxu0 %v73_v16  ;;  %v55_v26 = vld [vmem:[%s4101_s1 + $0x48] sm:$0xff]  ;;  %v54_v30 = vld [vmem:[%s4101_s1 + $0x40] sm:$0xff]  ;;  %v53_v34 = vld [vmem:[%s4101_s1 + $0x38] sm:$0xff] }
   0xc   :  { %2578 = vmatprep.subr.mxu1 %v105_v17  ;;  %2544 = vmatpush3.msra.mxu0 %v57_v18  ;;  %v87_v27 = vld [vmem:[%s4101_s1 + $0x148] sm:$0xff]  ;;  %v86_v31 = vld [vmem:[%s4101_s1 + $0x140] sm:$0xff]  ;;  %v85_v35 = vld [vmem:[%s4101_s1 + $0x138] sm:$0xff] }
   0xd   :  { %2579 = vmatpush3.msra.mxu1 %v89_v19  ;;  %2545 = vmatprep.subr.mxu0 %v72_v20  ;;  %v68_v36 = vld [vmem:[%s4101_s1 + $0xb0] sm:$0xff]  ;;  %v67_v40 = vld [vmem:[%s4101_s1 + $0xa8] sm:$0xff]  ;;  %v66_v44 = vld [vmem:[%s4101_s1 + $0xa0] sm:$0xff] }
   0xe   :  { %2580 = vmatprep.subr.mxu1 %v104_v21  ;;  %2546 = vmatpush3.msra.mxu0 %v56_v22  ;;  %v100_v37 = vld [vmem:[%s4101_s1 + $0x1b0] sm:$0xff]  ;;  %v99_v41 = vld [vmem:[%s4101_s1 + $0x1a8] sm:$0xff]  ;;  %v98_v45 = vld [vmem:[%s4101_s1 + $0x1a0] sm:$0xff] }
   0xf   :  { %2581 = vmatpush3.msra.mxu1 %v88_v23  ;;  %2547 = vmatprep.subr.mxu0 %v71_v24  ;;  %v52_v38 = vld [vmem:[%s4101_s1 + $0x30] sm:$0xff]  ;;  %v51_v42 = vld [vmem:[%s4101_s1 + $0x28] sm:$0xff]  ;;  %v50_v46 = vld [vmem:[%s4101_s1 + $0x20] sm:$0xff] }
  0x10   :  { %2582 = vmatprep.subr.mxu1 %v103_v25  ;;  %2548 = vmatpush3.msra.mxu0 %v55_v26  ;;  %v84_v39 = vld [vmem:[%s4101_s1 + $0x130] sm:$0xff]  ;;  %v83_v43 = vld [vmem:[%s4101_s1 + $0x128] sm:$0xff]  ;;  %v82_v47 = vld [vmem:[%s4101_s1 + $0x120] sm:$0xff] }
  0x11   :  { %2583 = vmatpush3.msra.mxu1 %v87_v27  ;;  %2549 = vmatprep.subr.mxu0 %v70_v28  ;;  %v65_v48 = vld [vmem:[%s4101_s1 + $0x98] sm:$0xff]  ;;  %v64_v52 = vld [vmem:[%s4101_s1 + $0x90] sm:$0xff]  ;;  %v63_v56 = vld [vmem:[%s4101_s1 + $0x88] sm:$0xff] }
  0x12   :  { %2584 = vmatprep.subr.mxu1 %v102_v29  ;;  %2550 = vmatpush3.msra.mxu0 %v54_v30  ;;  %v97_v49 = vld [vmem:[%s4101_s1 + $0x198] sm:$0xff]  ;;  %v96_v53 = vld [vmem:[%s4101_s1 + $0x190] sm:$0xff]  ;;  %v95_v57 = vld [vmem:[%s4101_s1 + $0x188] sm:$0xff] }
  0x13   :  { %2585 = vmatpush3.msra.mxu1 %v86_v31  ;;  %2551 = vmatprep.subr.mxu0 %v69_v32  ;;  %v49_v50 = vld [vmem:[%s4101_s1 + $0x18] sm:$0xff]  ;;  %v48_v54 = vld [vmem:[%s4101_s1 + $0x10] sm:$0xff]  ;;  %v47_v58 = vld [vmem:[%s4101_s1 + $0x8] sm:$0xff] }
  0x14   :  { %2586 = vmatprep.subr.mxu1 %v101_v33  ;;  %2552 = vmatpush3.msra.mxu0 %v53_v34  ;;  %v81_v51 = vld [vmem:[%s4101_s1 + $0x118] sm:$0xff]  ;;  %v80_v55 = vld [vmem:[%s4101_s1 + $0x110] sm:$0xff]  ;;  %v79_v59 = vld [vmem:[%s4101_s1 + $0x108] sm:$0xff] }
  0x15   :  { %2587 = vmatpush3.msra.mxu1 %v85_v35  ;;  %2553 = vmatprep.subr.mxu0 %v68_v36  ;;  %v62_v60 = vld [vmem:[%s4101_s1 + $0x80] sm:$0xff]  ;;  %v39_v63 = vld [vmem:[%s4102_s0 + $0x8] sm:$0xff]  ;;  %v41_v2 = vld [vmem:[%s4102_s0 + $0x18] sm:$0xff] }
  0x16   :  { %2588 = vmatprep.subr.mxu1 %v100_v37  ;;  %2554 = vmatpush3.msra.mxu0 %v52_v38  ;;  %v94_v61 = vld [vmem:[%s4101_s1 + $0x180] sm:$0xff]  ;;  %v141_v3 = vld [vmem:[%s4101_s1 + $0x2f8] sm:$0xff]  ;;  %v40_v5 = vld [vmem:[%s4102_s0 + $0x10] sm:$0xff] }
  0x17   :  { %2589 = vmatpush3.msra.mxu1 %v84_v39  ;;  %2555 = vmatprep.subr.mxu0 %v67_v40  ;;  %v46_v62 = vld [vmem:[%s4101_s1] sm:$0xff]  ;;  %v173_v4 = vld [vmem:[%s4101_s1 + $0x3f8] sm:$0xff]  ;;  %v140_v8 = vld [vmem:[%s4101_s1 + $0x2f0] sm:$0xff] }
  0x18   :  { %2590 = vmatprep.subr.mxu1 %v99_v41  ;;  %2556 = vmatpush3.msra.mxu0 %v51_v42  ;;  %v78_v0 = vld [vmem:[%s4101_s1 + $0x100] sm:$0xff]  ;;  %v125_v6 = vld [vmem:[%s4101_s1 + $0x278] sm:$0xff]  ;;  %v172_v9 = vld [vmem:[%s4101_s1 + $0x3f0] sm:$0xff] }
  0x19   :  { %2591 = vmatpush3.msra.mxu1 %v83_v43  ;;  %2557 = vmatprep.subr.mxu0 %v66_v44  ;;  %v38_v1 = vld [vmem:[%s4102_s0] sm:$0xff]  ;;  %v157_v7 = vld [vmem:[%s4101_s1 + $0x378] sm:$0xff]  ;;  %v124_v10 = vld [vmem:[%s4101_s1 + $0x270] sm:$0xff] }
  0x1a   :  { %2592 = vmatprep.subr.mxu1 %v98_v45  ;;  %2558 = vmatpush3.msra.mxu0 %v50_v46  ;;  %v156_v11 = vld [vmem:[%s4101_s1 + $0x370] sm:$0xff]  ;;  %v139_v12 = vld [vmem:[%s4101_s1 + $0x2e8] sm:$0xff]  ;;  %v138_v16 = vld [vmem:[%s4101_s1 + $0x2e0] sm:$0xff] }
  0x1b   :  { %2593 = vmatpush3.msra.mxu1 %v82_v47  ;;  %2559 = vmatprep.subr.mxu0 %v65_v48  ;;  %v171_v13 = vld [vmem:[%s4101_s1 + $0x3e8] sm:$0xff]  ;;  %v170_v17 = vld [vmem:[%s4101_s1 + $0x3e0] sm:$0xff]  ;;  %v137_v20 = vld [vmem:[%s4101_s1 + $0x2d8] sm:$0xff] }
  0x1c   :  { %2594 = vmatprep.subr.mxu1 %v97_v49  ;;  %2560 = vmatpush3.msra.mxu0 %v49_v50  ;;  %v123_v14 = vld [vmem:[%s4101_s1 + $0x268] sm:$0xff]  ;;  %v122_v18 = vld [vmem:[%s4101_s1 + $0x260] sm:$0xff]  ;;  %v169_v21 = vld [vmem:[%s4101_s1 + $0x3d8] sm:$0xff] }
  0x1d   :  { %2595 = vmatpush3.msra.mxu1 %v81_v51  ;;  %2561 = vmatprep.subr.mxu0 %v64_v52  ;;  %v155_v15 = vld [vmem:[%s4101_s1 + $0x368] sm:$0xff]  ;;  %v154_v19 = vld [vmem:[%s4101_s1 + $0x360] sm:$0xff]  ;;  %v121_v22 = vld [vmem:[%s4101_s1 + $0x258] sm:$0xff] }
  0x1e   :  { %2596 = vmatprep.subr.mxu1 %v96_v53  ;;  %2562 = vmatpush3.msra.mxu0 %v48_v54  ;;  %v153_v23 = vld [vmem:[%s4101_s1 + $0x358] sm:$0xff]  ;;  %v136_v24 = vld [vmem:[%s4101_s1 + $0x2d0] sm:$0xff]  ;;  %v135_v28 = vld [vmem:[%s4101_s1 + $0x2c8] sm:$0xff] }
  0x1f   :  { %2597 = vmatpush3.msra.mxu1 %v80_v55  ;;  %2563 = vmatprep.subr.mxu0 %v63_v56  ;;  %v168_v25 = vld [vmem:[%s4101_s1 + $0x3d0] sm:$0xff]  ;;  %v167_v29 = vld [vmem:[%s4101_s1 + $0x3c8] sm:$0xff]  ;;  %v134_v32 = vld [vmem:[%s4101_s1 + $0x2c0] sm:$0xff] }
  0x20   :  { %2598 = vmatprep.subr.mxu1 %v95_v57  ;;  %2564 = vmatpush3.msra.mxu0 %v47_v58  ;;  %v120_v26 = vld [vmem:[%s4101_s1 + $0x250] sm:$0xff]  ;;  %v119_v30 = vld [vmem:[%s4101_s1 + $0x248] sm:$0xff]  ;;  %v166_v33 = vld [vmem:[%s4101_s1 + $0x3c0] sm:$0xff] }
  0x21   :  { %2599 = vmatpush3.msra.mxu1 %v79_v59  ;;  %2565 = vmatprep.subr.mxu0 %v62_v60  ;;  %v152_v27 = vld [vmem:[%s4101_s1 + $0x350] sm:$0xff]  ;;  %v151_v31 = vld [vmem:[%s4101_s1 + $0x348] sm:$0xff]  ;;  %v118_v34 = vld [vmem:[%s4101_s1 + $0x240] sm:$0xff] }
  0x22   :  { %2600 = vmatprep.subr.mxu1 %v94_v61  ;;  %2566 = vmatpush3.msra.mxu0 %v46_v62  ;;  %v150_v35 = vld [vmem:[%s4101_s1 + $0x340] sm:$0xff]  ;;  %v133_v36 = vld [vmem:[%s4101_s1 + $0x2b8] sm:$0xff]  ;;  %v132_v40 = vld [vmem:[%s4101_s1 + $0x2b0] sm:$0xff] }
  0x23   :  { %245 = vmatprep.mubr.f32.mxu0 %v39_v63  ;;  %2601 = vmatpush3.msra.mxu1 %v78_v0  ;;  %v165_v37 = vld [vmem:[%s4101_s1 + $0x3b8] sm:$0xff]  ;;  %v164_v41 = vld [vmem:[%s4101_s1 + $0x3b0] sm:$0xff]  ;;  %v131_v44 = vld [vmem:[%s4101_s1 + $0x2a8] sm:$0xff] }
  0x24   :  { %246 = vmatmul.mubr.f32.vlgmr.msra.gmra.mxu0 %v38_v1  ;;  %315 = vmatprep.mubr.f32.mxu1 %v41_v2  ;;  %v117_v38 = vld [vmem:[%s4101_s1 + $0x238] sm:$0xff]  ;;  %v116_v42 = vld [vmem:[%s4101_s1 + $0x230] sm:$0xff]  ;;  %v163_v45 = vld [vmem:[%s4101_s1 + $0x3a8] sm:$0xff] }
  0x25   :  { %2605 = vmatprep.subr.mxu0 %v141_v3  ;;  %2640 = vmatprep.subr.mxu1 %v173_v4  ;;  %v149_v39 = vld [vmem:[%s4101_s1 + $0x338] sm:$0xff]  ;;  %v148_v43 = vld [vmem:[%s4101_s1 + $0x330] sm:$0xff]  ;;  %v115_v46 = vld [vmem:[%s4101_s1 + $0x228] sm:$0xff] }
  0x26   :  { %316 = vmatmul.mubr.f32.vlgmr.msra.gmra.mxu1 %v40_v5  ;;  %2606 = vmatpush3.msra.mxu0 %v125_v6  ;;  %v147_v47 = vld [vmem:[%s4101_s1 + $0x328] sm:$0xff]  ;;  %v130_v48 = vld [vmem:[%s4101_s1 + $0x2a0] sm:$0xff]  ;;  %v129_v52 = vld [vmem:[%s4101_s1 + $0x298] sm:$0xff] }
  0x27   :  { %2641 = vmatpush3.msra.mxu1 %v157_v7  ;;  %2607 = vmatprep.subr.mxu0 %v140_v8  ;;  %v162_v49 = vld [vmem:[%s4101_s1 + $0x3a0] sm:$0xff]  ;;  %v161_v53 = vld [vmem:[%s4101_s1 + $0x398] sm:$0xff]  ;;  %v128_v56 = vld [vmem:[%s4101_s1 + $0x290] sm:$0xff]  ;;  %v3147_v8 = vmov 0.0  }
  0x28   :  { %2642 = vmatprep.subr.mxu1 %v172_v9  ;;  %2608 = vmatpush3.msra.mxu0 %v124_v10  ;;  %v114_v50 = vld [vmem:[%s4101_s1 + $0x220] sm:$0xff]  ;;  %v113_v54 = vld [vmem:[%s4101_s1 + $0x218] sm:$0xff]  ;;  %v160_v57 = vld [vmem:[%s4101_s1 + $0x390] sm:$0xff] }
  0x29   :  { %2643 = vmatpush3.msra.mxu1 %v156_v11  ;;  %2609 = vmatprep.subr.mxu0 %v139_v12  ;;  %v146_v51 = vld [vmem:[%s4101_s1 + $0x320] sm:$0xff]  ;;  %v145_v55 = vld [vmem:[%s4101_s1 + $0x318] sm:$0xff]  ;;  %v112_v58 = vld [vmem:[%s4101_s1 + $0x210] sm:$0xff] }
  0x2a   :  { %2644 = vmatprep.subr.mxu1 %v171_v13  ;;  %2610 = vmatpush3.msra.mxu0 %v123_v14  ;;  %v144_v59 = vld [vmem:[%s4101_s1 + $0x310] sm:$0xff]  ;;  %v127_v60 = vld [vmem:[%s4101_s1 + $0x288] sm:$0xff]  ;;  %v126_v0 = vld [vmem:[%s4101_s1 + $0x280] sm:$0xff] }
  0x2b   :  { %2645 = vmatpush3.msra.mxu1 %v155_v15  ;;  %2611 = vmatprep.subr.mxu0 %v138_v16  ;;  %v159_v61 = vld [vmem:[%s4101_s1 + $0x388] sm:$0xff]  ;;  %v158_v1 = vld [vmem:[%s4101_s1 + $0x380] sm:$0xff]  ;;  %v45_v5 = vld [vmem:[%s4102_s0 + $0x38] sm:$0xff] }
  0x2c   :  { %2646 = vmatprep.subr.mxu1 %v170_v17  ;;  %2612 = vmatpush3.msra.mxu0 %v122_v18  ;;  %v111_v62 = vld [vmem:[%s4101_s1 + $0x208] sm:$0xff]  ;;  %v110_v2 = vld [vmem:[%s4101_s1 + $0x200] sm:$0xff]  ;;  %v44_v7 = vld [vmem:[%s4102_s0 + $0x30] sm:$0xff] }
  0x2d   :  { %2647 = vmatpush3.msra.mxu1 %v154_v19  ;;  %2613 = vmatprep.subr.mxu0 %v137_v20  ;;  %v143_v63 = vld [vmem:[%s4101_s1 + $0x308] sm:$0xff]  ;;  %v142_v4 = vld [vmem:[%s4101_s1 + $0x300] sm:$0xff]  ;;  %v476_v9 = vld [vmem:[%s4103_s3 + $0x78] sm:$0xff] }
  0x2e   :  { %2648 = vmatprep.subr.mxu1 %v169_v21  ;;  %2614 = vmatpush3.msra.mxu0 %v121_v22  ;;  %v43_v3 = vld [vmem:[%s4102_s0 + $0x28] sm:$0xff]  ;;  %v42_v6 = vld [vmem:[%s4102_s0 + $0x20] sm:$0xff]  ;;  %v475_v10 = vld [vmem:[%s4103_s3 + $0x70] sm:$0xff] }
  0x2f   :  { %2649 = vmatpush3.msra.mxu1 %v153_v23  ;;  %2615 = vmatprep.subr.mxu0 %v136_v24  ;;  %v474_v11 = vld [vmem:[%s4103_s3 + $0x68] sm:$0xff]  ;;  %v473_v12 = vld [vmem:[%s4103_s3 + $0x60] sm:$0xff]  ;;  %v472_v13 = vld [vmem:[%s4103_s3 + $0x58] sm:$0xff] }
  0x30   :  { %2650 = vmatprep.subr.mxu1 %v168_v25  ;;  %2616 = vmatpush3.msra.mxu0 %v120_v26  ;;  %v471_v14 = vld [vmem:[%s4103_s3 + $0x50] sm:$0xff]  ;;  %v470_v15 = vld [vmem:[%s4103_s3 + $0x48] sm:$0xff]  ;;  %v469_v16 = vld [vmem:[%s4103_s3 + $0x40] sm:$0xff] }
  0x31   :  { %2651 = vmatpush3.msra.mxu1 %v152_v27  ;;  %2617 = vmatprep.subr.mxu0 %v135_v28  ;;  %v468_v17 = vld [vmem:[%s4103_s3 + $0x38] sm:$0xff]  ;;  %v467_v18 = vld [vmem:[%s4103_s3 + $0x30] sm:$0xff]  ;;  %v466_v19 = vld [vmem:[%s4103_s3 + $0x28] sm:$0xff] }
  0x32   :  { %2652 = vmatprep.subr.mxu1 %v167_v29  ;;  %2618 = vmatpush3.msra.mxu0 %v119_v30  ;;  %v465_v20 = vld [vmem:[%s4103_s3 + $0x20] sm:$0xff]  ;;  %v464_v21 = vld [vmem:[%s4103_s3 + $0x18] sm:$0xff]  ;;  %v463_v23 = vld [vmem:[%s4103_s3 + $0x10] sm:$0xff] }
  0x33   :  { %2653 = vmatpush3.msra.mxu1 %v151_v31  ;;  %2619 = vmatprep.subr.mxu0 %v134_v32  ;;  %v3675_v22 = vld [vmem:[%s4104_s4 + $0x18] sm:$0xff]  ;;  %v3686_v24 = vld [vmem:[%s4104_s4 + $0x10] sm:$0xff]  ;;  %v462_v25 = vld [vmem:[%s4103_s3 + $0x8] sm:$0xff] }
  0x34   :  { %2654 = vmatprep.subr.mxu1 %v166_v33  ;;  %2620 = vmatpush3.msra.mxu0 %v118_v34  ;;  %v3697_v26 = vld [vmem:[%s4104_s4 + $0x8] sm:$0xff]  ;;  %v461_v27 = vld [vmem:[%s4103_s3] sm:$0xff] }
  0x35   :  { %2655 = vmatpush3.msra.mxu1 %v150_v35  ;;  %2621 = vmatprep.subr.mxu0 %v133_v36  ;;  %v3708_v28 = vld [vmem:[%s4104_s4] sm:$0xff] }
  0x36   :  { %2656 = vmatprep.subr.mxu1 %v165_v37  ;;  %2622 = vmatpush3.msra.mxu0 %v117_v38  ;;  %v2499_v33 = vld [vmem:[%s4105_s2] ss:$0 sm:$0xff] }
  0x37   :  { %2657 = vmatpush3.msra.mxu1 %v149_v39  ;;  %2623 = vmatprep.subr.mxu0 %v132_v40 }
  0x38   :  { %2658 = vmatprep.subr.mxu1 %v164_v41  ;;  %2624 = vmatpush3.msra.mxu0 %v116_v42 }
  0x39   :  { %2659 = vmatpush3.msra.mxu1 %v148_v43  ;;  %2625 = vmatprep.subr.mxu0 %v131_v44 }
  0x3a   :  { %2660 = vmatprep.subr.mxu1 %v163_v45  ;;  %2626 = vmatpush3.msra.mxu0 %v115_v46 }
  0x3b   :  { %2661 = vmatpush3.msra.mxu1 %v147_v47  ;;  %2627 = vmatprep.subr.mxu0 %v130_v48  ;;  %v2500_v48 = vld [vmem:[%s4106_s5] ss:$0 sm:$0xff]  ;;  %s3150_s5 = smov 32  }
  0x3c   :  { %2662 = vmatprep.subr.mxu1 %v162_v49  ;;  %2628 = vmatpush3.msra.mxu0 %v114_v50 }
  0x3d   :  { %2663 = vmatpush3.msra.mxu1 %v146_v51  ;;  %2629 = vmatprep.subr.mxu0 %v129_v52 }
  0x3e   :  { %2664 = vmatprep.subr.mxu1 %v161_v53  ;;  %2630 = vmatpush3.msra.mxu0 %v113_v54 }
  0x3f   :  { %2665 = vmatpush3.msra.mxu1 %v145_v55  ;;  %2631 = vmatprep.subr.mxu0 %v128_v56 }
  0x40   :  { %2666 = vmatprep.subr.mxu1 %v160_v57  ;;  %2632 = vmatpush3.msra.mxu0 %v112_v58 }
  0x41   :  { %2667 = vmatpush3.msra.mxu1 %v144_v59  ;;  %2633 = vmatprep.subr.mxu0 %v127_v60 }
  0x42   :  { %2668 = vmatprep.subr.mxu1 %v159_v61  ;;  %2634 = vmatpush3.msra.mxu0 %v111_v62 }
  0x43   :  { %2669 = vmatpush3.msra.mxu1 %v143_v63  ;;  %2635 = vmatprep.subr.mxu0 %v126_v0 }
  0x44   :  { %2670 = vmatprep.subr.mxu1 %v158_v1  ;;  %2636 = vmatpush3.msra.mxu0 %v110_v2 }
  0x45   :  { %385 = vmatprep.mubr.f32.mxu0 %v43_v3  ;;  %2671 = vmatpush3.msra.mxu1 %v142_v4 }
  0x46   :  { %455 = vmatprep.mubr.f32.mxu1 %v45_v5  ;;  %386 = vmatmul.mubr.f32.vlgmr.msra.gmra.mxu0 %v42_v6 }
  0x47   :  { %456 = vmatmul.mubr.f32.vlgmr.msra.gmra.mxu1 %v44_v7  ;;  %2782 = vmatprep.subr.mxu0 %v3147_v8 }
  0x48   :  { %2817 = vmatprep.subr.mxu1 %v3147_v8  ;;  %2783 = vmatpush3.msra.mxu0 %v476_v9 }
  0x49   :  { %2784 = vmatprep.subr.mxu0 %v3147_v8  ;;  %2818 = vmatpush3.msra.mxu1 %v3675_v22 }
  0x4a   :  { %2785 = vmatpush3.msra.mxu0 %v475_v10  ;;  %2819 = vmatprep.subr.mxu1 %v3147_v8 }
  0x4b   :  { %2786 = vmatprep.subr.mxu0 %v3147_v8  ;;  %2820 = vmatpush3.msra.mxu1 %v3686_v24 }
  0x4c   :  { %2787 = vmatpush3.msra.mxu0 %v474_v11  ;;  %2821 = vmatprep.subr.mxu1 %v3147_v8 }
  0x4d   :  { %2788 = vmatprep.subr.mxu0 %v3147_v8  ;;  %2822 = vmatpush3.msra.mxu1 %v3697_v26 }
  0x4e   :  { %2789 = vmatpush3.msra.mxu0 %v473_v12  ;;  %2823 = vmatprep.subr.mxu1 %v3147_v8 }
  0x4f   :  { %2790 = vmatprep.subr.mxu0 %v3147_v8  ;;  %2814 = vmatprep.mubr.msk.f32.mxu0 %vm3148_vm0, %v3147_v8 }
  0x50   :  { %2791 = vmatpush3.msra.mxu0 %v472_v13  ;;  %2824 = vmatpush3.msra.mxu1 %v3708_v28 }
  0x51   :  { %2792 = vmatprep.subr.mxu0 %v3147_v8  ;;  %2825 = vmatprep.mubr.msk.f32.mxu1 %vm3148_vm0, %v3147_v8 }
  0x52   :  { %2793 = vmatpush3.msra.mxu0 %v471_v14  ;;  %2826 = vmatmul.mubr.f32.vlgmr.msra.gmra.mxu1 %v3147_v8 }
  0x53   :  { %2794 = vmatprep.subr.mxu0 %v3147_v8  ;;  %2828 = vmatprep.subr.mxu1 %v3147_v8 }
  0x54   :  { %2795 = vmatpush3.msra.mxu0 %v470_v15  ;;  %2829 = vmatpush3.msra.mxu1 %v3675_v22 }
  0x55   :  { %2796 = vmatprep.subr.mxu0 %v3147_v8  ;;  %2836 = vmatprep.mubr.msk.f32.mxu1 %vm3148_vm0, %v3147_v8 }
  0x56   :  { %2797 = vmatpush3.msra.mxu0 %v469_v16  ;;  %2830 = vmatprep.subr.mxu1 %v3147_v8 }
  0x57   :  { %2798 = vmatprep.subr.mxu0 %v3147_v8  ;;  %2831 = vmatpush3.msra.mxu1 %v3686_v24 }
  0x58   :  { %2799 = vmatpush3.msra.mxu0 %v468_v17  ;;  %2832 = vmatprep.subr.mxu1 %v3147_v8 }
  0x59   :  { %2800 = vmatprep.subr.mxu0 %v3147_v8  ;;  %2833 = vmatpush3.msra.mxu1 %v3697_v26 }
  0x5a   :  { %2801 = vmatpush3.msra.mxu0 %v467_v18  ;;  %2834 = vmatprep.subr.mxu1 %v3147_v8 }
  0x5b   :  { %2802 = vmatprep.subr.mxu0 %v3147_v8  ;;  %2835 = vmatpush3.msra.mxu1 %v3708_v28 }
  0x5c   :  { %2803 = vmatpush3.msra.mxu0 %v466_v19  ;;  %2839 = vmatprep.subr.mxu1 %v3147_v8 }
  0x5d   :  { %2804 = vmatprep.subr.mxu0 %v3147_v8 }
  0x5e   :  { %2805 = vmatpush3.msra.mxu0 %v465_v20 }
  0x5f   :  { %2806 = vmatprep.subr.mxu0 %v3147_v8 }
  0x60   :  { %2807 = vmatpush3.msra.mxu0 %v464_v21 }
  0x61   :  { %2808 = vmatprep.subr.mxu0 %v3147_v8 }
  0x62   :  { %2809 = vmatpush3.msra.mxu0 %v463_v23 }
  0x63   :  { %2810 = vmatprep.subr.mxu0 %v3147_v8 }
  0x64   :  { %2811 = vmatpush3.msra.mxu0 %v462_v25 }
  0x65   :  { %2812 = vmatprep.subr.mxu0 %v3147_v8 }
  0x66   :  { %2813 = vmatpush3.msra.mxu0 %v461_v27 }
  0x67   :  { %2861 = vmatprep.subr.mxu0 %v3147_v8 }
  0xe4   :  { %v2567_v29 = vpop.f32.mrf.mxu0 }
  0xe6   :  { %v2602_v30 = vpop.f32.mrf.mxu1  ;;  %v2568_v31 = vpop.f32.mrf.mxu0 }
  0xe7   :  { %v2569_v32 = vadd.f32 %v2568_v31, %v2567_v29 }
  0xe8   :  { %v2603_v34 = vpop.f32.mrf.mxu1 }
  0xe9   :  { %v248_v35 = vadd.f32 %v2569_v32, %v2499_v33  ;;  %v2604_v36 = vadd.f32 %v2603_v34, %v2602_v30 }
  0xeb   :  { %v318_v41 = vadd.f32 %v2604_v36, %v248_v35 }
 0x106   :  { %v2637_v37 = vpop.f32.mrf.mxu0 }
 0x107   :  { %v2672_v38 = vpop.f32.mrf.mxu1 }
 0x108   :  { %v2638_v39 = vpop.f32.mrf.mxu0 }
 0x109   :  { %v2673_v40 = vpop.f32.mrf.mxu1  ;;  %v2639_v42 = vadd.f32 %v2638_v39, %v2637_v37 }
 0x10a   :  { %v2674_v44 = vadd.f32 %v2673_v40, %v2672_v38 }
 0x10b   :  { %v388_v43 = vadd.f32 %v2639_v42, %v318_v41 }
 0x10d   :  { %v458_v45 = vadd.f32 %v2674_v44, %v388_v43 }
 0x10f   :  { %2815 = vmatmul.mubr.f32.vlgmr.msra.gmra.mxu0 %v458_v45 }
 0x110   :  { %2862 = vmatpush3.msra.mxu0 %v3675_v22  ;;  %2869 = vmatprep.mubr.msk.f32.mxu0 %vm3148_vm0, %v3147_v8 }
 0x111   :  { %2863 = vmatprep.subr.mxu0 %v3147_v8 }
 0x112   :  { %2864 = vmatpush3.msra.mxu0 %v3686_v24  ;;  %v628_v46 = vpop.f32.mrf.mxu1 }
 0x113   :  { %2865 = vmatprep.subr.mxu0 %v3147_v8 }
 0x114   :  { %2866 = vmatpush3.msra.mxu0 %v3697_v26  ;;  %v2827_v47 = vpop.f32.mrf.mxu1 }
 0x115   :  { %2867 = vmatprep.subr.mxu0 %v3147_v8 }
 0x116   :  { %2868 = vmatpush3.msra.mxu0 %v3708_v28 }
 0x117   :  { %2883 = vmatprep.subr.mxu0 %v3147_v8 }
 0x1cf   :  { %v550_v49 = vpop.f32.mrf.mxu0 }
 0x1d0   :  { %v3744_v50 = vadd.f32 %v2500_v48, %v550_v49 }
 0x1d1   :  { %v2816_v51 = vpop.f32.mrf.mxu0 }
 0x1d2   :  { %v632_v52 = vadd.f32 %v628_v46, %v3744_v50 }
 0x1d4   :  { %3019 = vtanh.f32 %v632_v52  ;;  %v2501_v54 = vmul.f32 -1.442695, %v632_v52 }
 0x1d6   :  { %3021 = vpow2.f32 %v2501_v54 }
 0x1e1   :  { %v3020_v53 = vpop.eup %3019 }
 0x1e2   :  { %642 = vrot.lane.b32.xlu0 %v3020_v53, %s3149_s22 }
 0x1e3   :  { %v3022_v55 = vpop.eup %3021 }
 0x1e4   :  { %v636_v56 = vadd.f32 1.0, %v3022_v55 }
 0x1e6   :  { %3023 = vrcp.f32 %v636_v56 }
 0x1f3   :  { %v3024_v57 = vpop.eup %3023 }
 0x1f4   :  { %v640_v60 = vmul.f32 0.0, %v3024_v57 }
 0x254   :  { %v643_v58 = vpop.permute.xlu0 %642 }
 0x255   :  { %v645_v59 = vmul.f32 %v3024_v57, %v643_v58 }
 0x257   :  { %647 = vrot.lane.b32.xlu0 %v645_v59, %s3150_s5 }
 0x2c9   :  { %v648_v61 = vpop.permute.xlu0 %647 }
 0x2ca   :  { %v650_v62 = vadd.f32 %v648_v61, %v640_v60 }
 0x2cc   :  { %3025 = vtanh.f32 %v650_v62  ;;  %v747_v15 = vrot.slane %v650_v62, 7 }
 0x2d9   :  { %v3026_v63 = vpop.eup %3025 }
 0x2da   :  { %653 = vrot.lane.b32.xlu1 %v3026_v63, %s3149_s22 }
 0x34c   :  { %v654_v0 = vpop.permute.xlu1 %653 }
 0x34d   :  { %v656_v1 = vmul.f32 %v3024_v57, %v654_v0 }
 0x34f   :  { %658 = vrot.lane.b32.xlu1 %v656_v1, %s3150_s5 }
 0x3c1   :  { %v659_v2 = vpop.permute.xlu1 %658 }
 0x3c2   :  { %662 = vst.msk [vmem:[#allocation2] sm:$0x1] %vm661_vm1, %v659_v2  ;;  %2837 = vmatmul.mubr.msk.f32.vlgmr.msra.gmra.mxu1 %vm558_vm2, %v659_v2 }
 0x3c3   :  { %2840 = vmatpush3.msra.mxu1 %v3675_v22  ;;  %2847 = vmatprep.mubr.msk.f32.mxu1 %vm3148_vm0, %v3147_v8 }
 0x3c4   :  { %2841 = vmatprep.subr.mxu1 %v3147_v8 }
 0x3c5   :  { %2842 = vmatpush3.msra.mxu1 %v3686_v24 }
 0x3c6   :  { %2843 = vmatprep.subr.mxu1 %v3147_v8 }
 0x3c7   :  { %2844 = vmatpush3.msra.mxu1 %v3697_v26 }
 0x3c8   :  { %2845 = vmatprep.subr.mxu1 %v3147_v8 }
 0x3c9   :  { %2846 = vmatpush3.msra.mxu1 %v3708_v28 }
 0x3ca   :  { %2850 = vmatprep.subr.mxu1 %v3147_v8 }
 0x482   :  { %v731_v3 = vpop.f32.mrf.mxu1 }
 0x483   :  { %v736_v4 = vrot.slane %v731_v3, 7 }
 0x484   :  { %v2838_v5 = vpop.f32.mrf.mxu1 }
 0x485   :  { %v738_v6 = vadd.f32 %v736_v4, %v3744_v50 }
 0x487   :  { %3027 = vtanh.f32 %v738_v6  ;;  %v2503_v9 = vmul.f32 -1.442695, %v738_v6 }
 0x489   :  { %3029 = vpow2.f32 %v2503_v9 }
 0x494   :  { %v3028_v7 = vpop.eup %3027 }
 0x495   :  { %751 = vrot.lane.b32.xlu0 %v3028_v7, %s3149_s22 }
 0x496   :  { %v3030_v10 = vpop.eup %3029 }
 0x497   :  { %v742_v11 = vadd.f32 1.0, %v3030_v10 }
 0x499   :  { %3031 = vrcp.f32 %v742_v11 }
 0x4a6   :  { %v3032_v12 = vpop.eup %3031 }
 0x4a7   :  { %v749_v16 = vmul.f32 %v3032_v12, %v747_v15 }
 0x507   :  { %v752_v13 = vpop.permute.xlu0 %751 }
 0x508   :  { %v754_v14 = vmul.f32 %v3032_v12, %v752_v13 }
 0x50a   :  { %756 = vrot.lane.b32.xlu1 %v754_v14, %s3150_s5 }
 0x57c   :  { %v757_v17 = vpop.permute.xlu1 %756 }
 0x57d   :  { %v759_v18 = vadd.f32 %v757_v17, %v749_v16 }
 0x57f   :  { %3033 = vtanh.f32 %v759_v18  ;;  %v859_v39 = vrot.slane %v759_v18, 7 }
 0x58c   :  { %v3034_v19 = vpop.eup %3033 }
 0x58d   :  { %762 = vrot.lane.b32.xlu0 %v3034_v19, %s3149_s22 }
 0x5ff   :  { %v763_v20 = vpop.permute.xlu0 %762 }
 0x600   :  { %v3767_v21 = vmul.f32 %v3032_v12, %v763_v20 }
 0x602   :  { %v772_v23 = vrot.slane %v3767_v21, 1 }
 0x604   :  { %773 = vrot.lane.b32.xlu1 %v772_v23, %s3150_s5 }
 0x676   :  { %v774_v25 = vpop.permute.xlu1 %773 }
 0x677   :  { %2848 = vmatmul.mubr.msk.f32.vlgmr.msra.gmra.mxu1 %vm558_vm2, %v774_v25 }
 0x678   :  { %2851 = vmatpush3.msra.mxu1 %v3675_v22  ;;  %2858 = vmatprep.mubr.msk.f32.mxu1 %vm3148_vm0, %v3147_v8 }
 0x679   :  { %2852 = vmatprep.subr.mxu1 %v3147_v8 }
 0x67a   :  { %2853 = vmatpush3.msra.mxu1 %v3686_v24 }
 0x67b   :  { %2854 = vmatprep.subr.mxu1 %v3147_v8 }
 0x67c   :  { %2855 = vmatpush3.msra.mxu1 %v3697_v26 }
 0x67d   :  { %2856 = vmatprep.subr.mxu1 %v3147_v8 }
 0x67e   :  { %2857 = vmatpush3.msra.mxu1 %v3708_v28 }
 0x67f   :  { %2872 = vmatprep.subr.mxu1 %v3147_v8 }
 0x737   :  { %v843_v27 = vpop.f32.mrf.mxu1 }
 0x738   :  { %v848_v29 = vrot.slane %v843_v27, 6 }
 0x739   :  { %v2849_v30 = vpop.f32.mrf.mxu1 }
 0x73a   :  { %v850_v31 = vadd.f32 %v848_v29, %v3744_v50 }
 0x73c   :  { %3035 = vtanh.f32 %v850_v31  ;;  %v2505_v33 = vmul.f32 -1.442695, %v850_v31 }
 0x73e   :  { %3037 = vpow2.f32 %v2505_v33 }
 0x749   :  { %v3036_v32 = vpop.eup %3035 }
 0x74a   :  { %863 = vrot.lane.b32.xlu0 %v3036_v32, %s3149_s22 }
 0x74b   :  { %v3038_v34 = vpop.eup %3037 }
 0x74c   :  { %v854_v35 = vadd.f32 1.0, %v3038_v34 }
 0x74e   :  { %3039 = vrcp.f32 %v854_v35 }
 0x75b   :  { %v3040_v36 = vpop.eup %3039 }
 0x75c   :  { %v861_v40 = vmul.f32 %v3040_v36, %v859_v39 }
 0x7bc   :  { %v864_v37 = vpop.permute.xlu0 %863 }
 0x7bd   :  { %v866_v38 = vmul.f32 %v3040_v36, %v864_v37 }
 0x7bf   :  { %868 = vrot.lane.b32.xlu1 %v866_v38, %s3150_s5 }
 0x831   :  { %v869_v41 = vpop.permute.xlu1 %868 }
 0x832   :  { %v871_v42 = vadd.f32 %v869_v41, %v861_v40 }
 0x834   :  { %3041 = vtanh.f32 %v871_v42  ;;  %v971_v60 = vrot.slane %v871_v42, 7 }
 0x841   :  { %v3042_v43 = vpop.eup %3041 }
 0x842   :  { %874 = vrot.lane.b32.xlu0 %v3042_v43, %s3149_s22 }
 0x8b4   :  { %v875_v44 = vpop.permute.xlu0 %874 }
 0x8b5   :  { %v3786_v45 = vmul.f32 %v3040_v36, %v875_v44 }
 0x8b7   :  { %v884_v46 = vrot.slane %v3786_v45, 2 }
 0x8b9   :  { %885 = vrot.lane.b32.xlu1 %v884_v46, %s3150_s5 }
 0x92b   :  { %v886_v47 = vpop.permute.xlu1 %885 }
 0x92c   :  { %2859 = vmatmul.mubr.msk.f32.vlgmr.msra.gmra.mxu1 %vm558_vm2, %v886_v47 }
 0x92d   :  { %2873 = vmatpush3.msra.mxu1 %v3675_v22  ;;  %2880 = vmatprep.mubr.msk.f32.mxu1 %vm3148_vm0, %v3147_v8 }
 0x92e   :  { %2874 = vmatprep.subr.mxu1 %v3147_v8 }
 0x92f   :  { %2875 = vmatpush3.msra.mxu1 %v3686_v24 }
 0x930   :  { %2876 = vmatprep.subr.mxu1 %v3147_v8 }
 0x931   :  { %2877 = vmatpush3.msra.mxu1 %v3697_v26 }
 0x932   :  { %2878 = vmatprep.subr.mxu1 %v3147_v8 }
 0x933   :  { %2879 = vmatpush3.msra.mxu1 %v3708_v28 }
 0x934   :  { %2894 = vmatprep.subr.mxu1 %v3147_v8 }
 0x9ec   :  { %v955_v48 = vpop.f32.mrf.mxu1 }
 0x9ed   :  { %v960_v49 = vrot.slane %v955_v48, 5 }
 0x9ee   :  { %v2860_v51 = vpop.f32.mrf.mxu1 }
 0x9ef   :  { %v962_v52 = vadd.f32 %v960_v49, %v3744_v50 }
 0x9f1   :  { %3043 = vtanh.f32 %v962_v52  ;;  %v2507_v54 = vmul.f32 -1.442695, %v962_v52 }
 0x9f3   :  { %3045 = vpow2.f32 %v2507_v54 }
 0x9fe   :  { %v3044_v53 = vpop.eup %3043 }
 0x9ff   :  { %975 = vrot.lane.b32.xlu0 %v3044_v53, %s3149_s22 }
 0xa00   :  { %v3046_v55 = vpop.eup %3045 }
 0xa01   :  { %v966_v56 = vadd.f32 1.0, %v3046_v55 }
 0xa03   :  { %3047 = vrcp.f32 %v966_v56 }
 0xa10   :  { %v3048_v57 = vpop.eup %3047 }
 0xa11   :  { %v973_v61 = vmul.f32 %v3048_v57, %v971_v60 }
 0xa71   :  { %v976_v58 = vpop.permute.xlu0 %975 }
 0xa72   :  { %v978_v59 = vmul.f32 %v3048_v57, %v976_v58 }
 0xa74   :  { %980 = vrot.lane.b32.xlu1 %v978_v59, %s3150_s5 }
 0xae6   :  { %v981_v62 = vpop.permute.xlu1 %980 }
 0xae7   :  { %v983_v63 = vadd.f32 %v981_v62, %v973_v61 }
 0xae9   :  { %3049 = vtanh.f32 %v983_v63  ;;  %v1083_v17 = vrot.slane %v983_v63, 7 }
 0xaf6   :  { %v3050_v0 = vpop.eup %3049 }
 0xaf7   :  { %986 = vrot.lane.b32.xlu0 %v3050_v0, %s3149_s22 }
 0xb69   :  { %v987_v1 = vpop.permute.xlu0 %986 }
 0xb6a   :  { %v3805_v2 = vmul.f32 %v3048_v57, %v987_v1 }
 0xb6c   :  { %v996_v3 = vrot.slane %v3805_v2, 3 }
 0xb6e   :  { %997 = vrot.lane.b32.xlu1 %v996_v3, %s3150_s5 }
 0xbe0   :  { %v998_v4 = vpop.permute.xlu1 %997 }
 0xbe1   :  { %2870 = vmatmul.mubr.msk.f32.vlgmr.msra.gmra.mxu0 %vm558_vm2, %v998_v4 }
 0xbe2   :  { %2884 = vmatpush3.msra.mxu0 %v3675_v22  ;;  %2891 = vmatprep.mubr.msk.f32.mxu0 %vm3148_vm0, %v3147_v8 }
 0xbe3   :  { %2885 = vmatprep.subr.mxu0 %v3147_v8 }
 0xbe4   :  { %2886 = vmatpush3.msra.mxu0 %v3686_v24 }
 0xbe5   :  { %2887 = vmatprep.subr.mxu0 %v3147_v8 }
 0xbe6   :  { %2888 = vmatpush3.msra.mxu0 %v3697_v26 }
 0xbe7   :  { %2889 = vmatprep.subr.mxu0 %v3147_v8 }
 0xbe8   :  { %2890 = vmatpush3.msra.mxu0 %v3708_v28 }
 0xbe9   :  { %2905 = vmatprep.subr.mxu0 %v3147_v8 }
 0xca1   :  { %v1067_v5 = vpop.f32.mrf.mxu0 }
 0xca2   :  { %v1072_v6 = vrot.slane %v1067_v5, 4 }
 0xca3   :  { %v2871_v7 = vpop.f32.mrf.mxu0 }
 0xca4   :  { %v1074_v9 = vadd.f32 %v1072_v6, %v3744_v50 }
 0xca6   :  { %3051 = vtanh.f32 %v1074_v9  ;;  %v2509_v11 = vmul.f32 -1.442695, %v1074_v9 }
 0xca8   :  { %3053 = vpow2.f32 %v2509_v11 }
 0xcb3   :  { %v3052_v10 = vpop.eup %3051 }
 0xcb4   :  { %1087 = vrot.lane.b32.xlu0 %v3052_v10, %s3149_s22 }
 0xcb5   :  { %v3054_v12 = vpop.eup %3053 }
 0xcb6   :  { %v1078_v13 = vadd.f32 1.0, %v3054_v12 }
 0xcb8   :  { %3055 = vrcp.f32 %v1078_v13 }
 0xcc5   :  { %v3056_v14 = vpop.eup %3055 }
 0xcc6   :  { %v1085_v18 = vmul.f32 %v3056_v14, %v1083_v17 }
 0xd26   :  { %v1088_v15 = vpop.permute.xlu0 %1087 }
 0xd27   :  { %v1090_v16 = vmul.f32 %v3056_v14, %v1088_v15 }
 0xd29   :  { %1092 = vrot.lane.b32.xlu1 %v1090_v16, %s3150_s5 }
 0xd9b   :  { %v1093_v19 = vpop.permute.xlu1 %1092 }
 0xd9c   :  { %v1095_v20 = vadd.f32 %v1093_v19, %v1085_v18 }
 0xd9e   :  { %3057 = vtanh.f32 %v1095_v20 }
 0xdab   :  { %v3058_v23 = vpop.eup %3057 }
 0xdac   :  { %1098 = vrot.lane.b32.xlu0 %v3058_v23, %s3149_s22 }
 0xe1e   :  { %v1099_v25 = vpop.permute.xlu0 %1098 }
 0xe1f   :  { %v3824_v27 = vmul.f32 %v3056_v14, %v1099_v25 }
 0xe21   :  { %v1108_v29 = vrot.slane %v3824_v27, 4 }
 0xe23   :  { %1109 = vrot.lane.b32.xlu1 %v1108_v29, %s3150_s5  ;;  %v1448_v29 = vld [vmem:[%s4107_s6 + $0x18] sm:$0xff] }
 0xe95   :  { %v1110_v30 = vpop.permute.xlu1 %1109 }
 0xe96   :  { %2881 = vmatmul.mubr.msk.f32.vlgmr.msra.gmra.mxu1 %vm558_vm2, %v1110_v30  ;;  %v3878_v30 = vld [vmem:[%s4108_s7 + $0x18] sm:$0xff] }
 0xe97   :  { %2895 = vmatpush3.msra.mxu1 %v3675_v22  ;;  %2902 = vmatprep.mubr.msk.f32.mxu1 %vm3148_vm0, %v3147_v8 }
 0xe98   :  { %2896 = vmatprep.subr.mxu1 %v3147_v8 }
 0xe99   :  { %2897 = vmatpush3.msra.mxu1 %v3686_v24 }
 0xe9a   :  { %2898 = vmatprep.subr.mxu1 %v3147_v8 }
 0xe9b   :  { %2899 = vmatpush3.msra.mxu1 %v3697_v26 }
 0xe9c   :  { %2900 = vmatprep.subr.mxu1 %v3147_v8 }
 0xe9d   :  { %2901 = vmatpush3.msra.mxu1 %v3708_v28  ;;  %v1195_v28 = vrot.slane %v1095_v20, 7 }
 0xe9e   :  { %2916 = vmatprep.subr.mxu1 %v3147_v8 }
 0xf56   :  { %v1179_v31 = vpop.f32.mrf.mxu1 }
 0xf57   :  { %v1184_v32 = vrot.slane %v1179_v31, 3  ;;  %v1447_v31 = vld [vmem:[%s4107_s6 + $0x10] sm:$0xff] }
 0xf58   :  { %v2882_v22 = vpop.f32.mrf.mxu1 }
 0xf59   :  { %v1186_v33 = vadd.f32 %v1184_v32, %v3744_v50  ;;  %v3897_v32 = vld [vmem:[%s4108_s7 + $0x8] sm:$0xff]  ;;  %v1445_v22 = vld [vmem:[%s4107_s6] sm:$0xff] }
 0xf5b   :  { %3059 = vtanh.f32 %v1186_v33  ;;  %v2511_v24 = vmul.f32 -1.442695, %v1186_v33  ;;  %v3908_v33 = vld [vmem:[%s4108_s7] sm:$0xff] }
 0xf5d   :  { %3061 = vpow2.f32 %v2511_v24 }
 0xf68   :  { %v3060_v34 = vpop.eup %3059 }
 0xf69   :  { %1199 = vrot.lane.b32.xlu0 %v3060_v34, %s3149_s22 }
 0xf6a   :  { %v3062_v35 = vpop.eup %3061 }
 0xf6b   :  { %v1190_v36 = vadd.f32 1.0, %v3062_v35 }
 0xf6d   :  { %3063 = vrcp.f32 %v1190_v36 }
 0xf7a   :  { %v3064_v26 = vpop.eup %3063 }
 0xf7b   :  { %v1197_v39 = vmul.f32 %v3064_v26, %v1195_v28 }
 0xfdb   :  { %v1200_v37 = vpop.permute.xlu0 %1199 }
 0xfdc   :  { %v1202_v38 = vmul.f32 %v3064_v26, %v1200_v37 }
 0xfde   :  { %1204 = vrot.lane.b32.xlu1 %v1202_v38, %s3150_s5 }
0x1050   :  { %v1205_v40 = vpop.permute.xlu1 %1204 }
0x1051   :  { %v1207_v41 = vadd.f32 %v1205_v40, %v1197_v39  ;;  %v2516_v40 = vld [vmem:[%s4109_s8] ss:$0 sm:$0xff] }
0x1053   :  { %3065 = vtanh.f32 %v1207_v41  ;;  %v1307_v60 = vrot.slane %v1207_v41, 7 }
0x1060   :  { %v3066_v42 = vpop.eup %3065 }
0x1061   :  { %1210 = vrot.lane.b32.xlu0 %v3066_v42, %s3149_s22 }
0x10d3   :  { %v1211_v43 = vpop.permute.xlu0 %1210 }
0x10d4   :  { %v1213_v44 = vmul.f32 %v3064_v26, %v1211_v43 }
0x10d6   :  { %v1220_v46 = vrot.slane %v1213_v44, 5 }
0x10d8   :  { %1221 = vrot.lane.b32.xlu1 %v1220_v46, %s3150_s5 }
0x114a   :  { %v1222_v47 = vpop.permute.xlu1 %1221 }
0x114b   :  { %2892 = vmatmul.mubr.msk.f32.vlgmr.msra.gmra.mxu0 %vm558_vm2, %v1222_v47 }
0x114c   :  { %2913 = vmatprep.mubr.msk.f32.mxu0 %vm3148_vm0, %v3147_v8  ;;  %2906 = vmatpush3.msra.mxu0 %v1448_v29 }
0x114d   :  { %2907 = vmatprep.subr.mxu0 %v3147_v8 }
0x114e   :  { %2908 = vmatpush3.msra.mxu0 %v1447_v31 }
0x114f   :  { %2909 = vmatprep.subr.mxu0 %v3147_v8 }
0x120b   :  { %v1291_v48 = vpop.f32.mrf.mxu0 }
0x120c   :  { %v1296_v49 = vrot.slane %v1291_v48, 2 }
0x120d   :  { %v2893_v51 = vpop.f32.mrf.mxu0 }
0x120e   :  { %v1298_v52 = vadd.f32 %v1296_v49, %v3744_v50 }
0x1210   :  { %3067 = vtanh.f32 %v1298_v52  ;;  %v2513_v54 = vmul.f32 -1.442695, %v1298_v52 }
0x1212   :  { %3069 = vpow2.f32 %v2513_v54 }
0x121d   :  { %v3068_v53 = vpop.eup %3067 }
0x121e   :  { %1311 = vrot.lane.b32.xlu0 %v3068_v53, %s3149_s22 }
0x121f   :  { %v3070_v55 = vpop.eup %3069 }
0x1220   :  { %v1302_v56 = vadd.f32 1.0, %v3070_v55 }
0x1222   :  { %3071 = vrcp.f32 %v1302_v56 }
0x122f   :  { %v3072_v57 = vpop.eup %3071 }
0x1230   :  { %v1309_v61 = vmul.f32 %v3072_v57, %v1307_v60 }
0x1290   :  { %v1312_v58 = vpop.permute.xlu0 %1311 }
0x1291   :  { %v1314_v59 = vmul.f32 %v3072_v57, %v1312_v58 }
0x1293   :  { %1316 = vrot.lane.b32.xlu1 %v1314_v59, %s3150_s5 }
0x1305   :  { %v1317_v62 = vpop.permute.xlu1 %1316 }
0x1306   :  { %v1319_v63 = vadd.f32 %v1317_v62, %v1309_v61 }
0x1308   :  { %3073 = vtanh.f32 %v1319_v63 }
0x1315   :  { %v3074_v0 = vpop.eup %3073 }
0x1316   :  { %1322 = vrot.lane.b32.xlu0 %v3074_v0, %s3149_s22 }
0x1388   :  { %v1323_v1 = vpop.permute.xlu0 %1322 }
0x1389   :  { %v1325_v3 = vmul.f32 %v3072_v57, %v1323_v1 }
0x138b   :  { %v1332_v4 = vrot.slane %v1325_v3, 6 }
0x138d   :  { %1333 = vrot.lane.b32.xlu1 %v1332_v4, %s3150_s5 }
0x13ff   :  { %v1334_v5 = vpop.permute.xlu1 %1333 }
0x1400   :  { %2903 = vmatmul.mubr.msk.f32.vlgmr.msra.gmra.mxu1 %vm558_vm2, %v1334_v5 }
0x1401   :  { %2924 = vmatprep.mubr.msk.f32.mxu1 %vm3148_vm0, %v3147_v8  ;;  %2917 = vmatpush3.msra.mxu1 %v3878_v30 }
0x1402   :  { %2918 = vmatprep.subr.mxu1 %v3147_v8 }
0x14c0   :  { %v1403_v6 = vpop.f32.mrf.mxu1 }
0x14c1   :  { %v1408_v7 = vrot.slane %v1403_v6, 1 }
0x14c2   :  { %v2904_v9 = vpop.f32.mrf.mxu1 }
0x14c3   :  { %v1410_v10 = vadd.f32 %v1408_v7, %v3744_v50  ;;  %v1419_v50 = vrot.slane %v1319_v63, 7 }
0x14c5   :  { %3075 = vtanh.f32 %v1410_v10  ;;  %v2515_v12 = vmul.f32 -1.442695, %v1410_v10 }
0x14c7   :  { %3077 = vpow2.f32 %v2515_v12 }
0x14d2   :  { %v3076_v11 = vpop.eup %3075 }
0x14d3   :  { %1423 = vrot.lane.b32.xlu0 %v3076_v11, %s3149_s22 }
0x14d4   :  { %v3078_v13 = vpop.eup %3077 }
0x14d5   :  { %v1414_v14 = vadd.f32 1.0, %v3078_v13 }
0x14d7   :  { %3079 = vrcp.f32 %v1414_v14 }
0x14e4   :  { %v3080_v15 = vpop.eup %3079 }
0x14e5   :  { %v1421_v18 = vmul.f32 %v3080_v15, %v1419_v50 }
0x1545   :  { %v1424_v16 = vpop.permute.xlu0 %1423 }
0x1546   :  { %v1426_v17 = vmul.f32 %v3080_v15, %v1424_v16 }
0x1548   :  { %1428 = vrot.lane.b32.xlu1 %v1426_v17, %s3150_s5 }
0x154c   :  { %767 = vrot.lane.b32.xlu1 %v3767_v21, %s3150_s5 }
0x1550   :  { %991 = vrot.lane.b32.xlu1 %v3805_v2, %s3150_s5 }
0x1554   :  { %1215 = vrot.lane.b32.xlu1 %v1213_v44, %s3150_s5 }
0x15ba   :  { %v1429_v19 = vpop.permute.xlu1 %1428 }
0x15bb   :  { %v1431_v20 = vadd.f32 %v1429_v19, %v1421_v18 }
0x15bd   :  { %3081 = vtanh.f32 %v1431_v20 }
0x15be   :  { %v768_v23 = vpop.permute.xlu1 %767 }
0x15bf   :  { %771 = vst.msk [vmem:[#allocation2] sm:$0x2] %vm770_vm3, %v768_v23 }
0x15c2   :  { %v992_v25 = vpop.permute.xlu1 %991 }
0x15c3   :  { %995 = vst.msk [vmem:[#allocation2] sm:$0x8] %vm994_vm4, %v992_v25 }
0x15c6   :  { %v1216_v21 = vpop.permute.xlu1 %1215 }
0x15c7   :  { %1219 = vst.msk [vmem:[#allocation2] sm:$0x20] %vm1218_vm5, %v1216_v21 }
0x15ca   :  { %v3082_v2 = vpop.eup %3081 }
0x15cb   :  { %1434 = vrot.lane.b32.xlu0 %v3082_v2, %s3149_s22 }
0x15cf   :  { %879 = vrot.lane.b32.xlu0 %v3786_v45, %s3150_s5  ;;  %v3887_v45 = vld [vmem:[%s4108_s7 + $0x10] sm:$0xff] }
0x15d0   :  { %2919 = vmatpush3.msra.mxu1 %v3887_v45 }
0x15d1   :  { %2920 = vmatprep.subr.mxu1 %v3147_v8 }
0x15d2   :  { %2921 = vmatpush3.msra.mxu1 %v3897_v32 }
0x15d3   :  { %1103 = vrot.lane.b32.xlu0 %v3824_v27, %s3150_s5  ;;  %v1446_v27 = vld [vmem:[%s4107_s6 + $0x8] sm:$0xff]  ;;  %2922 = vmatprep.subr.mxu1 %v3147_v8 }
0x15d4   :  { %2910 = vmatpush3.msra.mxu0 %v1446_v27  ;;  %2923 = vmatpush3.msra.mxu1 %v3908_v33 }
0x15d5   :  { %2911 = vmatprep.subr.mxu0 %v3147_v8  ;;  %2925 = vmatmul.mubr.f32.vlgmr.msra.gmra.mxu1 %v3147_v8 }
0x15d6   :  { %2912 = vmatpush3.msra.mxu0 %v1445_v22  ;;  %2938 = vmatprep.subr.mxu1 %v3147_v8 }
0x15d7   :  { %1327 = vrot.lane.b32.xlu0 %v1325_v3, %s3150_s5  ;;  %2927 = vmatprep.subr.mxu0 %v3147_v8 }
0x15d8   :  { %2946 = vmatprep.mubr.msk.f32.mxu1 %vm3148_vm0, %v3147_v8  ;;  %2939 = vmatpush3.msra.mxu1 %v3878_v30 }
0x15d9   :  { %2940 = vmatprep.subr.mxu1 %v3147_v8 }
0x15da   :  { %2941 = vmatpush3.msra.mxu1 %v3887_v45 }
0x15db   :  { %2942 = vmatprep.subr.mxu1 %v3147_v8 }
0x15dc   :  { %2943 = vmatpush3.msra.mxu1 %v3897_v32 }
0x15dd   :  { %2944 = vmatprep.subr.mxu1 %v3147_v8 }
0x15de   :  { %2945 = vmatpush3.msra.mxu1 %v3908_v33 }
0x15df   :  { %2960 = vmatprep.subr.mxu1 %v3147_v8 }
0x163d   :  { %v1435_v34 = vpop.permute.xlu0 %1434 }
0x163e   :  { %v1437_v24 = vmul.f32 %v3080_v15, %v1435_v34 }
0x1640   :  { %1439 = vrot.lane.b32.xlu1 %v1437_v24, %s3150_s5 }
0x1641   :  { %v880_v35 = vpop.permute.xlu0 %879 }
0x1642   :  { %883 = vst.msk [vmem:[#allocation2] sm:$0x4] %vm882_vm6, %v880_v35 }
0x1645   :  { %v1104_v36 = vpop.permute.xlu0 %1103 }
0x1646   :  { %1107 = vst.msk [vmem:[#allocation2] sm:$0x10] %vm1106_vm7, %v1104_v36 }
0x1649   :  { %v1328_v26 = vpop.permute.xlu0 %1327 }
0x164a   :  { %1331 = vst.msk [vmem:[#allocation2] sm:$0x40] %vm1330_vm8, %v1328_v26 }
0x1695   :  { %v1599_v28 = vpop.f32.mrf.mxu1 }
0x1697   :  { %v2926_v39 = vpop.f32.mrf.mxu1 }
0x16b2   :  { %v1440_v37 = vpop.permute.xlu1 %1439 }
0x16b3   :  { %1443 = vst.msk [vmem:[#allocation2] sm:$0x80] %vm1442_vm9, %v1440_v37 }
0x16ba   :  { %v1444_v38 = vld [vmem:[#allocation2] sm:$0xff] }
0x16bb   :  { %2914 = vmatmul.mubr.msk.f32.vlgmr.msra.gmra.mxu0 %vm558_vm2, %v1444_v38 }
0x16bc   :  { %2928 = vmatpush3.msra.mxu0 %v3878_v30  ;;  %2935 = vmatprep.mubr.msk.f32.mxu0 %vm3148_vm0, %v3147_v8 }
0x16bd   :  { %2929 = vmatprep.subr.mxu0 %v3147_v8 }
0x16be   :  { %2930 = vmatpush3.msra.mxu0 %v3887_v45 }
0x16bf   :  { %2931 = vmatprep.subr.mxu0 %v3147_v8 }
0x16c0   :  { %2932 = vmatpush3.msra.mxu0 %v3897_v32 }
0x16c1   :  { %2933 = vmatprep.subr.mxu0 %v3147_v8 }
0x16c2   :  { %2934 = vmatpush3.msra.mxu0 %v3908_v33 }
0x16c3   :  { %2949 = vmatprep.subr.mxu0 %v3147_v8 }
0x177b   :  { %v1525_v41 = vpop.f32.mrf.mxu0 }
0x177c   :  { %v3946_v42 = vadd.f32 %v2516_v40, %v1525_v41 }
0x177d   :  { %v2915_v43 = vpop.f32.mrf.mxu0 }
0x177e   :  { %v1603_v44 = vadd.f32 %v1599_v28, %v3946_v42 }
0x1780   :  { %3083 = vtanh.f32 %v1603_v44  ;;  %v2518_v47 = vmul.f32 -1.442695, %v1603_v44 }
0x1782   :  { %3085 = vpow2.f32 %v2518_v47 }
0x178d   :  { %v3084_v46 = vpop.eup %3083 }
0x178e   :  { %1613 = vrot.lane.b32.xlu0 %v3084_v46, %s3149_s22 }
0x178f   :  { %v3086_v48 = vpop.eup %3085 }
0x1790   :  { %v1607_v49 = vadd.f32 1.0, %v3086_v48 }
0x1792   :  { %3087 = vrcp.f32 %v1607_v49 }
0x179f   :  { %v3088_v51 = vpop.eup %3087 }
0x17a0   :  { %v1611_v54 = vmul.f32 0.0, %v3088_v51 }
0x1800   :  { %v1614_v52 = vpop.permute.xlu0 %1613 }
0x1801   :  { %v1616_v53 = vmul.f32 %v3088_v51, %v1614_v52 }
0x1803   :  { %1618 = vrot.lane.b32.xlu1 %v1616_v53, %s3150_s5 }
0x1875   :  { %v1619_v55 = vpop.permute.xlu1 %1618 }
0x1876   :  { %v1621_v56 = vadd.f32 %v1619_v55, %v1611_v54 }
0x1878   :  { %3089 = vtanh.f32 %v1621_v56  ;;  %v1717_v10 = vrot.slane %v1621_v56, 7 }
0x1885   :  { %v3090_v57 = vpop.eup %3089 }
0x1886   :  { %1624 = vrot.lane.b32.xlu0 %v3090_v57, %s3149_s22 }
0x18f8   :  { %v1625_v58 = vpop.permute.xlu0 %1624 }
0x18f9   :  { %v1627_v59 = vmul.f32 %v3088_v51, %v1625_v58 }
0x18fb   :  { %1629 = vrot.lane.b32.xlu1 %v1627_v59, %s3150_s5 }
0x196d   :  { %v1630_v60 = vpop.permute.xlu1 %1629 }
0x196e   :  { %1632 = vst.msk [vmem:[#allocation3] sm:$0x1] %vm661_vm1, %v1630_v60  ;;  %2936 = vmatmul.mubr.msk.f32.vlgmr.msra.gmra.mxu0 %vm558_vm2, %v1630_v60 }
0x196f   :  { %2950 = vmatpush3.msra.mxu0 %v3878_v30  ;;  %2957 = vmatprep.mubr.msk.f32.mxu0 %vm3148_vm0, %v3147_v8 }
0x1970   :  { %2951 = vmatprep.subr.mxu0 %v3147_v8 }
0x1971   :  { %2952 = vmatpush3.msra.mxu0 %v3887_v45 }
0x1972   :  { %2953 = vmatprep.subr.mxu0 %v3147_v8 }
0x1973   :  { %2954 = vmatpush3.msra.mxu0 %v3897_v32 }
0x1974   :  { %2955 = vmatprep.subr.mxu0 %v3147_v8 }
0x1975   :  { %2956 = vmatpush3.msra.mxu0 %v3908_v33 }
0x1976   :  { %2971 = vmatprep.subr.mxu0 %v3147_v8 }
0x1a2e   :  { %v1701_v61 = vpop.f32.mrf.mxu0 }
0x1a2f   :  { %v1706_v62 = vrot.slane %v1701_v61, 7 }
0x1a30   :  { %v2937_v63 = vpop.f32.mrf.mxu0 }
0x1a31   :  { %v1708_v0 = vadd.f32 %v1706_v62, %v3946_v42 }
0x1a33   :  { %3091 = vtanh.f32 %v1708_v0  ;;  %v2520_v3 = vmul.f32 -1.442695, %v1708_v0 }
0x1a35   :  { %3093 = vpow2.f32 %v2520_v3 }
0x1a40   :  { %v3092_v1 = vpop.eup %3091 }
0x1a41   :  { %1721 = vrot.lane.b32.xlu0 %v3092_v1, %s3149_s22 }
0x1a42   :  { %v3094_v4 = vpop.eup %3093 }
0x1a43   :  { %v1712_v5 = vadd.f32 1.0, %v3094_v4 }
0x1a45   :  { %3095 = vrcp.f32 %v1712_v5 }
0x1a52   :  { %v3096_v6 = vpop.eup %3095 }
0x1a53   :  { %v1719_v11 = vmul.f32 %v3096_v6, %v1717_v10 }
0x1ab3   :  { %v1722_v7 = vpop.permute.xlu0 %1721 }
0x1ab4   :  { %v1724_v9 = vmul.f32 %v3096_v6, %v1722_v7 }
0x1ab6   :  { %1726 = vrot.lane.b32.xlu1 %v1724_v9, %s3150_s5 }
0x1b28   :  { %v1727_v12 = vpop.permute.xlu1 %1726 }
0x1b29   :  { %v1729_v13 = vadd.f32 %v1727_v12, %v1719_v11 }
0x1b2b   :  { %3097 = vtanh.f32 %v1729_v13  ;;  %v1828_v34 = vrot.slane %v1729_v13, 7 }
0x1b38   :  { %v3098_v14 = vpop.eup %3097 }
0x1b39   :  { %1732 = vrot.lane.b32.xlu0 %v3098_v14, %s3149_s22 }
0x1bab   :  { %v1733_v15 = vpop.permute.xlu0 %1732 }
0x1bac   :  { %v3969_v16 = vmul.f32 %v3096_v6, %v1733_v15 }
0x1bae   :  { %v1741_v17 = vrot.slane %v3969_v16, 1 }
0x1bb0   :  { %1742 = vrot.lane.b32.xlu1 %v1741_v17, %s3150_s5 }
0x1c22   :  { %v1743_v50 = vpop.permute.xlu1 %1742 }
0x1c23   :  { %2947 = vmatmul.mubr.msk.f32.vlgmr.msra.gmra.mxu1 %vm558_vm2, %v1743_v50 }
0x1c24   :  { %2961 = vmatpush3.msra.mxu1 %v3878_v30  ;;  %2968 = vmatprep.mubr.msk.f32.mxu1 %vm3148_vm0, %v3147_v8 }
0x1c25   :  { %2962 = vmatprep.subr.mxu1 %v3147_v8 }
0x1c26   :  { %2963 = vmatpush3.msra.mxu1 %v3887_v45 }
0x1c27   :  { %2964 = vmatprep.subr.mxu1 %v3147_v8 }
0x1c28   :  { %2965 = vmatpush3.msra.mxu1 %v3897_v32 }
0x1c29   :  { %2966 = vmatprep.subr.mxu1 %v3147_v8 }
0x1c2a   :  { %2967 = vmatpush3.msra.mxu1 %v3908_v33 }
0x1c2b   :  { %2982 = vmatprep.subr.mxu1 %v3147_v8 }
0x1ce3   :  { %v1812_v18 = vpop.f32.mrf.mxu1 }
0x1ce4   :  { %v1817_v19 = vrot.slane %v1812_v18, 6 }
0x1ce5   :  { %v2948_v20 = vpop.f32.mrf.mxu1 }
0x1ce6   :  { %v1819_v23 = vadd.f32 %v1817_v19, %v3946_v42 }
0x1ce8   :  { %3099 = vtanh.f32 %v1819_v23  ;;  %v2522_v21 = vmul.f32 -1.442695, %v1819_v23 }
0x1cea   :  { %3101 = vpow2.f32 %v2522_v21 }
0x1cf5   :  { %v3100_v25 = vpop.eup %3099 }
0x1cf6   :  { %1832 = vrot.lane.b32.xlu0 %v3100_v25, %s3149_s22 }
0x1cf7   :  { %v3102_v2 = vpop.eup %3101 }
0x1cf8   :  { %v1823_v29 = vadd.f32 1.0, %v3102_v2 }
0x1cfa   :  { %3103 = vrcp.f32 %v1823_v29 }
0x1d07   :  { %v3104_v31 = vpop.eup %3103 }
0x1d08   :  { %v1830_v24 = vmul.f32 %v3104_v31, %v1828_v34 }
0x1d68   :  { %v1833_v27 = vpop.permute.xlu0 %1832 }
0x1d69   :  { %v1835_v22 = vmul.f32 %v3104_v31, %v1833_v27 }
0x1d6b   :  { %1837 = vrot.lane.b32.xlu1 %v1835_v22, %s3150_s5 }
0x1ddd   :  { %v1838_v35 = vpop.permute.xlu1 %1837 }
0x1dde   :  { %v1840_v36 = vadd.f32 %v1838_v35, %v1830_v24 }
0x1de0   :  { %3105 = vtanh.f32 %v1840_v36  ;;  %v1939_v54 = vrot.slane %v1840_v36, 7 }
0x1ded   :  { %v3106_v26 = vpop.eup %3105 }
0x1dee   :  { %1843 = vrot.lane.b32.xlu0 %v3106_v26, %s3149_s22 }
0x1e60   :  { %v1844_v37 = vpop.permute.xlu0 %1843 }
0x1e61   :  { %v3988_v38 = vmul.f32 %v3104_v31, %v1844_v37 }
0x1e63   :  { %v1852_v28 = vrot.slane %v3988_v38, 2 }
0x1e65   :  { %1853 = vrot.lane.b32.xlu1 %v1852_v28, %s3150_s5 }
0x1ed7   :  { %v1854_v39 = vpop.permute.xlu1 %1853 }
0x1ed8   :  { %2958 = vmatmul.mubr.msk.f32.vlgmr.msra.gmra.mxu0 %vm558_vm2, %v1854_v39 }
0x1ed9   :  { %2972 = vmatpush3.msra.mxu0 %v3878_v30  ;;  %2979 = vmatprep.mubr.msk.f32.mxu0 %vm3148_vm0, %v3147_v8 }
0x1eda   :  { %2973 = vmatprep.subr.mxu0 %v3147_v8 }
0x1edb   :  { %2974 = vmatpush3.msra.mxu0 %v3887_v45 }
0x1edc   :  { %2975 = vmatprep.subr.mxu0 %v3147_v8 }
0x1edd   :  { %2976 = vmatpush3.msra.mxu0 %v3897_v32 }
0x1ede   :  { %2977 = vmatprep.subr.mxu0 %v3147_v8 }
0x1edf   :  { %2978 = vmatpush3.msra.mxu0 %v3908_v33 }
0x1ee0   :  { %2993 = vmatprep.subr.mxu0 %v3147_v8 }
0x1f98   :  { %v1923_v40 = vpop.f32.mrf.mxu0 }
0x1f99   :  { %v1928_v41 = vrot.slane %v1923_v40, 5 }
0x1f9a   :  { %v2959_v43 = vpop.f32.mrf.mxu0 }
0x1f9b   :  { %v1930_v44 = vadd.f32 %v1928_v41, %v3946_v42 }
0x1f9d   :  { %3107 = vtanh.f32 %v1930_v44  ;;  %v2524_v47 = vmul.f32 -1.442695, %v1930_v44 }
0x1f9f   :  { %3109 = vpow2.f32 %v2524_v47 }
0x1faa   :  { %v3108_v46 = vpop.eup %3107 }
0x1fab   :  { %1943 = vrot.lane.b32.xlu0 %v3108_v46, %s3149_s22 }
0x1fac   :  { %v3110_v48 = vpop.eup %3109 }
0x1fad   :  { %v1934_v49 = vadd.f32 1.0, %v3110_v48 }
0x1faf   :  { %3111 = vrcp.f32 %v1934_v49 }
0x1fbc   :  { %v3112_v51 = vpop.eup %3111 }
0x1fbd   :  { %v1941_v55 = vmul.f32 %v3112_v51, %v1939_v54 }
0x201d   :  { %v1944_v52 = vpop.permute.xlu0 %1943 }
0x201e   :  { %v1946_v53 = vmul.f32 %v3112_v51, %v1944_v52 }
0x2020   :  { %1948 = vrot.lane.b32.xlu1 %v1946_v53, %s3150_s5 }
0x2092   :  { %v1949_v56 = vpop.permute.xlu1 %1948 }
0x2093   :  { %v1951_v57 = vadd.f32 %v1949_v56, %v1941_v55 }
0x2095   :  { %3113 = vtanh.f32 %v1951_v57  ;;  %v2050_v12 = vrot.slane %v1951_v57, 7 }
0x20a2   :  { %v3114_v58 = vpop.eup %3113 }
0x20a3   :  { %1954 = vrot.lane.b32.xlu0 %v3114_v58, %s3149_s22 }
0x2115   :  { %v1955_v59 = vpop.permute.xlu0 %1954 }
0x2116   :  { %v4007_v60 = vmul.f32 %v3112_v51, %v1955_v59 }
0x2118   :  { %v1963_v61 = vrot.slane %v4007_v60, 3 }
0x211a   :  { %1964 = vrot.lane.b32.xlu1 %v1963_v61, %s3150_s5 }
0x218c   :  { %v1965_v62 = vpop.permute.xlu1 %1964 }
0x218d   :  { %2969 = vmatmul.mubr.msk.f32.vlgmr.msra.gmra.mxu1 %vm558_vm2, %v1965_v62 }
0x218e   :  { %2983 = vmatpush3.msra.mxu1 %v3878_v30  ;;  %2990 = vmatprep.mubr.msk.f32.mxu1 %vm3148_vm0, %v3147_v8 }
0x218f   :  { %2984 = vmatprep.subr.mxu1 %v3147_v8 }
0x2190   :  { %2985 = vmatpush3.msra.mxu1 %v3887_v45 }
0x2191   :  { %2986 = vmatprep.subr.mxu1 %v3147_v8 }
0x2192   :  { %2987 = vmatpush3.msra.mxu1 %v3897_v32 }
0x2193   :  { %2988 = vmatprep.subr.mxu1 %v3147_v8 }
0x2194   :  { %2989 = vmatpush3.msra.mxu1 %v3908_v33 }
0x2195   :  { %3004 = vmatprep.subr.mxu1 %v3147_v8 }
0x224d   :  { %v2034_v63 = vpop.f32.mrf.mxu1 }
0x224e   :  { %v2039_v0 = vrot.slane %v2034_v63, 4 }
0x224f   :  { %v2970_v1 = vpop.f32.mrf.mxu1 }
0x2250   :  { %v2041_v3 = vadd.f32 %v2039_v0, %v3946_v42 }
0x2252   :  { %3115 = vtanh.f32 %v2041_v3  ;;  %v2526_v5 = vmul.f32 -1.442695, %v2041_v3 }
0x2254   :  { %3117 = vpow2.f32 %v2526_v5 }
0x225f   :  { %v3116_v4 = vpop.eup %3115 }
0x2260   :  { %2054 = vrot.lane.b32.xlu0 %v3116_v4, %s3149_s22 }
0x2261   :  { %v3118_v6 = vpop.eup %3117 }
0x2262   :  { %v2045_v7 = vadd.f32 1.0, %v3118_v6 }
0x2264   :  { %3119 = vrcp.f32 %v2045_v7 }
0x2271   :  { %v3120_v9 = vpop.eup %3119 }
0x2272   :  { %v2052_v13 = vmul.f32 %v3120_v9, %v2050_v12 }
0x22d2   :  { %v2055_v10 = vpop.permute.xlu0 %2054 }
0x22d3   :  { %v2057_v11 = vmul.f32 %v3120_v9, %v2055_v10 }
0x22d5   :  { %2059 = vrot.lane.b32.xlu1 %v2057_v11, %s3150_s5 }
0x2347   :  { %v2060_v14 = vpop.permute.xlu1 %2059 }
0x2348   :  { %v2062_v15 = vadd.f32 %v2060_v14, %v2052_v13 }
0x234a   :  { %3121 = vtanh.f32 %v2062_v15 }
0x2357   :  { %v3122_v17 = vpop.eup %3121 }
0x2358   :  { %2065 = vrot.lane.b32.xlu0 %v3122_v17, %s3149_s22 }
0x23ca   :  { %v2066_v50 = vpop.permute.xlu0 %2065 }
0x23cb   :  { %v4026_v18 = vmul.f32 %v3120_v9, %v2066_v50 }
0x23cd   :  { %v2074_v19 = vrot.slane %v4026_v18, 4 }
0x23cf   :  { %2075 = vrot.lane.b32.xlu1 %v2074_v19, %s3150_s5 }
0x2441   :  { %v2076_v20 = vpop.permute.xlu1 %2075 }
0x2442   :  { %2980 = vmatmul.mubr.msk.f32.vlgmr.msra.gmra.mxu0 %vm558_vm2, %v2076_v20  ;;  %v2410_v20 = vld [vmem:[%s4110_s9 + $0x10] sm:$0xff] }
0x2443   :  { %2994 = vmatpush3.msra.mxu0 %v3878_v30  ;;  %3001 = vmatprep.mubr.msk.f32.mxu0 %vm3148_vm0, %v3147_v8 }
0x2444   :  { %2995 = vmatprep.subr.mxu0 %v3147_v8 }
0x2445   :  { %2996 = vmatpush3.msra.mxu0 %v3887_v45 }
0x2446   :  { %2997 = vmatprep.subr.mxu0 %v3147_v8 }
0x2447   :  { %2998 = vmatpush3.msra.mxu0 %v3897_v32 }
0x2448   :  { %2999 = vmatprep.subr.mxu0 %v3147_v8 }
0x2449   :  { %3000 = vmatpush3.msra.mxu0 %v3908_v33  ;;  %v2161_v33 = vrot.slane %v2062_v15, 7 }
0x2502   :  { %v2145_v23 = vpop.f32.mrf.mxu0 }
0x2503   :  { %v2150_v25 = vrot.slane %v2145_v23, 3 }
0x2504   :  { %v2981_v21 = vpop.f32.mrf.mxu0 }
0x2505   :  { %v2152_v30 = vadd.f32 %v2150_v25, %v3946_v42 }
0x2507   :  { %3123 = vtanh.f32 %v2152_v30  ;;  %v2528_v29 = vmul.f32 -1.442695, %v2152_v30 }
0x2509   :  { %3125 = vpow2.f32 %v2528_v29 }
0x2514   :  { %v3124_v2 = vpop.eup %3123 }
0x2515   :  { %2165 = vrot.lane.b32.xlu0 %v3124_v2, %s3149_s22 }
0x2516   :  { %v3126_v45 = vpop.eup %3125 }
0x2517   :  { %v2156_v31 = vadd.f32 1.0, %v3126_v45 }
0x2519   :  { %3127 = vrcp.f32 %v2156_v31 }
0x2526   :  { %v3128_v27 = vpop.eup %3127 }
0x2527   :  { %v2163_v34 = vmul.f32 %v3128_v27, %v2161_v33 }
0x2587   :  { %v2166_v32 = vpop.permute.xlu0 %2165 }
0x2588   :  { %v2168_v22 = vmul.f32 %v3128_v27, %v2166_v32 }
0x258a   :  { %2170 = vrot.lane.b32.xlu1 %v2168_v22, %s3150_s5 }
0x25fc   :  { %v2171_v24 = vpop.permute.xlu1 %2170 }
0x25fd   :  { %v2173_v35 = vadd.f32 %v2171_v24, %v2163_v34 }
0x25ff   :  { %3129 = vtanh.f32 %v2173_v35  ;;  %v2272_v54 = vrot.slane %v2173_v35, 7 }
0x260c   :  { %v3130_v36 = vpop.eup %3129 }
0x260d   :  { %2176 = vrot.lane.b32.xlu0 %v3130_v36, %s3149_s22 }
0x267f   :  { %v2177_v26 = vpop.permute.xlu0 %2176 }
0x2680   :  { %v2179_v37 = vmul.f32 %v3128_v27, %v2177_v26 }
0x2682   :  { %v2185_v28 = vrot.slane %v2179_v37, 5 }
0x2684   :  { %2186 = vrot.lane.b32.xlu1 %v2185_v28, %s3150_s5 }
0x26f6   :  { %v2187_v39 = vpop.permute.xlu1 %2186 }
0x26f7   :  { %2991 = vmatmul.mubr.msk.f32.vlgmr.msra.gmra.mxu1 %vm558_vm2, %v2187_v39 }
0x26f8   :  { %3012 = vmatprep.mubr.msk.f32.mxu1 %vm3148_vm0, %v3147_v8 }
0x27b7   :  { %v2256_v40 = vpop.f32.mrf.mxu1 }
0x27b8   :  { %v2261_v41 = vrot.slane %v2256_v40, 2 }
0x27b9   :  { %v2992_v43 = vpop.f32.mrf.mxu1 }
0x27ba   :  { %v2263_v44 = vadd.f32 %v2261_v41, %v3946_v42 }
0x27bc   :  { %3131 = vtanh.f32 %v2263_v44  ;;  %v2530_v47 = vmul.f32 -1.442695, %v2263_v44 }
0x27be   :  { %3133 = vpow2.f32 %v2530_v47 }
0x27c9   :  { %v3132_v46 = vpop.eup %3131 }
0x27ca   :  { %2276 = vrot.lane.b32.xlu0 %v3132_v46, %s3149_s22 }
0x27cb   :  { %v3134_v48 = vpop.eup %3133 }
0x27cc   :  { %v2267_v49 = vadd.f32 1.0, %v3134_v48 }
0x27ce   :  { %3135 = vrcp.f32 %v2267_v49 }
0x27db   :  { %v3136_v51 = vpop.eup %3135 }
0x27dc   :  { %v2274_v55 = vmul.f32 %v3136_v51, %v2272_v54 }
0x283c   :  { %v2277_v52 = vpop.permute.xlu0 %2276 }
0x283d   :  { %v2279_v53 = vmul.f32 %v3136_v51, %v2277_v52 }
0x283f   :  { %2281 = vrot.lane.b32.xlu1 %v2279_v53, %s3150_s5 }
0x28b1   :  { %v2282_v56 = vpop.permute.xlu1 %2281 }
0x28b2   :  { %v2284_v57 = vadd.f32 %v2282_v56, %v2274_v55 }
0x28b4   :  { %3137 = vtanh.f32 %v2284_v57 }
0x28c1   :  { %v3138_v58 = vpop.eup %3137 }
0x28c2   :  { %2287 = vrot.lane.b32.xlu0 %v3138_v58, %s3149_s22 }
0x2934   :  { %v2288_v59 = vpop.permute.xlu0 %2287 }
0x2935   :  { %v2290_v61 = vmul.f32 %v3136_v51, %v2288_v59 }
0x2937   :  { %v2296_v62 = vrot.slane %v2290_v61, 6 }
0x2939   :  { %2297 = vrot.lane.b32.xlu1 %v2296_v62, %s3150_s5 }
0x29ab   :  { %v2298_v63 = vpop.permute.xlu1 %2297 }
0x29ac   :  { %3002 = vmatmul.mubr.msk.f32.vlgmr.msra.gmra.mxu0 %vm558_vm2, %v2298_v63 }
0x2a6c   :  { %v2367_v0 = vpop.f32.mrf.mxu0 }
0x2a6d   :  { %v2372_v1 = vrot.slane %v2367_v0, 1 }
0x2a6e   :  { %v3003_v3 = vpop.f32.mrf.mxu0 }
0x2a6f   :  { %v2374_v4 = vadd.f32 %v2372_v1, %v3946_v42  ;;  %v2383_v42 = vrot.slane %v2284_v57, 7 }
0x2a71   :  { %3139 = vtanh.f32 %v2374_v4  ;;  %v2532_v6 = vmul.f32 -1.442695, %v2374_v4 }
0x2a73   :  { %3141 = vpow2.f32 %v2532_v6 }
0x2a7e   :  { %v3140_v5 = vpop.eup %3139 }
0x2a7f   :  { %2387 = vrot.lane.b32.xlu0 %v3140_v5, %s3149_s22 }
0x2a80   :  { %v3142_v7 = vpop.eup %3141 }
0x2a81   :  { %v2378_v9 = vadd.f32 1.0, %v3142_v7 }
0x2a83   :  { %3143 = vrcp.f32 %v2378_v9 }
0x2a90   :  { %v3144_v10 = vpop.eup %3143 }
0x2a91   :  { %v2385_v13 = vmul.f32 %v3144_v10, %v2383_v42 }
0x2af1   :  { %v2388_v11 = vpop.permute.xlu0 %2387 }
0x2af2   :  { %v2390_v12 = vmul.f32 %v3144_v10, %v2388_v11 }
0x2af4   :  { %2392 = vrot.lane.b32.xlu1 %v2390_v12, %s3150_s5 }
0x2af8   :  { %1737 = vrot.lane.b32.xlu1 %v3969_v16, %s3150_s5 }
0x2afc   :  { %1959 = vrot.lane.b32.xlu1 %v4007_v60, %s3150_s5  ;;  %v2411_v60 = vld [vmem:[%s4110_s9 + $0x18] sm:$0xff] }
0x2afd   :  { %3005 = vmatpush3.msra.mxu1 %v2411_v60 }
0x2afe   :  { %3006 = vmatprep.subr.mxu1 %v3147_v8 }
0x2aff   :  { %3007 = vmatpush3.msra.mxu1 %v2410_v20 }
0x2b00   :  { %2181 = vrot.lane.b32.xlu1 %v2179_v37, %s3150_s5  ;;  %3008 = vmatprep.subr.mxu1 %v3147_v8 }
0x2b66   :  { %v2393_v14 = vpop.permute.xlu1 %2392 }
0x2b67   :  { %v2395_v15 = vadd.f32 %v2393_v14, %v2385_v13 }
0x2b69   :  { %3145 = vtanh.f32 %v2395_v15 }
0x2b6a   :  { %v1738_v17 = vpop.permute.xlu1 %1737 }
0x2b6b   :  { %1740 = vst.msk [vmem:[#allocation3] sm:$0x2] %vm770_vm3, %v1738_v17 }
0x2b6e   :  { %v1960_v50 = vpop.permute.xlu1 %1959 }
0x2b6f   :  { %1962 = vst.msk [vmem:[#allocation3] sm:$0x8] %vm994_vm4, %v1960_v50 }
0x2b72   :  { %v2182_v19 = vpop.permute.xlu1 %2181 }
0x2b73   :  { %2184 = vst.msk [vmem:[#allocation3] sm:$0x20] %vm1218_vm5, %v2182_v19 }
0x2b76   :  { %v3146_v16 = vpop.eup %3145 }
0x2b77   :  { %2398 = vrot.lane.b32.xlu0 %v3146_v16, %s3149_s22 }
0x2b7b   :  { %1848 = vrot.lane.b32.xlu0 %v3988_v38, %s3150_s5  ;;  %v2409_v38 = vld [vmem:[%s4110_s9 + $0x8] sm:$0xff] }
0x2b7c   :  { %3009 = vmatpush3.msra.mxu1 %v2409_v38 }
0x2b7d   :  { %3010 = vmatprep.subr.mxu1 %v3147_v8  ;;  %v2533_v8 = vld [vmem:[%s4111_s10] ss:$0 sm:$0xff] }
0x2b7f   :  { %2070 = vrot.lane.b32.xlu0 %v4026_v18, %s3150_s5  ;;  %v2408_v18 = vld [vmem:[%s4110_s9] sm:$0xff] }
0x2b80   :  { %3011 = vmatpush3.msra.mxu1 %v2408_v18 }
0x2b83   :  { %2292 = vrot.lane.b32.xlu0 %v2290_v61, %s3150_s5 }
0x2be9   :  { %v2399_v23 = vpop.permute.xlu0 %2398 }
0x2bea   :  { %v2401_v25 = vmul.f32 %v3144_v10, %v2399_v23 }
0x2bec   :  { %2403 = vrot.lane.b32.xlu1 %v2401_v25, %s3150_s5 }
0x2bed   :  { %v1849_v21 = vpop.permute.xlu0 %1848 }
0x2bee   :  { %1851 = vst.msk [vmem:[#allocation3] sm:$0x4] %vm882_vm6, %v1849_v21 }
0x2bf1   :  { %v2071_v30 = vpop.permute.xlu0 %2070 }
0x2bf2   :  { %2073 = vst.msk [vmem:[#allocation3] sm:$0x10] %vm1106_vm7, %v2071_v30 }
0x2bf5   :  { %v2293_v2 = vpop.permute.xlu0 %2292 }
0x2bf6   :  { %2295 = vst.msk [vmem:[#allocation3] sm:$0x40] %vm1330_vm8, %v2293_v2 }
0x2c5e   :  { %v2404_v29 = vpop.permute.xlu1 %2403 }
0x2c5f   :  { %2406 = vst.msk [vmem:[#allocation3] sm:$0x80] %vm1442_vm9, %v2404_v29 }
0x2c66   :  { %v2407_v45 = vld [vmem:[#allocation3] sm:$0xff] }
0x2c67   :  { %3013 = vmatmul.mubr.msk.f32.vlgmr.msra.gmra.mxu1 %vm558_vm2, %v2407_v45 }
0x2d27   :  { %v2488_v31 = vpop.f32.mrf.mxu1 }
0x2d28   :  { %v2489_v27 = vadd.f32 %v2533_v8, %v2488_v31 }
0x2d29   :  { %v3014_v32 = vpop.f32.mrf.mxu1 }
0x2d2a   :  { %2493 = vst.msk [vmem:[%s4112_s11] sm:$0xff] %vm2492_vm10, %v2489_v27  ;;  %2494 = vst.msk [vmem:[%s4112_s11 + $0x8] sm:$0xff] %vm2492_vm10, %v2489_v27 }

</bundles_post_ra>
